<compile_context>
chip_gen: v7x
topology: tpu7x:2x2x1
jax: 0.10.0
libtpu: 0.0.40
codegen_flags: <defaults>
</compile_context>

<pallas_src>
import jax
import jax.numpy as jnp
from jax import lax
from jax.experimental import pallas as pl
from jax.experimental.pallas import tpu as pltpu


# ----------------------------------------------------------------------------
# Pallas kernel: recurrence (2 layers) + max-over-time + final linear.
# All operands are small enough to be fully VMEM-resident in one ungridded call.
# (If T/B ever scale up — esp. on v7x's 64 MiB VMEM — stream xproj over a
#  time-chunk grid axis with a BlockSpec instead; unnecessary at these sizes.)
# ----------------------------------------------------------------------------
def temporal_rnn_kernel(
    xp_ref,      # (T, B, 4*Hp) f32  precomputed x @ W_ih0 + b0 (padded gate lanes = 0)
    whh0_ref,    # (Hp, 4*Hp)   bf16 layer-0 hidden->gates (padded rows/cols = 0)
    w1cat_ref,   # (2*Hp, 4*Hp) bf16 fused [W_ih1; W_hh1] for layer 1
    b1_ref,      # (1, 4*Hp)    f32  layer-1 combined bias (padded lanes = 0)
    wfc_ref,     # (Hp, C)      f32  final linear weight (padded rows = 0)
    bfc_ref,     # (1, C)       f32  final linear bias
    out_ref,     # (B, C)       f32  logits  (C=4 -> masked store; negligible at this size)
):
    T, B, G4 = xp_ref.shape
    Hp = G4 // 4

    # Hoist weight loads and the bias broadcast out of the serial loop
    # (JAX does not CSE broadcast_in_dim; re-reading weights per step is wasted ld slots).
    whh0 = whh0_ref[...]                                   # (Hp, 4Hp) bf16
    w1cat = w1cat_ref[...]                                 # (2Hp, 4Hp) bf16
    b1 = jnp.broadcast_to(b1_ref[...], (B, G4))            # (B, 4Hp) f32

    def gate_nl(g):
        # Lane-aligned gate slices (Hp = 128): offsets 0 / 128 / 256 / 384.
        i_g = jax.nn.sigmoid(g[:, 0 * Hp:1 * Hp])
        f_g = jax.nn.sigmoid(g[:, 1 * Hp:2 * Hp])
        g_g = jnp.tanh(g[:, 2 * Hp:3 * Hp])
        o_g = jax.nn.sigmoid(g[:, 3 * Hp:4 * Hp])
        return i_g, f_g, g_g, o_g

    def step(t, carry):
        h0, c0, h1, c1, mx = carry

        # ---- layer 0: input projection precomputed; only the recurrent matmul here ----
        g0 = xp_ref[t] + jnp.dot(h0.astype(jnp.bfloat16), whh0,
                                 preferred_element_type=jnp.float32)
        i0, f0, gg0, o0 = gate_nl(g0)
        c0 = f0 * c0 + i0 * gg0
        h0 = o0 * jnp.tanh(c0)

        # ---- layer 1: single fused matmul on concat([h0, h1]) (lane-aligned concat) ----
        xin1 = jnp.concatenate(
            [h0.astype(jnp.bfloat16), h1.astype(jnp.bfloat16)], axis=-1)   # (B, 2Hp)
        g1 = jnp.dot(xin1, w1cat, preferred_element_type=jnp.float32) + b1
        i1, f1, gg1, o1 = gate_nl(g1)
        c1 = f1 * c1 + i1 * gg1
        h1 = o1 * jnp.tanh(c1)

        mx = jnp.maximum(mx, h1)                           # torch.max(x, 1)[0]
        return (h0, c0, h1, c1, mx)

    zero = jnp.zeros((B, Hp), jnp.float32)
    init = (zero, zero, zero, zero, jnp.full((B, Hp), -jnp.inf, jnp.float32))
    # Fully unroll the short serial time loop so the LLO scheduler can overlap
    # layer-0 step t+1 with layer-1 step t elementwise/EUP work.
    _, _, _, _, mx = lax.fori_loop(0, T, step, init, unroll=True)

    out_ref[...] = (
        jnp.dot(mx, wfc_ref[...], preferred_element_type=jnp.float32) + bfc_ref[...]
    )


# ----------------------------------------------------------------------------
# Padding / fusion of parameters into the kernel layout (done once, outside jit)
# ----------------------------------------------------------------------------
def _pad_gate_cols(w, H, Hp):
    """(rows, 4H) -> (rows, 4Hp): zero-pad each gate block along the lane axis."""
    rows = w.shape[0]
    w4 = w.reshape(rows, 4, H)
    w4 = jnp.pad(w4, ((0, 0), (0, 0), (0, Hp - H)))
    return w4.reshape(rows, 4 * Hp)


def _pad_rows(w, Hp):
    """(H, cols) -> (Hp, cols): zero-pad contraction rows."""
    return jnp.pad(w, ((0, Hp - w.shape[0]), (0, 0)))


def prepare_kernel_params(p, H, Hp=128, matmul_dtype=jnp.bfloat16):
    wih0 = _pad_gate_cols(p["wih0"], H, Hp)                       # (I, 4Hp)  f32 (wrapper)
    b0 = _pad_gate_cols(p["b0"], H, Hp)                           # (1, 4Hp)  f32 (wrapper)
    whh0 = _pad_rows(_pad_gate_cols(p["whh0"], H, Hp), Hp).astype(matmul_dtype)
    wih1 = _pad_rows(_pad_gate_cols(p["wih1"], H, Hp), Hp)
    whh1 = _pad_rows(_pad_gate_cols(p["whh1"], H, Hp), Hp)
    w1cat = jnp.concatenate([wih1, whh1], axis=0).astype(matmul_dtype)   # (2Hp, 4Hp)
    b1 = _pad_gate_cols(p["b1"], H, Hp)                           # (1, 4Hp)  f32
    wfc = _pad_rows(p["wfc"], Hp)                                 # (Hp, C)   f32
    return dict(wih0=wih0, b0=b0, whh0=whh0, w1cat=w1cat, b1=b1,
                wfc=wfc, bfc=p["bfc"])


# ----------------------------------------------------------------------------
# Wrapper
# ----------------------------------------------------------------------------
@jax.jit
def temporal_rnn_forward(x, kp):
    B, T, I = x.shape
    C = kp["wfc"].shape[1]
    x_tbi = jnp.transpose(x, (1, 0, 2)).astype(jnp.float32)       # (T, B, I)

    # Layer-0 input projection hoisted out of the serial recurrence: one dense op for
    # all T (for I=1 this is just a broadcast multiply) instead of T degenerate K=1
    # matmuls on the critical path. Also removes the (T, B, 1) lane-padded x from the
    # kernel entirely.
    xproj = jnp.einsum("tbi,ig->tbg", x_tbi, kp["wih0"]) + kp["b0"]   # (T, B, 4Hp) f32

    out = pl.pallas_call(
        temporal_rnn_kernel,
        out_shape=jax.ShapeDtypeStruct((B, C), jnp.float32),
        compiler_params=pltpu.CompilerParams(vmem_limit_bytes=32 << 20),
    )(xproj, kp["whh0"], kp["w1cat"], kp["b1"], kp["wfc"], kp["bfc"])
    return out


# ----------------------------------------------------------------------------
# Deterministic parameter init (PyTorch-style uniform(-1/sqrt(H), 1/sqrt(H)))
# Weights stored transposed: (in_features, out_features); gate order [i, f, g, o].
# ----------------------------------------------------------------------------
def init_params(key, input_size, hidden_size, n_classes):
    H = hidden_size
    k = 1.0 / jnp.sqrt(jnp.float32(H))
    keys = jax.random.split(key, 12)

    def u(kk, shape, bound):
        return jax.random.uniform(kk, shape, jnp.float32, -bound, bound)

    wih0 = u(keys[0], (input_size, 4 * H), k)
    whh0 = u(keys[1], (H, 4 * H), k)
    b0 = u(keys[2], (1, 4 * H), k) + u(keys[3], (1, 4 * H), k)    # b_ih + b_hh
    wih1 = u(keys[4], (H, 4 * H), k)
    whh1 = u(keys[5], (H, 4 * H), k)
    b1 = u(keys[6], (1, 4 * H), k) + u(keys[7], (1, 4 * H), k)
    wfc = u(keys[8], (H, n_classes), k)
    bfc = u(keys[9], (1, n_classes), k)
    return dict(wih0=wih0, whh0=whh0, b0=b0,
                wih1=wih1, whh1=whh1, b1=b1,
                wfc=wfc, bfc=bfc)


# ----------------------------------------------------------------------------
# Pure-JAX f32 reference (mirrors PyTorch LSTM semantics) for correctness check
# ----------------------------------------------------------------------------
def reference_forward(x, p):
    B, T, I = x.shape
    H = p["whh0"].shape[0]

    def layer(inp, wih, whh, b):
        def step(carry, x_t):
            h, c = carry
            g = x_t @ wih + h @ whh + b[0]
            i_g = jax.nn.sigmoid(g[:, 0:H])
            f_g = jax.nn.sigmoid(g[:, H:2 * H])
            g_g = jnp.tanh(g[:, 2 * H:3 * H])
            o_g = jax.nn.sigmoid(g[:, 3 * H:4 * H])
            c = f_g * c + i_g * g_g
            h = o_g * jnp.tanh(c)
            return (h, c), h

        h0 = jnp.zeros((B, H), jnp.float32)
        (_, _), hs = lax.scan(step, (h0, h0), jnp.transpose(inp, (1, 0, 2)))
        return jnp.transpose(hs, (1, 0, 2))                        # (B, T, H)

    y = layer(x, p["wih0"], p["whh0"], p["b0"])
    y = layer(y, p["wih1"], p["whh1"], p["b1"])
    pooled = jnp.max(y, axis=1)
    return pooled @ p["wfc"] + p["bfc"][0]


if __name__ == "__main__":
    B, T = 2, 8
    INPUT_SIZE, HIDDEN, N_CLASSES = 1, 48, 4                       # module defaults
    HP = 128                                                       # lane-aligned padded hidden

    root = jax.random.PRNGKey(0)
    k_param, k_x = jax.random.split(root)
    params = init_params(k_param, INPUT_SIZE, HIDDEN, N_CLASSES)
    kparams = prepare_kernel_params(params, HIDDEN, Hp=HP)
    x = jax.random.normal(k_x, (B, T, INPUT_SIZE), jnp.float32)

    out = temporal_rnn_forward(x, kparams)
    out = jax.block_until_ready(out)

    ref = reference_forward(x, params)
    assert out.shape == (B, N_CLASSES), out.shape
    # bf16 MXU operands in the recurrence -> compare against the f32 reference with a
    # tolerance well above the expected ~1e-3 deviation but tight enough to catch bugs.
    assert jnp.allclose(out, ref, rtol=2e-2, atol=2e-2), (out, ref)

    print("KERNEL_OK")
</pallas_src>

<mosaic_0001>
module attributes {stable_mosaic.version = 11 : i64} {
  func.func @temporal_rnn_kernel(%arg0: memref<8x2x512xf32, #tpu.memory_space<vmem>>, %arg1: memref<128x512xbf16, #tpu.memory_space<vmem>>, %arg2: memref<256x512xbf16, #tpu.memory_space<vmem>>, %arg3: memref<1x512xf32, #tpu.memory_space<vmem>>, %arg4: memref<128x4xf32, #tpu.memory_space<vmem>>, %arg5: memref<1x4xf32, #tpu.memory_space<vmem>>, %arg6: memref<2x4xf32, #tpu.memory_space<vmem>>) attributes {dimension_semantics = [], scalar_prefetch = 0 : i64, scratch_operands = 0 : i64, tpu.core_type = #tpu.core_type<tc>} {
    %c0 = arith.constant 0 : index
    %c0_0 = arith.constant 0 : index
    %0 = vector.load %arg1[%c0, %c0_0] : memref<128x512xbf16, #tpu.memory_space<vmem>>, vector<128x512xbf16>
    %c0_1 = arith.constant 0 : index
    %c0_2 = arith.constant 0 : index
    %1 = vector.load %arg2[%c0_1, %c0_2] : memref<256x512xbf16, #tpu.memory_space<vmem>>, vector<256x512xbf16>
    %c0_3 = arith.constant 0 : index
    %c0_4 = arith.constant 0 : index
    %2 = vector.load %arg3[%c0_3, %c0_4] : memref<1x512xf32, #tpu.memory_space<vmem>>, vector<1x512xf32>
    %3 = vector.shape_cast %2 : vector<1x512xf32> to vector<1x512xf32>
    %4 = vector.broadcast %3 : vector<1x512xf32> to vector<2x512xf32>
    %cst = arith.constant 0.000000e+00 : f32
    %5 = vector.broadcast %cst : f32 to vector<2x128xf32>
    %cst_5 = arith.constant 0xFF800000 : f32
    %6 = vector.broadcast %cst_5 : f32 to vector<2x128xf32>
    %c0_i32 = arith.constant 0 : i32
    %7 = arith.index_cast %c0_i32 : i32 to index
    %c0_6 = arith.constant 0 : index
    %c0_7 = arith.constant 0 : index
    %8 = vector.load %arg0[%7, %c0_6, %c0_7] : memref<8x2x512xf32, #tpu.memory_space<vmem>>, vector<1x2x512xf32>
    %9 = vector.shape_cast %8 : vector<1x2x512xf32> to vector<2x512xf32>
    %10 = arith.truncf %5 : vector<2x128xf32> to vector<2x128xbf16>
    %cst_8 = arith.constant dense<0.000000e+00> : vector<2x512xf32>
    %11 = tpu.matmul %10, %0, %cst_8 {dimension_numbers = #tpu.dot_dimension_numbers<[1], [0], [0], [1], [0, 0, 1, 1], [], []>} : vector<2x128xbf16>, vector<128x512xbf16>, vector<2x512xf32> -> vector<2x512xf32>
    %12 = arith.addf %9, %11 : vector<2x512xf32>
    %13 = vector.extract_strided_slice %12 {offsets = [0, 0], sizes = [2, 128], strides = [1, 1]} : vector<2x512xf32> to vector<2x128xf32>
    %14 = arith.negf %13 : vector<2x128xf32>
    %15 = math.exp %14 : vector<2x128xf32>
    %cst_9 = arith.constant 1.000000e+00 : f32
    %16 = vector.broadcast %cst_9 : f32 to vector<2x128xf32>
    %17 = arith.addf %16, %15 : vector<2x128xf32>
    %18 = arith.divf %16, %17 : vector<2x128xf32>
    %19 = vector.extract_strided_slice %12 {offsets = [0, 128], sizes = [2, 128], strides = [1, 1]} : vector<2x512xf32> to vector<2x128xf32>
    %20 = arith.negf %19 : vector<2x128xf32>
    %21 = math.exp %20 : vector<2x128xf32>
    %cst_10 = arith.constant 1.000000e+00 : f32
    %22 = vector.broadcast %cst_10 : f32 to vector<2x128xf32>
    %23 = arith.addf %22, %21 : vector<2x128xf32>
    %24 = arith.divf %22, %23 : vector<2x128xf32>
    %25 = vector.extract_strided_slice %12 {offsets = [0, 256], sizes = [2, 128], strides = [1, 1]} : vector<2x512xf32> to vector<2x128xf32>
    %26 = math.tanh %25 : vector<2x128xf32>
    %27 = vector.extract_strided_slice %12 {offsets = [0, 384], sizes = [2, 128], strides = [1, 1]} : vector<2x512xf32> to vector<2x128xf32>
    %28 = arith.negf %27 : vector<2x128xf32>
    %29 = math.exp %28 : vector<2x128xf32>
    %cst_11 = arith.constant 1.000000e+00 : f32
    %30 = vector.broadcast %cst_11 : f32 to vector<2x128xf32>
    %31 = arith.addf %30, %29 : vector<2x128xf32>
    %32 = arith.divf %30, %31 : vector<2x128xf32>
    %33 = arith.mulf %24, %5 : vector<2x128xf32>
    %34 = arith.mulf %18, %26 : vector<2x128xf32>
    %35 = arith.addf %33, %34 : vector<2x128xf32>
    %36 = math.tanh %35 : vector<2x128xf32>
    %37 = arith.mulf %32, %36 : vector<2x128xf32>
    %38 = arith.truncf %37 : vector<2x128xf32> to vector<2x128xbf16>
    %39 = arith.truncf %5 : vector<2x128xf32> to vector<2x128xbf16>
    %40 = tpu.concatenate %38, %39 in 1 : vector<2x128xbf16>, vector<2x128xbf16> -> vector<2x256xbf16>
    %cst_12 = arith.constant dense<0.000000e+00> : vector<2x512xf32>
    %41 = tpu.matmul %40, %1, %cst_12 {dimension_numbers = #tpu.dot_dimension_numbers<[1], [0], [0], [1], [0, 0, 1, 1], [], []>} : vector<2x256xbf16>, vector<256x512xbf16>, vector<2x512xf32> -> vector<2x512xf32>
    %42 = arith.addf %41, %4 : vector<2x512xf32>
    %43 = vector.extract_strided_slice %42 {offsets = [0, 0], sizes = [2, 128], strides = [1, 1]} : vector<2x512xf32> to vector<2x128xf32>
    %44 = arith.negf %43 : vector<2x128xf32>
    %45 = math.exp %44 : vector<2x128xf32>
    %cst_13 = arith.constant 1.000000e+00 : f32
    %46 = vector.broadcast %cst_13 : f32 to vector<2x128xf32>
    %47 = arith.addf %46, %45 : vector<2x128xf32>
    %48 = arith.divf %46, %47 : vector<2x128xf32>
    %49 = vector.extract_strided_slice %42 {offsets = [0, 128], sizes = [2, 128], strides = [1, 1]} : vector<2x512xf32> to vector<2x128xf32>
    %50 = arith.negf %49 : vector<2x128xf32>
    %51 = math.exp %50 : vector<2x128xf32>
    %cst_14 = arith.constant 1.000000e+00 : f32
    %52 = vector.broadcast %cst_14 : f32 to vector<2x128xf32>
    %53 = arith.addf %52, %51 : vector<2x128xf32>
    %54 = arith.divf %52, %53 : vector<2x128xf32>
    %55 = vector.extract_strided_slice %42 {offsets = [0, 256], sizes = [2, 128], strides = [1, 1]} : vector<2x512xf32> to vector<2x128xf32>
    %56 = math.tanh %55 : vector<2x128xf32>
    %57 = vector.extract_strided_slice %42 {offsets = [0, 384], sizes = [2, 128], strides = [1, 1]} : vector<2x512xf32> to vector<2x128xf32>
    %58 = arith.negf %57 : vector<2x128xf32>
    %59 = math.exp %58 : vector<2x128xf32>
    %cst_15 = arith.constant 1.000000e+00 : f32
    %60 = vector.broadcast %cst_15 : f32 to vector<2x128xf32>
    %61 = arith.addf %60, %59 : vector<2x128xf32>
    %62 = arith.divf %60, %61 : vector<2x128xf32>
    %63 = arith.mulf %54, %5 : vector<2x128xf32>
    %64 = arith.mulf %48, %56 : vector<2x128xf32>
    %65 = arith.addf %63, %64 : vector<2x128xf32>
    %66 = math.tanh %65 : vector<2x128xf32>
    %67 = arith.mulf %62, %66 : vector<2x128xf32>
    %68 = arith.maximumf %6, %67 : vector<2x128xf32>
    %c1_i32 = arith.constant 1 : i32
    %69 = arith.index_cast %c1_i32 : i32 to index
    %c0_16 = arith.constant 0 : index
    %c0_17 = arith.constant 0 : index
    %70 = vector.load %arg0[%69, %c0_16, %c0_17] : memref<8x2x512xf32, #tpu.memory_space<vmem>>, vector<1x2x512xf32>
    %71 = vector.shape_cast %70 : vector<1x2x512xf32> to vector<2x512xf32>
    %72 = arith.truncf %37 : vector<2x128xf32> to vector<2x128xbf16>
    %cst_18 = arith.constant dense<0.000000e+00> : vector<2x512xf32>
    %73 = tpu.matmul %72, %0, %cst_18 {dimension_numbers = #tpu.dot_dimension_numbers<[1], [0], [0], [1], [0, 0, 1, 1], [], []>} : vector<2x128xbf16>, vector<128x512xbf16>, vector<2x512xf32> -> vector<2x512xf32>
    %74 = arith.addf %71, %73 : vector<2x512xf32>
    %75 = vector.extract_strided_slice %74 {offsets = [0, 0], sizes = [2, 128], strides = [1, 1]} : vector<2x512xf32> to vector<2x128xf32>
    %76 = arith.negf %75 : vector<2x128xf32>
    %77 = math.exp %76 : vector<2x128xf32>
    %cst_19 = arith.constant 1.000000e+00 : f32
    %78 = vector.broadcast %cst_19 : f32 to vector<2x128xf32>
    %79 = arith.addf %78, %77 : vector<2x128xf32>
    %80 = arith.divf %78, %79 : vector<2x128xf32>
    %81 = vector.extract_strided_slice %74 {offsets = [0, 128], sizes = [2, 128], strides = [1, 1]} : vector<2x512xf32> to vector<2x128xf32>
    %82 = arith.negf %81 : vector<2x128xf32>
    %83 = math.exp %82 : vector<2x128xf32>
    %cst_20 = arith.constant 1.000000e+00 : f32
    %84 = vector.broadcast %cst_20 : f32 to vector<2x128xf32>
    %85 = arith.addf %84, %83 : vector<2x128xf32>
    %86 = arith.divf %84, %85 : vector<2x128xf32>
    %87 = vector.extract_strided_slice %74 {offsets = [0, 256], sizes = [2, 128], strides = [1, 1]} : vector<2x512xf32> to vector<2x128xf32>
    %88 = math.tanh %87 : vector<2x128xf32>
    %89 = vector.extract_strided_slice %74 {offsets = [0, 384], sizes = [2, 128], strides = [1, 1]} : vector<2x512xf32> to vector<2x128xf32>
    %90 = arith.negf %89 : vector<2x128xf32>
    %91 = math.exp %90 : vector<2x128xf32>
    %cst_21 = arith.constant 1.000000e+00 : f32
    %92 = vector.broadcast %cst_21 : f32 to vector<2x128xf32>
    %93 = arith.addf %92, %91 : vector<2x128xf32>
    %94 = arith.divf %92, %93 : vector<2x128xf32>
    %95 = arith.mulf %86, %35 : vector<2x128xf32>
    %96 = arith.mulf %80, %88 : vector<2x128xf32>
    %97 = arith.addf %95, %96 : vector<2x128xf32>
    %98 = math.tanh %97 : vector<2x128xf32>
    %99 = arith.mulf %94, %98 : vector<2x128xf32>
    %100 = arith.truncf %99 : vector<2x128xf32> to vector<2x128xbf16>
    %101 = arith.truncf %67 : vector<2x128xf32> to vector<2x128xbf16>
    %102 = tpu.concatenate %100, %101 in 1 : vector<2x128xbf16>, vector<2x128xbf16> -> vector<2x256xbf16>
    %cst_22 = arith.constant dense<0.000000e+00> : vector<2x512xf32>
    %103 = tpu.matmul %102, %1, %cst_22 {dimension_numbers = #tpu.dot_dimension_numbers<[1], [0], [0], [1], [0, 0, 1, 1], [], []>} : vector<2x256xbf16>, vector<256x512xbf16>, vector<2x512xf32> -> vector<2x512xf32>
    %104 = arith.addf %103, %4 : vector<2x512xf32>
    %105 = vector.extract_strided_slice %104 {offsets = [0, 0], sizes = [2, 128], strides = [1, 1]} : vector<2x512xf32> to vector<2x128xf32>
    %106 = arith.negf %105 : vector<2x128xf32>
    %107 = math.exp %106 : vector<2x128xf32>
    %cst_23 = arith.constant 1.000000e+00 : f32
    %108 = vector.broadcast %cst_23 : f32 to vector<2x128xf32>
    %109 = arith.addf %108, %107 : vector<2x128xf32>
    %110 = arith.divf %108, %109 : vector<2x128xf32>
    %111 = vector.extract_strided_slice %104 {offsets = [0, 128], sizes = [2, 128], strides = [1, 1]} : vector<2x512xf32> to vector<2x128xf32>
    %112 = arith.negf %111 : vector<2x128xf32>
    %113 = math.exp %112 : vector<2x128xf32>
    %cst_24 = arith.constant 1.000000e+00 : f32
    %114 = vector.broadcast %cst_24 : f32 to vector<2x128xf32>
    %115 = arith.addf %114, %113 : vector<2x128xf32>
    %116 = arith.divf %114, %115 : vector<2x128xf32>
    %117 = vector.extract_strided_slice %104 {offsets = [0, 256], sizes = [2, 128], strides = [1, 1]} : vector<2x512xf32> to vector<2x128xf32>
    %118 = math.tanh %117 : vector<2x128xf32>
    %119 = vector.extract_strided_slice %104 {offsets = [0, 384], sizes = [2, 128], strides = [1, 1]} : vector<2x512xf32> to vector<2x128xf32>
    %120 = arith.negf %119 : vector<2x128xf32>
    %121 = math.exp %120 : vector<2x128xf32>
    %cst_25 = arith.constant 1.000000e+00 : f32
    %122 = vector.broadcast %cst_25 : f32 to vector<2x128xf32>
    %123 = arith.addf %122, %121 : vector<2x128xf32>
    %124 = arith.divf %122, %123 : vector<2x128xf32>
    %125 = arith.mulf %116, %65 : vector<2x128xf32>
    %126 = arith.mulf %110, %118 : vector<2x128xf32>
    %127 = arith.addf %125, %126 : vector<2x128xf32>
    %128 = math.tanh %127 : vector<2x128xf32>
    %129 = arith.mulf %124, %128 : vector<2x128xf32>
    %130 = arith.maximumf %68, %129 : vector<2x128xf32>
    %c2_i32 = arith.constant 2 : i32
    %131 = arith.index_cast %c2_i32 : i32 to index
    %c0_26 = arith.constant 0 : index
    %c0_27 = arith.constant 0 : index
    %132 = vector.load %arg0[%131, %c0_26, %c0_27] : memref<8x2x512xf32, #tpu.memory_space<vmem>>, vector<1x2x512xf32>
    %133 = vector.shape_cast %132 : vector<1x2x512xf32> to vector<2x512xf32>
    %134 = arith.truncf %99 : vector<2x128xf32> to vector<2x128xbf16>
    %cst_28 = arith.constant dense<0.000000e+00> : vector<2x512xf32>
    %135 = tpu.matmul %134, %0, %cst_28 {dimension_numbers = #tpu.dot_dimension_numbers<[1], [0], [0], [1], [0, 0, 1, 1], [], []>} : vector<2x128xbf16>, vector<128x512xbf16>, vector<2x512xf32> -> vector<2x512xf32>
    %136 = arith.addf %133, %135 : vector<2x512xf32>
    %137 = vector.extract_strided_slice %136 {offsets = [0, 0], sizes = [2, 128], strides = [1, 1]} : vector<2x512xf32> to vector<2x128xf32>
    %138 = arith.negf %137 : vector<2x128xf32>
    %139 = math.exp %138 : vector<2x128xf32>
    %cst_29 = arith.constant 1.000000e+00 : f32
    %140 = vector.broadcast %cst_29 : f32 to vector<2x128xf32>
    %141 = arith.addf %140, %139 : vector<2x128xf32>
    %142 = arith.divf %140, %141 : vector<2x128xf32>
    %143 = vector.extract_strided_slice %136 {offsets = [0, 128], sizes = [2, 128], strides = [1, 1]} : vector<2x512xf32> to vector<2x128xf32>
    %144 = arith.negf %143 : vector<2x128xf32>
    %145 = math.exp %144 : vector<2x128xf32>
    %cst_30 = arith.constant 1.000000e+00 : f32
    %146 = vector.broadcast %cst_30 : f32 to vector<2x128xf32>
    %147 = arith.addf %146, %145 : vector<2x128xf32>
    %148 = arith.divf %146, %147 : vector<2x128xf32>
    %149 = vector.extract_strided_slice %136 {offsets = [0, 256], sizes = [2, 128], strides = [1, 1]} : vector<2x512xf32> to vector<2x128xf32>
    %150 = math.tanh %149 : vector<2x128xf32>
    %151 = vector.extract_strided_slice %136 {offsets = [0, 384], sizes = [2, 128], strides = [1, 1]} : vector<2x512xf32> to vector<2x128xf32>
    %152 = arith.negf %151 : vector<2x128xf32>
    %153 = math.exp %152 : vector<2x128xf32>
    %cst_31 = arith.constant 1.000000e+00 : f32
    %154 = vector.broadcast %cst_31 : f32 to vector<2x128xf32>
    %155 = arith.addf %154, %153 : vector<2x128xf32>
    %156 = arith.divf %154, %155 : vector<2x128xf32>
    %157 = arith.mulf %148, %97 : vector<2x128xf32>
    %158 = arith.mulf %142, %150 : vector<2x128xf32>
    %159 = arith.addf %157, %158 : vector<2x128xf32>
    %160 = math.tanh %159 : vector<2x128xf32>
    %161 = arith.mulf %156, %160 : vector<2x128xf32>
    %162 = arith.truncf %161 : vector<2x128xf32> to vector<2x128xbf16>
    %163 = arith.truncf %129 : vector<2x128xf32> to vector<2x128xbf16>
    %164 = tpu.concatenate %162, %163 in 1 : vector<2x128xbf16>, vector<2x128xbf16> -> vector<2x256xbf16>
    %cst_32 = arith.constant dense<0.000000e+00> : vector<2x512xf32>
    %165 = tpu.matmul %164, %1, %cst_32 {dimension_numbers = #tpu.dot_dimension_numbers<[1], [0], [0], [1], [0, 0, 1, 1], [], []>} : vector<2x256xbf16>, vector<256x512xbf16>, vector<2x512xf32> -> vector<2x512xf32>
    %166 = arith.addf %165, %4 : vector<2x512xf32>
    %167 = vector.extract_strided_slice %166 {offsets = [0, 0], sizes = [2, 128], strides = [1, 1]} : vector<2x512xf32> to vector<2x128xf32>
    %168 = arith.negf %167 : vector<2x128xf32>
    %169 = math.exp %168 : vector<2x128xf32>
    %cst_33 = arith.constant 1.000000e+00 : f32
    %170 = vector.broadcast %cst_33 : f32 to vector<2x128xf32>
    %171 = arith.addf %170, %169 : vector<2x128xf32>
    %172 = arith.divf %170, %171 : vector<2x128xf32>
    %173 = vector.extract_strided_slice %166 {offsets = [0, 128], sizes = [2, 128], strides = [1, 1]} : vector<2x512xf32> to vector<2x128xf32>
    %174 = arith.negf %173 : vector<2x128xf32>
    %175 = math.exp %174 : vector<2x128xf32>
    %cst_34 = arith.constant 1.000000e+00 : f32
    %176 = vector.broadcast %cst_34 : f32 to vector<2x128xf32>
    %177 = arith.addf %176, %175 : vector<2x128xf32>
    %178 = arith.divf %176, %177 : vector<2x128xf32>
    %179 = vector.extract_strided_slice %166 {offsets = [0, 256], sizes = [2, 128], strides = [1, 1]} : vector<2x512xf32> to vector<2x128xf32>
    %180 = math.tanh %179 : vector<2x128xf32>
    %181 = vector.extract_strided_slice %166 {offsets = [0, 384], sizes = [2, 128], strides = [1, 1]} : vector<2x512xf32> to vector<2x128xf32>
    %182 = arith.negf %181 : vector<2x128xf32>
    %183 = math.exp %182 : vector<2x128xf32>
    %cst_35 = arith.constant 1.000000e+00 : f32
    %184 = vector.broadcast %cst_35 : f32 to vector<2x128xf32>
    %185 = arith.addf %184, %183 : vector<2x128xf32>
    %186 = arith.divf %184, %185 : vector<2x128xf32>
    %187 = arith.mulf %178, %127 : vector<2x128xf32>
    %188 = arith.mulf %172, %180 : vector<2x128xf32>
    %189 = arith.addf %187, %188 : vector<2x128xf32>
    %190 = math.tanh %189 : vector<2x128xf32>
    %191 = arith.mulf %186, %190 : vector<2x128xf32>
    %192 = arith.maximumf %130, %191 : vector<2x128xf32>
    %c3_i32 = arith.constant 3 : i32
    %193 = arith.index_cast %c3_i32 : i32 to index
    %c0_36 = arith.constant 0 : index
    %c0_37 = arith.constant 0 : index
    %194 = vector.load %arg0[%193, %c0_36, %c0_37] : memref<8x2x512xf32, #tpu.memory_space<vmem>>, vector<1x2x512xf32>
    %195 = vector.shape_cast %194 : vector<1x2x512xf32> to vector<2x512xf32>
    %196 = arith.truncf %161 : vector<2x128xf32> to vector<2x128xbf16>
    %cst_38 = arith.constant dense<0.000000e+00> : vector<2x512xf32>
    %197 = tpu.matmul %196, %0, %cst_38 {dimension_numbers = #tpu.dot_dimension_numbers<[1], [0], [0], [1], [0, 0, 1, 1], [], []>} : vector<2x128xbf16>, vector<128x512xbf16>, vector<2x512xf32> -> vector<2x512xf32>
    %198 = arith.addf %195, %197 : vector<2x512xf32>
    %199 = vector.extract_strided_slice %198 {offsets = [0, 0], sizes = [2, 128], strides = [1, 1]} : vector<2x512xf32> to vector<2x128xf32>
    %200 = arith.negf %199 : vector<2x128xf32>
    %201 = math.exp %200 : vector<2x128xf32>
    %cst_39 = arith.constant 1.000000e+00 : f32
    %202 = vector.broadcast %cst_39 : f32 to vector<2x128xf32>
    %203 = arith.addf %202, %201 : vector<2x128xf32>
    %204 = arith.divf %202, %203 : vector<2x128xf32>
    %205 = vector.extract_strided_slice %198 {offsets = [0, 128], sizes = [2, 128], strides = [1, 1]} : vector<2x512xf32> to vector<2x128xf32>
    %206 = arith.negf %205 : vector<2x128xf32>
    %207 = math.exp %206 : vector<2x128xf32>
    %cst_40 = arith.constant 1.000000e+00 : f32
    %208 = vector.broadcast %cst_40 : f32 to vector<2x128xf32>
    %209 = arith.addf %208, %207 : vector<2x128xf32>
    %210 = arith.divf %208, %209 : vector<2x128xf32>
    %211 = vector.extract_strided_slice %198 {offsets = [0, 256], sizes = [2, 128], strides = [1, 1]} : vector<2x512xf32> to vector<2x128xf32>
    %212 = math.tanh %211 : vector<2x128xf32>
    %213 = vector.extract_strided_slice %198 {offsets = [0, 384], sizes = [2, 128], strides = [1, 1]} : vector<2x512xf32> to vector<2x128xf32>
    %214 = arith.negf %213 : vector<2x128xf32>
    %215 = math.exp %214 : vector<2x128xf32>
    %cst_41 = arith.constant 1.000000e+00 : f32
    %216 = vector.broadcast %cst_41 : f32 to vector<2x128xf32>
    %217 = arith.addf %216, %215 : vector<2x128xf32>
    %218 = arith.divf %216, %217 : vector<2x128xf32>
    %219 = arith.mulf %210, %159 : vector<2x128xf32>
    %220 = arith.mulf %204, %212 : vector<2x128xf32>
    %221 = arith.addf %219, %220 : vector<2x128xf32>
    %222 = math.tanh %221 : vector<2x128xf32>
    %223 = arith.mulf %218, %222 : vector<2x128xf32>
    %224 = arith.truncf %223 : vector<2x128xf32> to vector<2x128xbf16>
    %225 = arith.truncf %191 : vector<2x128xf32> to vector<2x128xbf16>
    %226 = tpu.concatenate %224, %225 in 1 : vector<2x128xbf16>, vector<2x128xbf16> -> vector<2x256xbf16>
    %cst_42 = arith.constant dense<0.000000e+00> : vector<2x512xf32>
    %227 = tpu.matmul %226, %1, %cst_42 {dimension_numbers = #tpu.dot_dimension_numbers<[1], [0], [0], [1], [0, 0, 1, 1], [], []>} : vector<2x256xbf16>, vector<256x512xbf16>, vector<2x512xf32> -> vector<2x512xf32>
    %228 = arith.addf %227, %4 : vector<2x512xf32>
    %229 = vector.extract_strided_slice %228 {offsets = [0, 0], sizes = [2, 128], strides = [1, 1]} : vector<2x512xf32> to vector<2x128xf32>
    %230 = arith.negf %229 : vector<2x128xf32>
    %231 = math.exp %230 : vector<2x128xf32>
    %cst_43 = arith.constant 1.000000e+00 : f32
    %232 = vector.broadcast %cst_43 : f32 to vector<2x128xf32>
    %233 = arith.addf %232, %231 : vector<2x128xf32>
    %234 = arith.divf %232, %233 : vector<2x128xf32>
    %235 = vector.extract_strided_slice %228 {offsets = [0, 128], sizes = [2, 128], strides = [1, 1]} : vector<2x512xf32> to vector<2x128xf32>
    %236 = arith.negf %235 : vector<2x128xf32>
    %237 = math.exp %236 : vector<2x128xf32>
    %cst_44 = arith.constant 1.000000e+00 : f32
    %238 = vector.broadcast %cst_44 : f32 to vector<2x128xf32>
    %239 = arith.addf %238, %237 : vector<2x128xf32>
    %240 = arith.divf %238, %239 : vector<2x128xf32>
    %241 = vector.extract_strided_slice %228 {offsets = [0, 256], sizes = [2, 128], strides = [1, 1]} : vector<2x512xf32> to vector<2x128xf32>
    %242 = math.tanh %241 : vector<2x128xf32>
    %243 = vector.extract_strided_slice %228 {offsets = [0, 384], sizes = [2, 128], strides = [1, 1]} : vector<2x512xf32> to vector<2x128xf32>
    %244 = arith.negf %243 : vector<2x128xf32>
    %245 = math.exp %244 : vector<2x128xf32>
    %cst_45 = arith.constant 1.000000e+00 : f32
    %246 = vector.broadcast %cst_45 : f32 to vector<2x128xf32>
    %247 = arith.addf %246, %245 : vector<2x128xf32>
    %248 = arith.divf %246, %247 : vector<2x128xf32>
    %249 = arith.mulf %240, %189 : vector<2x128xf32>
    %250 = arith.mulf %234, %242 : vector<2x128xf32>
    %251 = arith.addf %249, %250 : vector<2x128xf32>
    %252 = math.tanh %251 : vector<2x128xf32>
    %253 = arith.mulf %248, %252 : vector<2x128xf32>
    %254 = arith.maximumf %192, %253 : vector<2x128xf32>
    %c4_i32 = arith.constant 4 : i32
    %255 = arith.index_cast %c4_i32 : i32 to index
    %c0_46 = arith.constant 0 : index
    %c0_47 = arith.constant 0 : index
    %256 = vector.load %arg0[%255, %c0_46, %c0_47] : memref<8x2x512xf32, #tpu.memory_space<vmem>>, vector<1x2x512xf32>
    %257 = vector.shape_cast %256 : vector<1x2x512xf32> to vector<2x512xf32>
    %258 = arith.truncf %223 : vector<2x128xf32> to vector<2x128xbf16>
    %cst_48 = arith.constant dense<0.000000e+00> : vector<2x512xf32>
    %259 = tpu.matmul %258, %0, %cst_48 {dimension_numbers = #tpu.dot_dimension_numbers<[1], [0], [0], [1], [0, 0, 1, 1], [], []>} : vector<2x128xbf16>, vector<128x512xbf16>, vector<2x512xf32> -> vector<2x512xf32>
    %260 = arith.addf %257, %259 : vector<2x512xf32>
    %261 = vector.extract_strided_slice %260 {offsets = [0, 0], sizes = [2, 128], strides = [1, 1]} : vector<2x512xf32> to vector<2x128xf32>
    %262 = arith.negf %261 : vector<2x128xf32>
    %263 = math.exp %262 : vector<2x128xf32>
    %cst_49 = arith.constant 1.000000e+00 : f32
    %264 = vector.broadcast %cst_49 : f32 to vector<2x128xf32>
    %265 = arith.addf %264, %263 : vector<2x128xf32>
    %266 = arith.divf %264, %265 : vector<2x128xf32>
    %267 = vector.extract_strided_slice %260 {offsets = [0, 128], sizes = [2, 128], strides = [1, 1]} : vector<2x512xf32> to vector<2x128xf32>
    %268 = arith.negf %267 : vector<2x128xf32>
    %269 = math.exp %268 : vector<2x128xf32>
    %cst_50 = arith.constant 1.000000e+00 : f32
    %270 = vector.broadcast %cst_50 : f32 to vector<2x128xf32>
    %271 = arith.addf %270, %269 : vector<2x128xf32>
    %272 = arith.divf %270, %271 : vector<2x128xf32>
    %273 = vector.extract_strided_slice %260 {offsets = [0, 256], sizes = [2, 128], strides = [1, 1]} : vector<2x512xf32> to vector<2x128xf32>
    %274 = math.tanh %273 : vector<2x128xf32>
    %275 = vector.extract_strided_slice %260 {offsets = [0, 384], sizes = [2, 128], strides = [1, 1]} : vector<2x512xf32> to vector<2x128xf32>
    %276 = arith.negf %275 : vector<2x128xf32>
    %277 = math.exp %276 : vector<2x128xf32>
    %cst_51 = arith.constant 1.000000e+00 : f32
    %278 = vector.broadcast %cst_51 : f32 to vector<2x128xf32>
    %279 = arith.addf %278, %277 : vector<2x128xf32>
    %280 = arith.divf %278, %279 : vector<2x128xf32>
    %281 = arith.mulf %272, %221 : vector<2x128xf32>
    %282 = arith.mulf %266, %274 : vector<2x128xf32>
    %283 = arith.addf %281, %282 : vector<2x128xf32>
    %284 = math.tanh %283 : vector<2x128xf32>
    %285 = arith.mulf %280, %284 : vector<2x128xf32>
    %286 = arith.truncf %285 : vector<2x128xf32> to vector<2x128xbf16>
    %287 = arith.truncf %253 : vector<2x128xf32> to vector<2x128xbf16>
    %288 = tpu.concatenate %286, %287 in 1 : vector<2x128xbf16>, vector<2x128xbf16> -> vector<2x256xbf16>
    %cst_52 = arith.constant dense<0.000000e+00> : vector<2x512xf32>
    %289 = tpu.matmul %288, %1, %cst_52 {dimension_numbers = #tpu.dot_dimension_numbers<[1], [0], [0], [1], [0, 0, 1, 1], [], []>} : vector<2x256xbf16>, vector<256x512xbf16>, vector<2x512xf32> -> vector<2x512xf32>
    %290 = arith.addf %289, %4 : vector<2x512xf32>
    %291 = vector.extract_strided_slice %290 {offsets = [0, 0], sizes = [2, 128], strides = [1, 1]} : vector<2x512xf32> to vector<2x128xf32>
    %292 = arith.negf %291 : vector<2x128xf32>
    %293 = math.exp %292 : vector<2x128xf32>
    %cst_53 = arith.constant 1.000000e+00 : f32
    %294 = vector.broadcast %cst_53 : f32 to vector<2x128xf32>
    %295 = arith.addf %294, %293 : vector<2x128xf32>
    %296 = arith.divf %294, %295 : vector<2x128xf32>
    %297 = vector.extract_strided_slice %290 {offsets = [0, 128], sizes = [2, 128], strides = [1, 1]} : vector<2x512xf32> to vector<2x128xf32>
    %298 = arith.negf %297 : vector<2x128xf32>
    %299 = math.exp %298 : vector<2x128xf32>
    %cst_54 = arith.constant 1.000000e+00 : f32
    %300 = vector.broadcast %cst_54 : f32 to vector<2x128xf32>
    %301 = arith.addf %300, %299 : vector<2x128xf32>
    %302 = arith.divf %300, %301 : vector<2x128xf32>
    %303 = vector.extract_strided_slice %290 {offsets = [0, 256], sizes = [2, 128], strides = [1, 1]} : vector<2x512xf32> to vector<2x128xf32>
    %304 = math.tanh %303 : vector<2x128xf32>
    %305 = vector.extract_strided_slice %290 {offsets = [0, 384], sizes = [2, 128], strides = [1, 1]} : vector<2x512xf32> to vector<2x128xf32>
    %306 = arith.negf %305 : vector<2x128xf32>
    %307 = math.exp %306 : vector<2x128xf32>
    %cst_55 = arith.constant 1.000000e+00 : f32
    %308 = vector.broadcast %cst_55 : f32 to vector<2x128xf32>
    %309 = arith.addf %308, %307 : vector<2x128xf32>
    %310 = arith.divf %308, %309 : vector<2x128xf32>
    %311 = arith.mulf %302, %251 : vector<2x128xf32>
    %312 = arith.mulf %296, %304 : vector<2x128xf32>
    %313 = arith.addf %311, %312 : vector<2x128xf32>
    %314 = math.tanh %313 : vector<2x128xf32>
    %315 = arith.mulf %310, %314 : vector<2x128xf32>
    %316 = arith.maximumf %254, %315 : vector<2x128xf32>
    %c5_i32 = arith.constant 5 : i32
    %317 = arith.index_cast %c5_i32 : i32 to index
    %c0_56 = arith.constant 0 : index
    %c0_57 = arith.constant 0 : index
    %318 = vector.load %arg0[%317, %c0_56, %c0_57] : memref<8x2x512xf32, #tpu.memory_space<vmem>>, vector<1x2x512xf32>
    %319 = vector.shape_cast %318 : vector<1x2x512xf32> to vector<2x512xf32>
    %320 = arith.truncf %285 : vector<2x128xf32> to vector<2x128xbf16>
    %cst_58 = arith.constant dense<0.000000e+00> : vector<2x512xf32>
    %321 = tpu.matmul %320, %0, %cst_58 {dimension_numbers = #tpu.dot_dimension_numbers<[1], [0], [0], [1], [0, 0, 1, 1], [], []>} : vector<2x128xbf16>, vector<128x512xbf16>, vector<2x512xf32> -> vector<2x512xf32>
    %322 = arith.addf %319, %321 : vector<2x512xf32>
    %323 = vector.extract_strided_slice %322 {offsets = [0, 0], sizes = [2, 128], strides = [1, 1]} : vector<2x512xf32> to vector<2x128xf32>
    %324 = arith.negf %323 : vector<2x128xf32>
    %325 = math.exp %324 : vector<2x128xf32>
    %cst_59 = arith.constant 1.000000e+00 : f32
    %326 = vector.broadcast %cst_59 : f32 to vector<2x128xf32>
    %327 = arith.addf %326, %325 : vector<2x128xf32>
    %328 = arith.divf %326, %327 : vector<2x128xf32>
    %329 = vector.extract_strided_slice %322 {offsets = [0, 128], sizes = [2, 128], strides = [1, 1]} : vector<2x512xf32> to vector<2x128xf32>
    %330 = arith.negf %329 : vector<2x128xf32>
    %331 = math.exp %330 : vector<2x128xf32>
    %cst_60 = arith.constant 1.000000e+00 : f32
    %332 = vector.broadcast %cst_60 : f32 to vector<2x128xf32>
    %333 = arith.addf %332, %331 : vector<2x128xf32>
    %334 = arith.divf %332, %333 : vector<2x128xf32>
    %335 = vector.extract_strided_slice %322 {offsets = [0, 256], sizes = [2, 128], strides = [1, 1]} : vector<2x512xf32> to vector<2x128xf32>
    %336 = math.tanh %335 : vector<2x128xf32>
    %337 = vector.extract_strided_slice %322 {offsets = [0, 384], sizes = [2, 128], strides = [1, 1]} : vector<2x512xf32> to vector<2x128xf32>
    %338 = arith.negf %337 : vector<2x128xf32>
    %339 = math.exp %338 : vector<2x128xf32>
    %cst_61 = arith.constant 1.000000e+00 : f32
    %340 = vector.broadcast %cst_61 : f32 to vector<2x128xf32>
    %341 = arith.addf %340, %339 : vector<2x128xf32>
    %342 = arith.divf %340, %341 : vector<2x128xf32>
    %343 = arith.mulf %334, %283 : vector<2x128xf32>
    %344 = arith.mulf %328, %336 : vector<2x128xf32>
    %345 = arith.addf %343, %344 : vector<2x128xf32>
    %346 = math.tanh %345 : vector<2x128xf32>
    %347 = arith.mulf %342, %346 : vector<2x128xf32>
    %348 = arith.truncf %347 : vector<2x128xf32> to vector<2x128xbf16>
    %349 = arith.truncf %315 : vector<2x128xf32> to vector<2x128xbf16>
    %350 = tpu.concatenate %348, %349 in 1 : vector<2x128xbf16>, vector<2x128xbf16> -> vector<2x256xbf16>
    %cst_62 = arith.constant dense<0.000000e+00> : vector<2x512xf32>
    %351 = tpu.matmul %350, %1, %cst_62 {dimension_numbers = #tpu.dot_dimension_numbers<[1], [0], [0], [1], [0, 0, 1, 1], [], []>} : vector<2x256xbf16>, vector<256x512xbf16>, vector<2x512xf32> -> vector<2x512xf32>
    %352 = arith.addf %351, %4 : vector<2x512xf32>
    %353 = vector.extract_strided_slice %352 {offsets = [0, 0], sizes = [2, 128], strides = [1, 1]} : vector<2x512xf32> to vector<2x128xf32>
    %354 = arith.negf %353 : vector<2x128xf32>
    %355 = math.exp %354 : vector<2x128xf32>
    %cst_63 = arith.constant 1.000000e+00 : f32
    %356 = vector.broadcast %cst_63 : f32 to vector<2x128xf32>
    %357 = arith.addf %356, %355 : vector<2x128xf32>
    %358 = arith.divf %356, %357 : vector<2x128xf32>
    %359 = vector.extract_strided_slice %352 {offsets = [0, 128], sizes = [2, 128], strides = [1, 1]} : vector<2x512xf32> to vector<2x128xf32>
    %360 = arith.negf %359 : vector<2x128xf32>
    %361 = math.exp %360 : vector<2x128xf32>
    %cst_64 = arith.constant 1.000000e+00 : f32
    %362 = vector.broadcast %cst_64 : f32 to vector<2x128xf32>
    %363 = arith.addf %362, %361 : vector<2x128xf32>
    %364 = arith.divf %362, %363 : vector<2x128xf32>
    %365 = vector.extract_strided_slice %352 {offsets = [0, 256], sizes = [2, 128], strides = [1, 1]} : vector<2x512xf32> to vector<2x128xf32>
    %366 = math.tanh %365 : vector<2x128xf32>
    %367 = vector.extract_strided_slice %352 {offsets = [0, 384], sizes = [2, 128], strides = [1, 1]} : vector<2x512xf32> to vector<2x128xf32>
    %368 = arith.negf %367 : vector<2x128xf32>
    %369 = math.exp %368 : vector<2x128xf32>
    %cst_65 = arith.constant 1.000000e+00 : f32
    %370 = vector.broadcast %cst_65 : f32 to vector<2x128xf32>
    %371 = arith.addf %370, %369 : vector<2x128xf32>
    %372 = arith.divf %370, %371 : vector<2x128xf32>
    %373 = arith.mulf %364, %313 : vector<2x128xf32>
    %374 = arith.mulf %358, %366 : vector<2x128xf32>
    %375 = arith.addf %373, %374 : vector<2x128xf32>
    %376 = math.tanh %375 : vector<2x128xf32>
    %377 = arith.mulf %372, %376 : vector<2x128xf32>
    %378 = arith.maximumf %316, %377 : vector<2x128xf32>
    %c6_i32 = arith.constant 6 : i32
    %379 = arith.index_cast %c6_i32 : i32 to index
    %c0_66 = arith.constant 0 : index
    %c0_67 = arith.constant 0 : index
    %380 = vector.load %arg0[%379, %c0_66, %c0_67] : memref<8x2x512xf32, #tpu.memory_space<vmem>>, vector<1x2x512xf32>
    %381 = vector.shape_cast %380 : vector<1x2x512xf32> to vector<2x512xf32>
    %382 = arith.truncf %347 : vector<2x128xf32> to vector<2x128xbf16>
    %cst_68 = arith.constant dense<0.000000e+00> : vector<2x512xf32>
    %383 = tpu.matmul %382, %0, %cst_68 {dimension_numbers = #tpu.dot_dimension_numbers<[1], [0], [0], [1], [0, 0, 1, 1], [], []>} : vector<2x128xbf16>, vector<128x512xbf16>, vector<2x512xf32> -> vector<2x512xf32>
    %384 = arith.addf %381, %383 : vector<2x512xf32>
    %385 = vector.extract_strided_slice %384 {offsets = [0, 0], sizes = [2, 128], strides = [1, 1]} : vector<2x512xf32> to vector<2x128xf32>
    %386 = arith.negf %385 : vector<2x128xf32>
    %387 = math.exp %386 : vector<2x128xf32>
    %cst_69 = arith.constant 1.000000e+00 : f32
    %388 = vector.broadcast %cst_69 : f32 to vector<2x128xf32>
    %389 = arith.addf %388, %387 : vector<2x128xf32>
    %390 = arith.divf %388, %389 : vector<2x128xf32>
    %391 = vector.extract_strided_slice %384 {offsets = [0, 128], sizes = [2, 128], strides = [1, 1]} : vector<2x512xf32> to vector<2x128xf32>
    %392 = arith.negf %391 : vector<2x128xf32>
    %393 = math.exp %392 : vector<2x128xf32>
    %cst_70 = arith.constant 1.000000e+00 : f32
    %394 = vector.broadcast %cst_70 : f32 to vector<2x128xf32>
    %395 = arith.addf %394, %393 : vector<2x128xf32>
    %396 = arith.divf %394, %395 : vector<2x128xf32>
    %397 = vector.extract_strided_slice %384 {offsets = [0, 256], sizes = [2, 128], strides = [1, 1]} : vector<2x512xf32> to vector<2x128xf32>
    %398 = math.tanh %397 : vector<2x128xf32>
    %399 = vector.extract_strided_slice %384 {offsets = [0, 384], sizes = [2, 128], strides = [1, 1]} : vector<2x512xf32> to vector<2x128xf32>
    %400 = arith.negf %399 : vector<2x128xf32>
    %401 = math.exp %400 : vector<2x128xf32>
    %cst_71 = arith.constant 1.000000e+00 : f32
    %402 = vector.broadcast %cst_71 : f32 to vector<2x128xf32>
    %403 = arith.addf %402, %401 : vector<2x128xf32>
    %404 = arith.divf %402, %403 : vector<2x128xf32>
    %405 = arith.mulf %396, %345 : vector<2x128xf32>
    %406 = arith.mulf %390, %398 : vector<2x128xf32>
    %407 = arith.addf %405, %406 : vector<2x128xf32>
    %408 = math.tanh %407 : vector<2x128xf32>
    %409 = arith.mulf %404, %408 : vector<2x128xf32>
    %410 = arith.truncf %409 : vector<2x128xf32> to vector<2x128xbf16>
    %411 = arith.truncf %377 : vector<2x128xf32> to vector<2x128xbf16>
    %412 = tpu.concatenate %410, %411 in 1 : vector<2x128xbf16>, vector<2x128xbf16> -> vector<2x256xbf16>
    %cst_72 = arith.constant dense<0.000000e+00> : vector<2x512xf32>
    %413 = tpu.matmul %412, %1, %cst_72 {dimension_numbers = #tpu.dot_dimension_numbers<[1], [0], [0], [1], [0, 0, 1, 1], [], []>} : vector<2x256xbf16>, vector<256x512xbf16>, vector<2x512xf32> -> vector<2x512xf32>
    %414 = arith.addf %413, %4 : vector<2x512xf32>
    %415 = vector.extract_strided_slice %414 {offsets = [0, 0], sizes = [2, 128], strides = [1, 1]} : vector<2x512xf32> to vector<2x128xf32>
    %416 = arith.negf %415 : vector<2x128xf32>
    %417 = math.exp %416 : vector<2x128xf32>
    %cst_73 = arith.constant 1.000000e+00 : f32
    %418 = vector.broadcast %cst_73 : f32 to vector<2x128xf32>
    %419 = arith.addf %418, %417 : vector<2x128xf32>
    %420 = arith.divf %418, %419 : vector<2x128xf32>
    %421 = vector.extract_strided_slice %414 {offsets = [0, 128], sizes = [2, 128], strides = [1, 1]} : vector<2x512xf32> to vector<2x128xf32>
    %422 = arith.negf %421 : vector<2x128xf32>
    %423 = math.exp %422 : vector<2x128xf32>
    %cst_74 = arith.constant 1.000000e+00 : f32
    %424 = vector.broadcast %cst_74 : f32 to vector<2x128xf32>
    %425 = arith.addf %424, %423 : vector<2x128xf32>
    %426 = arith.divf %424, %425 : vector<2x128xf32>
    %427 = vector.extract_strided_slice %414 {offsets = [0, 256], sizes = [2, 128], strides = [1, 1]} : vector<2x512xf32> to vector<2x128xf32>
    %428 = math.tanh %427 : vector<2x128xf32>
    %429 = vector.extract_strided_slice %414 {offsets = [0, 384], sizes = [2, 128], strides = [1, 1]} : vector<2x512xf32> to vector<2x128xf32>
    %430 = arith.negf %429 : vector<2x128xf32>
    %431 = math.exp %430 : vector<2x128xf32>
    %cst_75 = arith.constant 1.000000e+00 : f32
    %432 = vector.broadcast %cst_75 : f32 to vector<2x128xf32>
    %433 = arith.addf %432, %431 : vector<2x128xf32>
    %434 = arith.divf %432, %433 : vector<2x128xf32>
    %435 = arith.mulf %426, %375 : vector<2x128xf32>
    %436 = arith.mulf %420, %428 : vector<2x128xf32>
    %437 = arith.addf %435, %436 : vector<2x128xf32>
    %438 = math.tanh %437 : vector<2x128xf32>
    %439 = arith.mulf %434, %438 : vector<2x128xf32>
    %440 = arith.maximumf %378, %439 : vector<2x128xf32>
    %c7_i32 = arith.constant 7 : i32
    %441 = arith.index_cast %c7_i32 : i32 to index
    %c0_76 = arith.constant 0 : index
    %c0_77 = arith.constant 0 : index
    %442 = vector.load %arg0[%441, %c0_76, %c0_77] : memref<8x2x512xf32, #tpu.memory_space<vmem>>, vector<1x2x512xf32>
    %443 = vector.shape_cast %442 : vector<1x2x512xf32> to vector<2x512xf32>
    %444 = arith.truncf %409 : vector<2x128xf32> to vector<2x128xbf16>
    %cst_78 = arith.constant dense<0.000000e+00> : vector<2x512xf32>
    %445 = tpu.matmul %444, %0, %cst_78 {dimension_numbers = #tpu.dot_dimension_numbers<[1], [0], [0], [1], [0, 0, 1, 1], [], []>} : vector<2x128xbf16>, vector<128x512xbf16>, vector<2x512xf32> -> vector<2x512xf32>
    %446 = arith.addf %443, %445 : vector<2x512xf32>
    %447 = vector.extract_strided_slice %446 {offsets = [0, 0], sizes = [2, 128], strides = [1, 1]} : vector<2x512xf32> to vector<2x128xf32>
    %448 = arith.negf %447 : vector<2x128xf32>
    %449 = math.exp %448 : vector<2x128xf32>
    %cst_79 = arith.constant 1.000000e+00 : f32
    %450 = vector.broadcast %cst_79 : f32 to vector<2x128xf32>
    %451 = arith.addf %450, %449 : vector<2x128xf32>
    %452 = arith.divf %450, %451 : vector<2x128xf32>
    %453 = vector.extract_strided_slice %446 {offsets = [0, 128], sizes = [2, 128], strides = [1, 1]} : vector<2x512xf32> to vector<2x128xf32>
    %454 = arith.negf %453 : vector<2x128xf32>
    %455 = math.exp %454 : vector<2x128xf32>
    %cst_80 = arith.constant 1.000000e+00 : f32
    %456 = vector.broadcast %cst_80 : f32 to vector<2x128xf32>
    %457 = arith.addf %456, %455 : vector<2x128xf32>
    %458 = arith.divf %456, %457 : vector<2x128xf32>
    %459 = vector.extract_strided_slice %446 {offsets = [0, 256], sizes = [2, 128], strides = [1, 1]} : vector<2x512xf32> to vector<2x128xf32>
    %460 = math.tanh %459 : vector<2x128xf32>
    %461 = vector.extract_strided_slice %446 {offsets = [0, 384], sizes = [2, 128], strides = [1, 1]} : vector<2x512xf32> to vector<2x128xf32>
    %462 = arith.negf %461 : vector<2x128xf32>
    %463 = math.exp %462 : vector<2x128xf32>
    %cst_81 = arith.constant 1.000000e+00 : f32
    %464 = vector.broadcast %cst_81 : f32 to vector<2x128xf32>
    %465 = arith.addf %464, %463 : vector<2x128xf32>
    %466 = arith.divf %464, %465 : vector<2x128xf32>
    %467 = arith.mulf %458, %407 : vector<2x128xf32>
    %468 = arith.mulf %452, %460 : vector<2x128xf32>
    %469 = arith.addf %467, %468 : vector<2x128xf32>
    %470 = math.tanh %469 : vector<2x128xf32>
    %471 = arith.mulf %466, %470 : vector<2x128xf32>
    %472 = arith.truncf %471 : vector<2x128xf32> to vector<2x128xbf16>
    %473 = arith.truncf %439 : vector<2x128xf32> to vector<2x128xbf16>
    %474 = tpu.concatenate %472, %473 in 1 : vector<2x128xbf16>, vector<2x128xbf16> -> vector<2x256xbf16>
    %cst_82 = arith.constant dense<0.000000e+00> : vector<2x512xf32>
    %475 = tpu.matmul %474, %1, %cst_82 {dimension_numbers = #tpu.dot_dimension_numbers<[1], [0], [0], [1], [0, 0, 1, 1], [], []>} : vector<2x256xbf16>, vector<256x512xbf16>, vector<2x512xf32> -> vector<2x512xf32>
    %476 = arith.addf %475, %4 : vector<2x512xf32>
    %477 = vector.extract_strided_slice %476 {offsets = [0, 0], sizes = [2, 128], strides = [1, 1]} : vector<2x512xf32> to vector<2x128xf32>
    %478 = arith.negf %477 : vector<2x128xf32>
    %479 = math.exp %478 : vector<2x128xf32>
    %cst_83 = arith.constant 1.000000e+00 : f32
    %480 = vector.broadcast %cst_83 : f32 to vector<2x128xf32>
    %481 = arith.addf %480, %479 : vector<2x128xf32>
    %482 = arith.divf %480, %481 : vector<2x128xf32>
    %483 = vector.extract_strided_slice %476 {offsets = [0, 128], sizes = [2, 128], strides = [1, 1]} : vector<2x512xf32> to vector<2x128xf32>
    %484 = arith.negf %483 : vector<2x128xf32>
    %485 = math.exp %484 : vector<2x128xf32>
    %cst_84 = arith.constant 1.000000e+00 : f32
    %486 = vector.broadcast %cst_84 : f32 to vector<2x128xf32>
    %487 = arith.addf %486, %485 : vector<2x128xf32>
    %488 = arith.divf %486, %487 : vector<2x128xf32>
    %489 = vector.extract_strided_slice %476 {offsets = [0, 256], sizes = [2, 128], strides = [1, 1]} : vector<2x512xf32> to vector<2x128xf32>
    %490 = math.tanh %489 : vector<2x128xf32>
    %491 = vector.extract_strided_slice %476 {offsets = [0, 384], sizes = [2, 128], strides = [1, 1]} : vector<2x512xf32> to vector<2x128xf32>
    %492 = arith.negf %491 : vector<2x128xf32>
    %493 = math.exp %492 : vector<2x128xf32>
    %cst_85 = arith.constant 1.000000e+00 : f32
    %494 = vector.broadcast %cst_85 : f32 to vector<2x128xf32>
    %495 = arith.addf %494, %493 : vector<2x128xf32>
    %496 = arith.divf %494, %495 : vector<2x128xf32>
    %497 = arith.mulf %488, %437 : vector<2x128xf32>
    %498 = arith.mulf %482, %490 : vector<2x128xf32>
    %499 = arith.addf %497, %498 : vector<2x128xf32>
    %500 = math.tanh %499 : vector<2x128xf32>
    %501 = arith.mulf %496, %500 : vector<2x128xf32>
    %502 = arith.maximumf %440, %501 : vector<2x128xf32>
    %c8_i32 = arith.constant 8 : i32
    %c0_86 = arith.constant 0 : index
    %c0_87 = arith.constant 0 : index
    %503 = vector.load %arg4[%c0_86, %c0_87] : memref<128x4xf32, #tpu.memory_space<vmem>>, vector<128x4xf32>
    %cst_88 = arith.constant dense<0.000000e+00> : vector<2x4xf32>
    %504 = tpu.matmul %502, %503, %cst_88 {dimension_numbers = #tpu.dot_dimension_numbers<[1], [0], [0], [1], [0, 0, 1, 1], [], []>} : vector<2x128xf32>, vector<128x4xf32>, vector<2x4xf32> -> vector<2x4xf32>
    %c0_89 = arith.constant 0 : index
    %c0_90 = arith.constant 0 : index
    %505 = vector.load %arg5[%c0_89, %c0_90] : memref<1x4xf32, #tpu.memory_space<vmem>>, vector<1x4xf32>
    %506 = vector.broadcast %505 : vector<1x4xf32> to vector<2x4xf32>
    %507 = arith.addf %504, %506 : vector<2x4xf32>
    %c0_91 = arith.constant 0 : index
    %c0_92 = arith.constant 0 : index
    %508 = vector.load %arg6[%c0_91, %c0_92] : memref<2x4xf32, #tpu.memory_space<vmem>>, vector<2x4xf32>
    tpu.vector_store %arg6[%c0_91, %c0_92], %507 {strides = array<i32>} : memref<2x4xf32, #tpu.memory_space<vmem>>, vector<2x4xf32>,
    return
  }
}

</mosaic_0001>

<bundles_post_ra>
// kernel: temporal_rnn_forward.1
= control target key start
LH: loop header
LB: loop body
LE: loop exit
PB: predicated region body
PF: predicated region fallthrough
CT: control target
= control target key end

     0   :  { %11 = vsyncpa [#allocation3], 0  ;;  %s5650_s0 = inlined_call_operand.vmem [shape: f32[8,2,512], index: 0, kind: input, shape index: {}]   ;;  %s5651_s1 = inlined_call_operand.vmem [shape: bf16[128,512], index: 1, kind: input, shape index: {}]   ;;  %s5652_s2 = inlined_call_operand.hbm [shape: bf16[256,512], index: 2, kind: input, shape index: {}]   ;;  %s5653_s3 = inlined_call_operand.hbm [shape: f32[1,512], index: 3, kind: input, shape index: {}]   ;;  %s5654_s4 = inlined_call_operand.vmem [shape: f32[128,4], index: 4, kind: input, shape index: {}]   ;;  %s5655_s5 = inlined_call_operand.hbm [shape: f32[1,4], index: 5, kind: input, shape index: {}]   ;;  %s5656_s6 = inlined_call_operand.hbm [shape: f32[2,4], index: 6, kind: output, shape index: {}]  }
   0x1   :  { %12 = vsyncpa [#allocation6], 0 }
   0x2   :  { %13 = vsyncpa [#allocation4], 0  ;;  %s3669_s21 = smov [#allocation5]   ;;  %s3670_s23 = smov [#allocation2]  }
   0x3   :  { %s36_s22 = sshll.u32 %s3669_s21, 4  ;;  %s23_s24 = sshll.u32 %s3670_s23, 4  ;;  %s37_s22 = int_to_ptr.vmem [resolvable:$true] %s36_s22  ;;  %s3715_s24 = int_to_ptr.vmem [resolvable:$true] %s23_s24 }
   0x4   :  { %s3575_s27 = scalar_lea.hbm %s5653_s3, 64 }
   0x5   :  { %p3576_p0 = scmp.ne.s32.totalorder %s5653_s3, %s3575_s27  ;;  %p3579_p1 = scmp.lt.u32.totalorder %s3575_s27, %s5653_s3 }
   0x7   :  { %p3581_p2 = pnand %p3579_p1, %p3576_p0 }
   0x9   :  { %3584 = shalt.err (!%p3581_p2)
}
   0xa   :  { %s3585_s8 = scalar_lea.vmem %s37_s22, 64  ;;  %p3590_p4 = scmp.lt.s32.totalorder %s37_s22, %s37_s22 }
   0xb   :  { %p3586_p3 = scmp.ne.s32.totalorder %s37_s22, %s3585_s8  ;;  %p3591_p5 = scmp.lt.s32.totalorder %s3585_s8, %s3585_s8 }
   0xd   :  { %p3592_p6 = por %p3591_p5, %p3590_p4 }
   0xf   :  { %p3593_p7 = pnand %p3592_p6, %p3586_p3 }
  0x11   :  { %3596 = shalt.err (!%p3593_p7)
}
  0x12   :  { %39 = dma.hbm_to_vmem [thread:$0]  %s5653_s3, 64, %s37_s22, [#allocation6]  }
  0x13   :  { %s3597_s13 = scalar_lea.hbm %s5652_s2, 8192 }
  0x14   :  { %p3598_p8 = scmp.ne.s32.totalorder %s5652_s2, %s3597_s13  ;;  %p3601_p9 = scmp.lt.u32.totalorder %s3597_s13, %s5652_s2 }
  0x16   :  { %p3603_p10 = pnand %p3601_p9, %p3598_p8 }
  0x18   :  { %3606 = shalt.err (!%p3603_p10)
}
  0x19   :  { %s3607_s18 = scalar_lea.vmem %s3715_s24, 8192  ;;  %p3612_p12 = scmp.lt.s32.totalorder %s3715_s24, %s3715_s24 }
  0x1a   :  { %p3608_p11 = scmp.ne.s32.totalorder %s3715_s24, %s3607_s18  ;;  %p3613_p13 = scmp.lt.s32.totalorder %s3607_s18, %s3607_s18 }
  0x1c   :  { %p3614_p0 = por %p3613_p13, %p3612_p12 }
  0x1e   :  { %p3615_p1 = pnand %p3614_p0, %p3608_p11 }
  0x20   :  { %3618 = shalt.err (!%p3615_p1)
}
  0x21   :  { %s3671_s3 = smov 256   ;;  %s3672_s19 = smov 16  }
  0x22   :  { %29 = dma.hbm_to_vmem [thread:$0]  %s5652_s2, 8192, %s3715_s24, [#allocation3], %s3671_s3, %s3671_s3, %s3672_s19  }
  0x23   :  { %s3673_s22 = smov [#allocation7]   ;;  %s3619_s27 = scalar_lea.hbm %s5655_s5, 16 }
  0x24   :  { %s48_s23 = sshll.u32 %s3673_s22, 4  ;;  %p3620_p2 = scmp.ne.s32.totalorder %s5655_s5, %s3619_s27  ;;  %s49_s23 = int_to_ptr.vmem [resolvable:$true] %s48_s23 }
  0x25   :  { %p3623_p3 = scmp.lt.u32.totalorder %s3619_s27, %s5655_s5 }
  0x27   :  { %p3625_p4 = pnand %p3623_p3, %p3620_p2 }
  0x29   :  { %3628 = shalt.err (!%p3625_p4)
}
  0x2a   :  { %s3629_s8 = scalar_lea.vmem %s49_s23, 16  ;;  %s3633_s2 = scalar_lea.vmem %s49_s23, 32 }
  0x2b   :  { %p3630_p5 = scmp.ne.s32.totalorder %s49_s23, %s3629_s8  ;;  %p3634_p6 = scmp.lt.s32.totalorder %s49_s23, %s49_s23 }
  0x2c   :  { %p3635_p7 = scmp.lt.s32.totalorder %s3633_s2, %s3629_s8 }
  0x2e   :  { %p3636_p8 = por %p3635_p7, %p3634_p6 }
  0x30   :  { %p3637_p9 = pnand %p3636_p8, %p3630_p5 }
  0x32   :  { %3640 = shalt.err (!%p3637_p9)
}
  0x33   :  { %51 = dma.hbm_to_vmem [thread:$0]  %s5655_s5, 16, %s49_s23, [#allocation6]  }
  0x34   :  { %3663 = dma.done.wait [#allocation3], 8192  }
  0x35   :  { %3664 = vsyncadd [#allocation3], 4294959104 }
  0x36   :  { %3665 = dma.done.wait [#allocation6], 80  }
  0x37   :  { %3666 = vsyncadd [#allocation6], 4294967216  ;;  %v5657_v0 = vmov 0   ;;  %v3763_v1 = vld [vmem:[%s5651_s1 + $0x4] ss:$16 sps:$4 sm:$0xff]   ;;  %vm3677_vm0 = vmmov 0  }
  0x38   :  { %373 = vmatprep.mubr.bf16.mxu0 %v5657_v0  ;;  %414 = vmatprep.mubr.bf16.mxu1 %v5657_v0  ;;  %5940 = vst [vmem:[#allocation12_spill] sm:$0xff] %v3763_v1  ;;  %v3768_v2 = vld [vmem:[%s5651_s1 + $0xc] ss:$16 sps:$4 sm:$0xff]   ;;  %v3774_v3 = vld [vmem:[%s5651_s1] ss:$16 sps:$4 sm:$0xff]   ;;  %vm2726_vm1 = vcmask 25600  }
  0x39   :  { %5941 = vst [vmem:[#allocation13_spill] sm:$0xff] %v3768_v2  ;;  %341 = vmatprep.subr.bf16.mxu0 %v3763_v1  ;;  %v3779_v4 = vld [vmem:[%s5651_s1 + $0x8] ss:$16 sps:$4 sm:$0xff]   ;;  %382 = vmatprep.subr.bf16.mxu1 %v3768_v2  ;;  %v3785_v5 = vld [vmem:[%s5651_s1 + $0x24] ss:$16 sps:$4 sm:$0xff]  }
  0x3a   :  { %342 = vmatpush1.bf16.msra.mxu0 %v3774_v3  ;;  %383 = vmatpush1.bf16.msra.mxu1 %v3779_v4  ;;  %v3792_v6 = vld [vmem:[%s5651_s1 + $0x2c] ss:$16 sps:$4 sm:$0xff]   ;;  %v3797_v7 = vld [vmem:[%s5651_s1 + $0x20] ss:$16 sps:$4 sm:$0xff]   ;;  %v3803_v8 = vld [vmem:[%s5651_s1 + $0x28] ss:$16 sps:$4 sm:$0xff]  }
  0x3b   :  { %343 = vmatprep.subr.bf16.mxu0 %v3785_v5  ;;  %384 = vmatprep.subr.bf16.mxu1 %v3792_v6  ;;  %v3809_v9 = vld [vmem:[%s5651_s1 + $0x44] ss:$16 sps:$4 sm:$0xff]   ;;  %v3814_v10 = vld [vmem:[%s5651_s1 + $0x4c] ss:$16 sps:$4 sm:$0xff]   ;;  %v3819_v11 = vld [vmem:[%s5651_s1 + $0x40] ss:$16 sps:$4 sm:$0xff]  }
  0x3c   :  { %v3824_v12 = vld [vmem:[%s5651_s1 + $0x48] ss:$16 sps:$4 sm:$0xff]   ;;  %v3831_v13 = vld [vmem:[%s5651_s1 + $0x64] ss:$16 sps:$4 sm:$0xff]   ;;  %v3838_v14 = vld [vmem:[%s5651_s1 + $0x6c] ss:$16 sps:$4 sm:$0xff]  }
  0x3d   :  { %v3843_v15 = vld [vmem:[%s5651_s1 + $0x60] ss:$16 sps:$4 sm:$0xff]   ;;  %v3850_v16 = vld [vmem:[%s5651_s1 + $0x68] ss:$16 sps:$4 sm:$0xff]   ;;  %v3855_v17 = vld [vmem:[%s5651_s1 + $0x84] ss:$16 sps:$4 sm:$0xff]  }
  0x3e   :  { %344 = vmatpush1.bf16.msra.mxu0 %v3797_v7  ;;  %385 = vmatpush1.bf16.msra.mxu1 %v3803_v8  ;;  %v3862_v18 = vld [vmem:[%s5651_s1 + $0x8c] ss:$16 sps:$4 sm:$0xff]   ;;  %v3867_v19 = vld [vmem:[%s5651_s1 + $0x80] ss:$16 sps:$4 sm:$0xff]   ;;  %v3872_v20 = vld [vmem:[%s5651_s1 + $0x88] ss:$16 sps:$4 sm:$0xff]  }
  0x3f   :  { %345 = vmatprep.subr.bf16.mxu0 %v3809_v9  ;;  %386 = vmatprep.subr.bf16.mxu1 %v3814_v10  ;;  %v3879_v21 = vld [vmem:[%s5651_s1 + $0xa4] ss:$16 sps:$4 sm:$0xff]   ;;  %v3886_v22 = vld [vmem:[%s5651_s1 + $0xac] ss:$16 sps:$4 sm:$0xff]   ;;  %v3891_v23 = vld [vmem:[%s5651_s1 + $0xa0] ss:$16 sps:$4 sm:$0xff]  }
  0x40   :  { %v3898_v24 = vld [vmem:[%s5651_s1 + $0xa8] ss:$16 sps:$4 sm:$0xff]   ;;  %v3903_v25 = vld [vmem:[%s5651_s1 + $0xc4] ss:$16 sps:$4 sm:$0xff]   ;;  %v3910_v26 = vld [vmem:[%s5651_s1 + $0xcc] ss:$16 sps:$4 sm:$0xff]  }
  0x41   :  { %v3915_v27 = vld [vmem:[%s5651_s1 + $0xc0] ss:$16 sps:$4 sm:$0xff]   ;;  %v3920_v28 = vld [vmem:[%s5651_s1 + $0xc8] ss:$16 sps:$4 sm:$0xff]   ;;  %v3927_v29 = vld [vmem:[%s5651_s1 + $0xe4] ss:$16 sps:$4 sm:$0xff]  }
  0x42   :  { %346 = vmatpush1.bf16.msra.mxu0 %v3819_v11  ;;  %387 = vmatpush1.bf16.msra.mxu1 %v3824_v12  ;;  %v3934_v30 = vld [vmem:[%s5651_s1 + $0xec] ss:$16 sps:$4 sm:$0xff]   ;;  %v3939_v31 = vld [vmem:[%s5651_s1 + $0xe0] ss:$16 sps:$4 sm:$0xff]   ;;  %v3944_v32 = vld [vmem:[%s5651_s1 + $0xe8] ss:$16 sps:$4 sm:$0xff]  }
  0x43   :  { %347 = vmatprep.subr.bf16.mxu0 %v3831_v13  ;;  %388 = vmatprep.subr.bf16.mxu1 %v3838_v14  ;;  %v3946_v33 = vld [vmem:[#allocation2 + $0x4] ss:$16 sps:$4 sm:$0xff]   ;;  %v3948_v34 = vld [vmem:[#allocation2 + $0xc] ss:$16 sps:$4 sm:$0xff]   ;;  %v3954_v35 = vld [vmem:[#allocation2] ss:$16 sps:$4 sm:$0xff]  }
  0x44   :  { %v3956_v36 = vld [vmem:[#allocation2 + $0x8] ss:$16 sps:$4 sm:$0xff]   ;;  %v3958_v37 = vld [vmem:[#allocation2 + $0x24] ss:$16 sps:$4 sm:$0xff]   ;;  %v3960_v38 = vld [vmem:[#allocation2 + $0x2c] ss:$16 sps:$4 sm:$0xff]  }
  0x45   :  { %v3966_v39 = vld [vmem:[#allocation2 + $0x20] ss:$16 sps:$4 sm:$0xff]   ;;  %v3968_v40 = vld [vmem:[#allocation2 + $0x28] ss:$16 sps:$4 sm:$0xff]   ;;  %v3980_v41 = vld [vmem:[#allocation2 + $0x44] ss:$16 sps:$4 sm:$0xff]  }
  0x46   :  { %348 = vmatpush1.bf16.msra.mxu0 %v3843_v15  ;;  %389 = vmatpush1.bf16.msra.mxu1 %v3850_v16  ;;  %v3982_v42 = vld [vmem:[#allocation2 + $0x4c] ss:$16 sps:$4 sm:$0xff]   ;;  %v3986_v43 = vld [vmem:[#allocation2 + $0x40] ss:$16 sps:$4 sm:$0xff]   ;;  %v3988_v44 = vld [vmem:[#allocation2 + $0x48] ss:$16 sps:$4 sm:$0xff]  }
  0x47   :  { %349 = vmatprep.subr.bf16.mxu0 %v3855_v17  ;;  %390 = vmatprep.subr.bf16.mxu1 %v3862_v18  ;;  %v3992_v45 = vld [vmem:[#allocation2 + $0x64] ss:$16 sps:$4 sm:$0xff]   ;;  %v3994_v46 = vld [vmem:[#allocation2 + $0x6c] ss:$16 sps:$4 sm:$0xff]   ;;  %v3996_v47 = vld [vmem:[#allocation2 + $0x60] ss:$16 sps:$4 sm:$0xff]  }
  0x48   :  { %v3998_v48 = vld [vmem:[#allocation2 + $0x68] ss:$16 sps:$4 sm:$0xff]   ;;  %v4004_v49 = vld [vmem:[#allocation2 + $0x84] ss:$16 sps:$4 sm:$0xff]   ;;  %v4006_v50 = vld [vmem:[#allocation2 + $0x8c] ss:$16 sps:$4 sm:$0xff]  }
  0x49   :  { %5942 = vst [vmem:[#allocation14_spill] sm:$0xff] %v3998_v48  ;;  %5943 = vst [vmem:[#allocation15_spill] sm:$0xff] %v4004_v49  ;;  %v4008_v51 = vld [vmem:[#allocation2 + $0x80] ss:$16 sps:$4 sm:$0xff]   ;;  %v4010_v52 = vld [vmem:[#allocation2 + $0x88] ss:$16 sps:$4 sm:$0xff]  }
  0x4a   :  { %350 = vmatpush1.bf16.msra.mxu0 %v3867_v19  ;;  %391 = vmatpush1.bf16.msra.mxu1 %v3872_v20  ;;  %5944 = vst [vmem:[#allocation16_spill] sm:$0xff] %v4006_v50  ;;  %5945 = vst [vmem:[#allocation17_spill] sm:$0xff] %v4008_v51  ;;  %v4016_v53 = vld [vmem:[#allocation2 + $0xa4] ss:$16 sps:$4 sm:$0xff]   ;;  %v4018_v54 = vld [vmem:[#allocation2 + $0xac] ss:$16 sps:$4 sm:$0xff]  }
  0x4b   :  { %351 = vmatprep.subr.bf16.mxu0 %v3879_v21  ;;  %392 = vmatprep.subr.bf16.mxu1 %v3886_v22  ;;  %5946 = vst [vmem:[#allocation18_spill] sm:$0xff] %v4010_v52  ;;  %5947 = vst [vmem:[#allocation19_spill] sm:$0xff] %v4016_v53  ;;  %v4020_v55 = vld [vmem:[#allocation2 + $0xa0] ss:$16 sps:$4 sm:$0xff]   ;;  %v4022_v56 = vld [vmem:[#allocation2 + $0xa8] ss:$16 sps:$4 sm:$0xff]  }
  0x4c   :  { %5948 = vst [vmem:[#allocation20_spill] sm:$0xff] %v4018_v54  ;;  %5949 = vst [vmem:[#allocation21_spill] sm:$0xff] %v4020_v55  ;;  %v4028_v57 = vld [vmem:[#allocation2 + $0xc4] ss:$16 sps:$4 sm:$0xff]   ;;  %v4030_v58 = vld [vmem:[#allocation2 + $0xcc] ss:$16 sps:$4 sm:$0xff]  }
  0x4d   :  { %5950 = vst [vmem:[#allocation22_spill] sm:$0xff] %v4022_v56  ;;  %5951 = vst [vmem:[#allocation23_spill] sm:$0xff] %v4028_v57  ;;  %v4032_v59 = vld [vmem:[#allocation2 + $0xc0] ss:$16 sps:$4 sm:$0xff]   ;;  %v4034_v60 = vld [vmem:[#allocation2 + $0xc8] ss:$16 sps:$4 sm:$0xff]  }
  0x4e   :  { %352 = vmatpush1.bf16.msra.mxu0 %v3891_v23  ;;  %393 = vmatpush1.bf16.msra.mxu1 %v3898_v24  ;;  %5952 = vst [vmem:[#allocation24_spill] sm:$0xff] %v4030_v58  ;;  %5953 = vst [vmem:[#allocation25_spill] sm:$0xff] %v4032_v59  ;;  %v4040_v61 = vld [vmem:[#allocation2 + $0xe4] ss:$16 sps:$4 sm:$0xff]   ;;  %v4042_v62 = vld [vmem:[#allocation2 + $0xec] ss:$16 sps:$4 sm:$0xff]  }
  0x4f   :  { %353 = vmatprep.subr.bf16.mxu0 %v3903_v25  ;;  %394 = vmatprep.subr.bf16.mxu1 %v3910_v26  ;;  %5954 = vst [vmem:[#allocation26_spill] sm:$0xff] %v4034_v60  ;;  %5955 = vst [vmem:[#allocation27_spill] sm:$0xff] %v4040_v61  ;;  %v4044_v63 = vld [vmem:[#allocation2 + $0xe0] ss:$16 sps:$4 sm:$0xff]  }
  0x50   :  { %5956 = vst [vmem:[#allocation28_spill] sm:$0xff] %v4042_v62  ;;  %5957 = vst [vmem:[#allocation29_spill] sm:$0xff] %v4044_v63 }
  0x52   :  { %354 = vmatpush1.bf16.msra.mxu0 %v3915_v27  ;;  %395 = vmatpush1.bf16.msra.mxu1 %v3920_v28 }
  0x53   :  { %355 = vmatprep.subr.bf16.mxu0 %v3927_v29  ;;  %396 = vmatprep.subr.bf16.mxu1 %v3934_v30 }
  0x56   :  { %356 = vmatpush1.bf16.msra.mxu0 %v3939_v31  ;;  %397 = vmatpush1.bf16.msra.mxu1 %v3944_v32 }
  0x57   :  { %798 = vmatprep.subr.bf16.mxu0 %v3946_v33  ;;  %839 = vmatprep.subr.bf16.mxu1 %v3948_v34 }
  0x59   :  { %374 = vmatmul.mubr.bf16.vlgmr.msra.gmra.mrb[0].mxu0 %v5657_v0  ;;  %415 = vmatmul.mubr.bf16.vlgmr.msra.gmra.mrb[0].mxu1 %v5657_v0 }
  0x5a   :  { %799 = vmatpush1.bf16.msra.mxu0 %v3954_v35  ;;  %840 = vmatpush1.bf16.msra.mxu1 %v3956_v36 }
  0x5b   :  { %800 = vmatprep.subr.bf16.mxu0 %v3958_v37  ;;  %841 = vmatprep.subr.bf16.mxu1 %v3960_v38 }
  0x5c   :  { %830 = vmatprep.mubr.bf16.mxu0 %v5657_v0  ;;  %871 = vmatprep.mubr.bf16.mxu1 %v5657_v0  ;;  %v4046_v0 = vld [vmem:[#allocation2 + $0xe8] ss:$16 sps:$4 sm:$0xff]  }
  0x5d   :  { %5958 = vst [vmem:[#allocation30_spill] sm:$0xff] %v4046_v0 }
  0x5e   :  { %801 = vmatpush1.bf16.msra.mxu0 %v3966_v39  ;;  %842 = vmatpush1.bf16.msra.mxu1 %v3968_v40 }
  0x5f   :  { %802 = vmatprep.subr.bf16.mxu0 %v3980_v41  ;;  %843 = vmatprep.subr.bf16.mxu1 %v3982_v42 }
  0x62   :  { %803 = vmatpush1.bf16.msra.mxu0 %v3986_v43  ;;  %844 = vmatpush1.bf16.msra.mxu1 %v3988_v44 }
  0x63   :  { %804 = vmatprep.subr.bf16.mxu0 %v3992_v45  ;;  %845 = vmatprep.subr.bf16.mxu1 %v3994_v46 }
  0x66   :  { %805 = vmatpush1.bf16.msra.mxu0 %v3996_v47  ;;  %846 = vmatpush1.bf16.msra.mxu1 %v3998_v48 }
  0x67   :  { %806 = vmatprep.subr.bf16.mxu0 %v4004_v49  ;;  %847 = vmatprep.subr.bf16.mxu1 %v4006_v50 }
  0x6a   :  { %807 = vmatpush1.bf16.msra.mxu0 %v4008_v51  ;;  %848 = vmatpush1.bf16.msra.mxu1 %v4010_v52 }
  0x6b   :  { %808 = vmatprep.subr.bf16.mxu0 %v4016_v53  ;;  %849 = vmatprep.subr.bf16.mxu1 %v4018_v54 }
  0x6e   :  { %809 = vmatpush1.bf16.msra.mxu0 %v4020_v55  ;;  %850 = vmatpush1.bf16.msra.mxu1 %v4022_v56  ;;  %v4108_v56 = vld [vmem:[#allocation2 + $0x1a4] ss:$16 sps:$4 sm:$0xff]   ;;  %v4110_v55 = vld [vmem:[#allocation2 + $0x1ac] ss:$16 sps:$4 sm:$0xff]  }
  0x6f   :  { %810 = vmatprep.subr.bf16.mxu0 %v4028_v57  ;;  %851 = vmatprep.subr.bf16.mxu1 %v4030_v58  ;;  %v4052_v58 = vld [vmem:[#allocation2 + $0x104] ss:$16 sps:$4 sm:$0xff]   ;;  %v4058_v57 = vld [vmem:[#allocation2 + $0x108] ss:$16 sps:$4 sm:$0xff]   ;;  %5979 = vst [vmem:[#allocation51_spill] sm:$0xff] %v4108_v56  ;;  %5980 = vst [vmem:[#allocation52_spill] sm:$0xff] %v4110_v55 }
  0x70   :  { %5959 = vst [vmem:[#allocation31_spill] sm:$0xff] %v4052_v58  ;;  %5962 = vst [vmem:[#allocation34_spill] sm:$0xff] %v4058_v57 }
  0x72   :  { %811 = vmatpush1.bf16.msra.mxu0 %v4032_v59  ;;  %852 = vmatpush1.bf16.msra.mxu1 %v4034_v60  ;;  %v4054_v59 = vld [vmem:[#allocation2 + $0x10c] ss:$16 sps:$4 sm:$0xff]   ;;  %v4056_v60 = vld [vmem:[#allocation2 + $0x100] ss:$16 sps:$4 sm:$0xff]  }
  0x73   :  { %812 = vmatprep.subr.bf16.mxu0 %v4040_v61  ;;  %853 = vmatprep.subr.bf16.mxu1 %v4042_v62  ;;  %5960 = vst [vmem:[#allocation32_spill] sm:$0xff] %v4054_v59  ;;  %5961 = vst [vmem:[#allocation33_spill] sm:$0xff] %v4056_v60  ;;  %v4064_v62 = vld [vmem:[#allocation2 + $0x124] ss:$16 sps:$4 sm:$0xff]   ;;  %v4070_v61 = vld [vmem:[#allocation2 + $0x128] ss:$16 sps:$4 sm:$0xff]  }
  0x74   :  { %5963 = vst [vmem:[#allocation35_spill] sm:$0xff] %v4064_v62  ;;  %5966 = vst [vmem:[#allocation38_spill] sm:$0xff] %v4070_v61 }
  0x76   :  { %813 = vmatpush1.bf16.msra.mxu0 %v4044_v63  ;;  %854 = vmatpush1.bf16.msra.mxu1 %v4046_v0  ;;  %v4066_v63 = vld [vmem:[#allocation2 + $0x12c] ss:$16 sps:$4 sm:$0xff]   ;;  %v4068_v0 = vld [vmem:[#allocation2 + $0x120] ss:$16 sps:$4 sm:$0xff]  }
  0x77   :  { %814 = vmatprep.subr.bf16.mxu0 %v4052_v58  ;;  %855 = vmatprep.subr.bf16.mxu1 %v4054_v59  ;;  %5964 = vst [vmem:[#allocation36_spill] sm:$0xff] %v4066_v63  ;;  %5965 = vst [vmem:[#allocation37_spill] sm:$0xff] %v4068_v0  ;;  %v4076_v59 = vld [vmem:[#allocation2 + $0x144] ss:$16 sps:$4 sm:$0xff]   ;;  %v4082_v58 = vld [vmem:[#allocation2 + $0x148] ss:$16 sps:$4 sm:$0xff]  }
  0x78   :  { %5967 = vst [vmem:[#allocation39_spill] sm:$0xff] %v4076_v59  ;;  %5970 = vst [vmem:[#allocation42_spill] sm:$0xff] %v4082_v58 }
  0x7a   :  { %815 = vmatpush1.bf16.msra.mxu0 %v4056_v60  ;;  %856 = vmatpush1.bf16.msra.mxu1 %v4058_v57  ;;  %v4078_v60 = vld [vmem:[#allocation2 + $0x14c] ss:$16 sps:$4 sm:$0xff]   ;;  %v4080_v57 = vld [vmem:[#allocation2 + $0x140] ss:$16 sps:$4 sm:$0xff]  }
  0x7b   :  { %816 = vmatprep.subr.bf16.mxu0 %v4064_v62  ;;  %857 = vmatprep.subr.bf16.mxu1 %v4066_v63  ;;  %5968 = vst [vmem:[#allocation40_spill] sm:$0xff] %v4078_v60  ;;  %5969 = vst [vmem:[#allocation41_spill] sm:$0xff] %v4080_v57  ;;  %v4088_v63 = vld [vmem:[#allocation2 + $0x164] ss:$16 sps:$4 sm:$0xff]   ;;  %v4094_v62 = vld [vmem:[#allocation2 + $0x168] ss:$16 sps:$4 sm:$0xff]  }
  0x7c   :  { %5971 = vst [vmem:[#allocation43_spill] sm:$0xff] %v4088_v63  ;;  %5974 = vst [vmem:[#allocation46_spill] sm:$0xff] %v4094_v62 }
  0x7e   :  { %817 = vmatpush1.bf16.msra.mxu0 %v4068_v0  ;;  %858 = vmatpush1.bf16.msra.mxu1 %v4070_v61  ;;  %v4090_v0 = vld [vmem:[#allocation2 + $0x16c] ss:$16 sps:$4 sm:$0xff]   ;;  %v4092_v61 = vld [vmem:[#allocation2 + $0x160] ss:$16 sps:$4 sm:$0xff]  }
  0x7f   :  { %818 = vmatprep.subr.bf16.mxu0 %v4076_v59  ;;  %859 = vmatprep.subr.bf16.mxu1 %v4078_v60  ;;  %5972 = vst [vmem:[#allocation44_spill] sm:$0xff] %v4090_v0  ;;  %5973 = vst [vmem:[#allocation45_spill] sm:$0xff] %v4092_v61  ;;  %v4100_v60 = vld [vmem:[#allocation2 + $0x184] ss:$16 sps:$4 sm:$0xff]   ;;  %v4106_v59 = vld [vmem:[#allocation2 + $0x188] ss:$16 sps:$4 sm:$0xff]  }
  0x80   :  { %5975 = vst [vmem:[#allocation47_spill] sm:$0xff] %v4100_v60  ;;  %5978 = vst [vmem:[#allocation50_spill] sm:$0xff] %v4106_v59 }
  0x82   :  { %819 = vmatpush1.bf16.msra.mxu0 %v4080_v57  ;;  %860 = vmatpush1.bf16.msra.mxu1 %v4082_v58  ;;  %v4102_v57 = vld [vmem:[#allocation2 + $0x18c] ss:$16 sps:$4 sm:$0xff]   ;;  %v4104_v58 = vld [vmem:[#allocation2 + $0x180] ss:$16 sps:$4 sm:$0xff]  }
  0x83   :  { %820 = vmatprep.subr.bf16.mxu0 %v4088_v63  ;;  %861 = vmatprep.subr.bf16.mxu1 %v4090_v0  ;;  %5976 = vst [vmem:[#allocation48_spill] sm:$0xff] %v4102_v57  ;;  %5977 = vst [vmem:[#allocation49_spill] sm:$0xff] %v4104_v58  ;;  %v4122_v0 = vld [vmem:[#allocation2 + $0x1c4] ss:$16 sps:$4 sm:$0xff]   ;;  %v4124_v63 = vld [vmem:[#allocation2 + $0x1cc] ss:$16 sps:$4 sm:$0xff]  }
  0x84   :  { %5983 = vst [vmem:[#allocation55_spill] sm:$0xff] %v4122_v0  ;;  %5984 = vst [vmem:[#allocation56_spill] sm:$0xff] %v4124_v63 }
  0x86   :  { %821 = vmatpush1.bf16.msra.mxu0 %v4092_v61  ;;  %862 = vmatpush1.bf16.msra.mxu1 %v4094_v62  ;;  %v4116_v62 = vld [vmem:[#allocation2 + $0x1a0] ss:$16 sps:$4 sm:$0xff]   ;;  %v4118_v61 = vld [vmem:[#allocation2 + $0x1a8] ss:$16 sps:$4 sm:$0xff]  }
  0x87   :  { %822 = vmatprep.subr.bf16.mxu0 %v4100_v60  ;;  %863 = vmatprep.subr.bf16.mxu1 %v4102_v57  ;;  %5981 = vst [vmem:[#allocation53_spill] sm:$0xff] %v4116_v62  ;;  %5982 = vst [vmem:[#allocation54_spill] sm:$0xff] %v4118_v61  ;;  %v4128_v57 = vld [vmem:[#allocation2 + $0x1c0] ss:$16 sps:$4 sm:$0xff]  }
  0x88   :  { %5985 = vst [vmem:[#allocation57_spill] sm:$0xff] %v4128_v57 }
  0x8a   :  { %823 = vmatpush1.bf16.msra.mxu0 %v4104_v58  ;;  %864 = vmatpush1.bf16.msra.mxu1 %v4106_v59  ;;  %v4130_v58 = vld [vmem:[#allocation2 + $0x1c8] ss:$16 sps:$4 sm:$0xff]   ;;  %v4134_v59 = vld [vmem:[#allocation2 + $0x1e4] ss:$16 sps:$4 sm:$0xff]  }
  0x8b   :  { %824 = vmatprep.subr.bf16.mxu0 %v4108_v56  ;;  %865 = vmatprep.subr.bf16.mxu1 %v4110_v55  ;;  %5986 = vst [vmem:[#allocation58_spill] sm:$0xff] %v4130_v58  ;;  %5987 = vst [vmem:[#allocation59_spill] sm:$0xff] %v4134_v59  ;;  %v4136_v56 = vld [vmem:[#allocation2 + $0x1ec] ss:$16 sps:$4 sm:$0xff]   ;;  %v4140_v55 = vld [vmem:[#allocation2 + $0x1e0] ss:$16 sps:$4 sm:$0xff]  }
  0x8c   :  { %5988 = vst [vmem:[#allocation60_spill] sm:$0xff] %v4136_v56  ;;  %5989 = vst [vmem:[#allocation61_spill] sm:$0xff] %v4140_v55 }
  0x8e   :  { %825 = vmatpush1.bf16.msra.mxu0 %v4116_v62  ;;  %866 = vmatpush1.bf16.msra.mxu1 %v4118_v61  ;;  %v4142_v62 = vld [vmem:[#allocation2 + $0x1e8] ss:$16 sps:$4 sm:$0xff]  }
  0x8f   :  { %826 = vmatprep.subr.bf16.mxu0 %v4122_v0  ;;  %867 = vmatprep.subr.bf16.mxu1 %v4124_v63  ;;  %5990 = vst [vmem:[#allocation62_spill] sm:$0xff] %v4142_v62  ;;  %v160_v63 = vlaneseq }
  0x92   :  { %827 = vmatpush1.bf16.msra.mxu0 %v4128_v57  ;;  %868 = vmatpush1.bf16.msra.mxu1 %v4130_v58  ;;  %v3675_v57 = vmov 1983009808   ;;  %v4150_v58 = vshrl.u32 %v160_v63, 7 }
  0x93   :  { %828 = vmatprep.subr.bf16.mxu0 %v4134_v59  ;;  %869 = vmatprep.subr.bf16.mxu1 %v4136_v56  ;;  %v430_v0 = vunpack.c.l.s4 %v3675_v57 }
  0x94   :  { %5991 = vst [vmem:[#allocation63_spill] sm:$0xff] %v4150_v58 }
  0x95   :  { %v431_v61 = vunpack.c.0.s8 %v430_v0  ;;  %v180_v0 = vld [vmem:[%s5650_s0] sm:$0xff] }
  0x96   :  { %829 = vmatpush1.bf16.msra.mxu0 %v4140_v55  ;;  %870 = vmatpush1.bf16.msra.mxu1 %v4142_v62 }
  0x97   :  { %906 = vmatprep.subr.bf16.mxu0 %v3763_v1  ;;  %947 = vmatprep.subr.bf16.mxu1 %v3768_v2  ;;  %v4153_v59 = vsub.s32 %v431_v61, %v4150_v58 }
 0x12c   :  { %v375_v60 = vpop.f32.mrb[0].mxu0  ;;  %v416_v54 = vpop.f32.mrb[0].mxu1 }
 0x12d   :  { %v377_v56 = vpop.f32.mrb[1].mxu0  ;;  %v418_v53 = vpop.f32.mrb[1].mxu1 }
 0x12e   :  { %v427_v55 = vcombine.low %v375_v60, %v377_v56  ;;  %v428_v52 = vcombine.low %v416_v54, %v418_v53  ;;  %v379_v62 = vpop.f32.mrb[2].mxu0  ;;  %v420_v51 = vpop.f32.mrb[2].mxu1 }
 0x12f   :  { %v380_v1 = vpop.f32.mrb[3].mxu0  ;;  %v421_v50 = vpop.f32.mrb[3].mxu1 }
 0x130   :  { %v435_v2 = vrot.slane %v427_v55, %v4153_v59  ;;  %v442_v57 = vrot.slane %v428_v52, %v4153_v59 }
 0x132   :  { %v443_v63 = vcombine.low %v435_v2, %v442_v57 }
 0x134   :  { %v445_v49 = vadd.f32 %v443_v63, %v180_v0 }
 0x136   :  { %v2776_v61 = vmul.f32 -1.442695, %v445_v49  ;;  %v453_v58 = vrot.slane %v445_v49, 2  ;;  %v464_v53 = vrot.slane %v445_v49, 6  ;;  %v461_v1 = vrot.slane %v445_v49, 4 }
 0x138   :  { %3127 = vpow2.f32 %v2776_v61  ;;  %v2777_v48 = vmul.f32 -1.442695, %v453_v58  ;;  %v2778_v54 = vmul.f32 -1.442695, %v464_v53 }
 0x13a   :  { %3129 = vpow2.f32 %v2777_v48 }
 0x13b   :  { %3131 = vpow2.f32 %v2778_v54  ;;  %v5992_v54 = vmov 0  }
 0x142   :  { %v3128_v51 = vpop.eup %3127 }
 0x143   :  { %v449_v50 = vadd.f32 1.0, %v3128_v51  ;;  %v6008_v51 = vld [vmem:[#allocation29_spill] sm:$0xff] }
 0x144   :  { %v3130_v56 = vpop.eup %3129 }
 0x145   :  { %3133 = vrcp.f32 %v449_v50  ;;  %v458_v52 = vadd.f32 1.0, %v3130_v56  ;;  %v3132_v55 = vpop.eup %3131  ;;  %v6010_v50 = vld [vmem:[#allocation31_spill] sm:$0xff]  ;;  %v6011_v56 = vld [vmem:[#allocation32_spill] sm:$0xff] }
 0x146   :  { %3135 = vtanh.f32 %v461_v1  ;;  %v469_v57 = vadd.f32 1.0, %v3132_v55  ;;  %v6009_v1 = vld [vmem:[#allocation30_spill] sm:$0xff] }
 0x147   :  { %3137 = vrcp.f32 %v458_v52  ;;  %v6012_v52 = vld [vmem:[#allocation33_spill] sm:$0xff]  ;;  %v6013_v55 = vld [vmem:[#allocation34_spill] sm:$0xff] }
 0x148   :  { %3139 = vrcp.f32 %v469_v57  ;;  %v6017_v57 = vld [vmem:[#allocation38_spill] sm:$0xff] }
 0x14f   :  { %v3134_v60 = vpop.eup %3133 }
 0x150   :  { %v3136_v2 = vpop.eup %3135 }
 0x151   :  { %v3138_v62 = vpop.eup %3137  ;;  %v473_v63 = vmul.f32 %v3136_v2, %v3134_v60  ;;  %v6014_v60 = vld [vmem:[#allocation35_spill] sm:$0xff]  ;;  %v6015_v2 = vld [vmem:[#allocation36_spill] sm:$0xff] }
 0x152   :  { %v472_v0 = vmul.f32 0.0, %v3138_v62  ;;  %v3140_v48 = vpop.eup %3139  ;;  %v6016_v62 = vld [vmem:[#allocation37_spill] sm:$0xff] }
 0x154   :  { %v4160_v58 = vadd.f32 %v473_v63, %v472_v0  ;;  %v6018_v0 = vld [vmem:[#allocation39_spill] sm:$0xff]  ;;  %v6019_v63 = vld [vmem:[#allocation40_spill] sm:$0xff] }
 0x156   :  { %3141 = vtanh.f32 %v4160_v58 }
 0x160   :  { %v3142_v49 = vpop.eup %3141 }
 0x161   :  { %v476_v61 = vmul.f32 %v3142_v49, %v3140_v48  ;;  %v6020_v48 = vld [vmem:[#allocation41_spill] sm:$0xff]  ;;  %v6021_v49 = vld [vmem:[#allocation42_spill] sm:$0xff] }
 0x163   :  { %v477_v53 = vpack.c.bf16 %v476_v61, %v476_v61  ;;  %v6022_v61 = vld [vmem:[#allocation43_spill] sm:$0xff] }
 0x165   :  { %831 = vmatmul.mubr.bf16.vlgmr.msra.gmra.mrb[4].mxu0 %v477_v53  ;;  %872 = vmatmul.mubr.bf16.vlgmr.msra.gmra.mrb[4].mxu1 %v477_v53 }
 0x166   :  { %907 = vmatpush1.bf16.msra.mxu0 %v3774_v3  ;;  %948 = vmatpush1.bf16.msra.mxu1 %v3779_v4  ;;  %v5993_v3 = vld [vmem:[#allocation14_spill] sm:$0xff]  ;;  %v5994_v4 = vld [vmem:[#allocation15_spill] sm:$0xff] }
 0x167   :  { %908 = vmatprep.subr.bf16.mxu0 %v3785_v5  ;;  %949 = vmatprep.subr.bf16.mxu1 %v3792_v6  ;;  %v5995_v5 = vld [vmem:[#allocation16_spill] sm:$0xff]  ;;  %v5996_v6 = vld [vmem:[#allocation17_spill] sm:$0xff] }
 0x168   :  { %938 = vmatprep.mubr.bf16.mxu0 %v5992_v54  ;;  %979 = vmatprep.mubr.bf16.mxu1 %v5992_v54 }
 0x16a   :  { %909 = vmatpush1.bf16.msra.mxu0 %v3797_v7  ;;  %950 = vmatpush1.bf16.msra.mxu1 %v3803_v8  ;;  %v5997_v7 = vld [vmem:[#allocation18_spill] sm:$0xff]  ;;  %v5998_v8 = vld [vmem:[#allocation19_spill] sm:$0xff] }
 0x16b   :  { %910 = vmatprep.subr.bf16.mxu0 %v3809_v9  ;;  %951 = vmatprep.subr.bf16.mxu1 %v3814_v10  ;;  %v5999_v9 = vld [vmem:[#allocation20_spill] sm:$0xff]  ;;  %v6000_v10 = vld [vmem:[#allocation21_spill] sm:$0xff] }
 0x16e   :  { %911 = vmatpush1.bf16.msra.mxu0 %v3819_v11  ;;  %952 = vmatpush1.bf16.msra.mxu1 %v3824_v12  ;;  %v6001_v11 = vld [vmem:[#allocation22_spill] sm:$0xff]  ;;  %v6002_v12 = vld [vmem:[#allocation23_spill] sm:$0xff] }
 0x16f   :  { %912 = vmatprep.subr.bf16.mxu0 %v3831_v13  ;;  %953 = vmatprep.subr.bf16.mxu1 %v3838_v14  ;;  %v6003_v13 = vld [vmem:[#allocation24_spill] sm:$0xff]  ;;  %v6004_v14 = vld [vmem:[#allocation25_spill] sm:$0xff] }
 0x172   :  { %913 = vmatpush1.bf16.msra.mxu0 %v3843_v15  ;;  %954 = vmatpush1.bf16.msra.mxu1 %v3850_v16  ;;  %v6005_v15 = vld [vmem:[#allocation26_spill] sm:$0xff]  ;;  %v6006_v16 = vld [vmem:[#allocation27_spill] sm:$0xff] }
 0x173   :  { %914 = vmatprep.subr.bf16.mxu0 %v3855_v17  ;;  %955 = vmatprep.subr.bf16.mxu1 %v3862_v18  ;;  %v6007_v17 = vld [vmem:[#allocation28_spill] sm:$0xff] }
 0x176   :  { %915 = vmatpush1.bf16.msra.mxu0 %v3867_v19  ;;  %956 = vmatpush1.bf16.msra.mxu1 %v3872_v20 }
 0x177   :  { %916 = vmatprep.subr.bf16.mxu0 %v3879_v21  ;;  %957 = vmatprep.subr.bf16.mxu1 %v3886_v22 }
 0x17a   :  { %917 = vmatpush1.bf16.msra.mxu0 %v3891_v23  ;;  %958 = vmatpush1.bf16.msra.mxu1 %v3898_v24 }
 0x17b   :  { %918 = vmatprep.subr.bf16.mxu0 %v3903_v25  ;;  %959 = vmatprep.subr.bf16.mxu1 %v3910_v26 }
 0x17e   :  { %919 = vmatpush1.bf16.msra.mxu0 %v3915_v27  ;;  %960 = vmatpush1.bf16.msra.mxu1 %v3920_v28 }
 0x17f   :  { %920 = vmatprep.subr.bf16.mxu0 %v3927_v29  ;;  %961 = vmatprep.subr.bf16.mxu1 %v3934_v30 }
 0x182   :  { %921 = vmatpush1.bf16.msra.mxu0 %v3939_v31  ;;  %962 = vmatpush1.bf16.msra.mxu1 %v3944_v32 }
 0x183   :  { %1044 = vmatprep.subr.bf16.mxu0 %v3946_v33  ;;  %1085 = vmatprep.subr.bf16.mxu1 %v3948_v34 }
 0x185   :  { %939 = vmatmul.mubr.bf16.vlgmr.msra.gmra.mrb[8].mxu0 %v477_v53  ;;  %980 = vmatmul.mubr.bf16.vlgmr.msra.gmra.mrb[8].mxu1 %v477_v53  ;;  %v6023_v53 = vld [vmem:[#allocation44_spill] sm:$0xff] }
 0x186   :  { %1045 = vmatpush1.bf16.msra.mxu0 %v3954_v35  ;;  %1086 = vmatpush1.bf16.msra.mxu1 %v3956_v36 }
 0x187   :  { %1046 = vmatprep.subr.bf16.mxu0 %v3958_v37  ;;  %1087 = vmatprep.subr.bf16.mxu1 %v3960_v38 }
 0x18a   :  { %1047 = vmatpush1.bf16.msra.mxu0 %v3966_v39  ;;  %1088 = vmatpush1.bf16.msra.mxu1 %v3968_v40 }
 0x18b   :  { %1048 = vmatprep.subr.bf16.mxu0 %v3980_v41  ;;  %1089 = vmatprep.subr.bf16.mxu1 %v3982_v42 }
 0x18e   :  { %1049 = vmatpush1.bf16.msra.mxu0 %v3986_v43  ;;  %1090 = vmatpush1.bf16.msra.mxu1 %v3988_v44 }
 0x18f   :  { %1050 = vmatprep.subr.bf16.mxu0 %v3992_v45  ;;  %1091 = vmatprep.subr.bf16.mxu1 %v3994_v46 }
 0x192   :  { %1051 = vmatpush1.bf16.msra.mxu0 %v3996_v47  ;;  %1092 = vmatpush1.bf16.msra.mxu1 %v5993_v3 }
 0x193   :  { %1052 = vmatprep.subr.bf16.mxu0 %v5994_v4  ;;  %1093 = vmatprep.subr.bf16.mxu1 %v5995_v5 }
 0x196   :  { %1053 = vmatpush1.bf16.msra.mxu0 %v5996_v6  ;;  %1094 = vmatpush1.bf16.msra.mxu1 %v5997_v7 }
 0x197   :  { %1054 = vmatprep.subr.bf16.mxu0 %v5998_v8  ;;  %1095 = vmatprep.subr.bf16.mxu1 %v5999_v9 }
 0x19a   :  { %1055 = vmatpush1.bf16.msra.mxu0 %v6000_v10  ;;  %1096 = vmatpush1.bf16.msra.mxu1 %v6001_v11 }
 0x19b   :  { %1056 = vmatprep.subr.bf16.mxu0 %v6002_v12  ;;  %1097 = vmatprep.subr.bf16.mxu1 %v6003_v13 }
 0x19e   :  { %1057 = vmatpush1.bf16.msra.mxu0 %v6004_v14  ;;  %1098 = vmatpush1.bf16.msra.mxu1 %v6005_v15 }
 0x19f   :  { %1058 = vmatprep.subr.bf16.mxu0 %v6006_v16  ;;  %1099 = vmatprep.subr.bf16.mxu1 %v6007_v17 }
 0x1a2   :  { %1059 = vmatpush1.bf16.msra.mxu0 %v6008_v51  ;;  %1100 = vmatpush1.bf16.msra.mxu1 %v6009_v1 }
 0x1a3   :  { %1060 = vmatprep.subr.bf16.mxu0 %v6010_v50  ;;  %1101 = vmatprep.subr.bf16.mxu1 %v6011_v56 }
 0x1a6   :  { %1061 = vmatpush1.bf16.msra.mxu0 %v6012_v52  ;;  %1102 = vmatpush1.bf16.msra.mxu1 %v6013_v55  ;;  %v6024_v55 = vld [vmem:[#allocation45_spill] sm:$0xff]  ;;  %v158_v52 = vld [vmem:[#allocation5] sm:$0xf] }
 0x1a7   :  { %1062 = vmatprep.subr.bf16.mxu0 %v6014_v60  ;;  %1103 = vmatprep.subr.bf16.mxu1 %v6015_v2  ;;  %v6025_v60 = vld [vmem:[#allocation46_spill] sm:$0xff]  ;;  %v6026_v2 = vld [vmem:[#allocation47_spill] sm:$0xff] }
 0x1aa   :  { %1063 = vmatpush1.bf16.msra.mxu0 %v6016_v62  ;;  %1104 = vmatpush1.bf16.msra.mxu1 %v6017_v57  ;;  %v6027_v62 = vld [vmem:[#allocation48_spill] sm:$0xff]  ;;  %v6028_v57 = vld [vmem:[#allocation49_spill] sm:$0xff] }
 0x1ab   :  { %1064 = vmatprep.subr.bf16.mxu0 %v6018_v0  ;;  %1105 = vmatprep.subr.bf16.mxu1 %v6019_v63  ;;  %v6029_v0 = vld [vmem:[#allocation50_spill] sm:$0xff]  ;;  %v6030_v63 = vld [vmem:[#allocation51_spill] sm:$0xff] }
 0x1ae   :  { %1065 = vmatpush1.bf16.msra.mxu0 %v6020_v48  ;;  %1106 = vmatpush1.bf16.msra.mxu1 %v6021_v49  ;;  %v6031_v48 = vld [vmem:[#allocation52_spill] sm:$0xff]  ;;  %v6032_v49 = vld [vmem:[#allocation53_spill] sm:$0xff] }
 0x1af   :  { %1066 = vmatprep.subr.bf16.mxu0 %v6022_v61  ;;  %1107 = vmatprep.subr.bf16.mxu1 %v6023_v53  ;;  %v6033_v61 = vld [vmem:[#allocation54_spill] sm:$0xff]  ;;  %v6034_v53 = vld [vmem:[#allocation55_spill] sm:$0xff] }
 0x1b2   :  { %1067 = vmatpush1.bf16.msra.mxu0 %v6024_v55  ;;  %1108 = vmatpush1.bf16.msra.mxu1 %v6025_v60  ;;  %v6035_v55 = vld [vmem:[#allocation56_spill] sm:$0xff]  ;;  %v6036_v60 = vld [vmem:[#allocation57_spill] sm:$0xff] }
 0x1b3   :  { %1068 = vmatprep.subr.bf16.mxu0 %v6026_v2  ;;  %1109 = vmatprep.subr.bf16.mxu1 %v6027_v62  ;;  %v6037_v2 = vld [vmem:[#allocation58_spill] sm:$0xff]  ;;  %v6038_v62 = vld [vmem:[#allocation59_spill] sm:$0xff] }
 0x1b6   :  { %1069 = vmatpush1.bf16.msra.mxu0 %v6028_v57  ;;  %1110 = vmatpush1.bf16.msra.mxu1 %v6029_v0  ;;  %v6039_v57 = vld [vmem:[#allocation60_spill] sm:$0xff]  ;;  %v6040_v0 = vld [vmem:[#allocation61_spill] sm:$0xff] }
 0x1b7   :  { %1070 = vmatprep.subr.bf16.mxu0 %v6030_v63  ;;  %1111 = vmatprep.subr.bf16.mxu1 %v6031_v48  ;;  %v6041_v63 = vld [vmem:[#allocation62_spill] sm:$0xff]  ;;  %v6042_v48 = vld [vmem:[#allocation12_spill] sm:$0xff] }
 0x1ba   :  { %1071 = vmatpush1.bf16.msra.mxu0 %v6032_v49  ;;  %1112 = vmatpush1.bf16.msra.mxu1 %v6033_v61  ;;  %v6043_v49 = vld [vmem:[#allocation13_spill] sm:$0xff]  ;;  %v6044_v61 = vld [vmem:[#allocation63_spill] sm:$0xff] }
 0x1bb   :  { %1072 = vmatprep.subr.bf16.mxu0 %v6034_v53  ;;  %1113 = vmatprep.subr.bf16.mxu1 %v6035_v55  ;;  %v162_v53 = vsub.s32 0, %v6044_v61  ;;  %v166_v55 = vsub.s32 1, %v6044_v61 }
 0x1be   :  { %1073 = vmatpush1.bf16.msra.mxu0 %v6036_v60  ;;  %1114 = vmatpush1.bf16.msra.mxu1 %v6037_v2  ;;  %v4263_v60 = vrot.slane %v158_v52, %v162_v53  ;;  %v4265_v2 = vrot.slane %v158_v52, %v166_v55  ;;  %v170_v55 = vsub.s32 2, %v6044_v61 }
 0x1bf   :  { %1074 = vmatprep.subr.bf16.mxu0 %v6038_v62  ;;  %1115 = vmatprep.subr.bf16.mxu1 %v6039_v57  ;;  %v174_v57 = vsub.s32 3, %v6044_v61 }
 0x1c0   :  { %6045 = vst [vmem:[#allocation14_spill] sm:$0xff] %v4263_v60  ;;  %v4274_v13 = vrot.slane %v158_v52, %v170_v55 }
 0x1c1   :  { %v4270_v53 = vrot.slane %v158_v52, %v174_v57 }
 0x1c2   :  { %1075 = vmatpush1.bf16.msra.mxu0 %v6040_v0  ;;  %1116 = vmatpush1.bf16.msra.mxu1 %v6041_v63  ;;  %6046 = vst [vmem:[#allocation15_spill] sm:$0xff] %v4274_v13 }
 0x1c3   :  { %1153 = vmatprep.subr.bf16.mxu0 %v6042_v48  ;;  %1194 = vmatprep.subr.bf16.mxu1 %v6043_v49 }
 0x238   :  { %v832_v62 = vpop.f32.mrb[4].mxu0  ;;  %v873_v56 = vpop.f32.mrb[4].mxu1 }
 0x239   :  { %v833_v0 = vadd.f32 %v832_v62, %v4263_v60  ;;  %v834_v63 = vpop.f32.mrb[5].mxu0  ;;  %v875_v50 = vpop.f32.mrb[5].mxu1  ;;  %v874_v60 = vadd.f32 %v873_v56, %v4274_v13 }
 0x23a   :  { %v835_v48 = vadd.f32 %v834_v63, %v4265_v2  ;;  %v836_v49 = vpop.f32.mrb[6].mxu0  ;;  %v877_v1 = vpop.f32.mrb[6].mxu1  ;;  %v876_v14 = vadd.f32 %v875_v50, %v4270_v53 }
 0x23b   :  { %v2843_v51 = vmul.f32 -1.442695, %v833_v0  ;;  %v837_v17 = vpop.f32.mrb[7].mxu0  ;;  %v878_v16 = vpop.f32.mrb[7].mxu1 }
 0x23c   :  { %v2844_v15 = vmul.f32 -1.442695, %v835_v48  ;;  %v2845_v62 = vmul.f32 -1.442695, %v876_v14 }
 0x23d   :  { %3143 = vpow2.f32 %v2843_v51 }
 0x23e   :  { %3145 = vpow2.f32 %v2844_v15 }
 0x23f   :  { %3147 = vpow2.f32 %v2845_v62 }
 0x240   :  { %3149 = vtanh.f32 %v874_v60 }
 0x247   :  { %v3144_v63 = vpop.eup %3143 }
 0x248   :  { %v3146_v49 = vpop.eup %3145  ;;  %v883_v1 = vadd.f32 1.0, %v3144_v63 }
 0x249   :  { %v889_v16 = vadd.f32 1.0, %v3146_v49  ;;  %v3148_v17 = vpop.eup %3147 }
 0x24a   :  { %3151 = vrcp.f32 %v883_v1  ;;  %v3150_v51 = vpop.eup %3149  ;;  %v896_v61 = vadd.f32 1.0, %v3148_v17 }
 0x24b   :  { %3153 = vrcp.f32 %v889_v16 }
 0x24c   :  { %3155 = vrcp.f32 %v896_v61 }
 0x254   :  { %v3152_v57 = vpop.eup %3151 }
 0x255   :  { %v3154_v0 = vpop.eup %3153  ;;  %v900_v15 = vmul.f32 %v3152_v57, %v3150_v51  ;;  %v2846_v51 = vld [vmem:[%s5650_s0 + $0x8] sm:$0xff] }
 0x256   :  { %v899_v50 = vmul.f32 0.0, %v3154_v0 }
 0x258   :  { %v4277_v52 = vadd.f32 %v900_v15, %v899_v50  ;;  %v940_v14 = vpop.f32.mrb[8].mxu0  ;;  %v981_v48 = vpop.f32.mrb[8].mxu1 }
 0x259   :  { %v942_v56 = vpop.f32.mrb[9].mxu0  ;;  %v983_v55 = vpop.f32.mrb[9].mxu1 }
 0x25a   :  { %6047 = vst [vmem:[#allocation16_spill] sm:$0xff] %v4277_v52  ;;  %3157 = vtanh.f32 %v4277_v52  ;;  %v992_v60 = vcombine.low %v940_v14, %v942_v56  ;;  %v993_v62 = vcombine.low %v981_v48, %v983_v55  ;;  %v944_v63 = vpop.f32.mrb[10].mxu0  ;;  %v985_v49 = vpop.f32.mrb[10].mxu1 }
 0x25b   :  { %v945_v1 = vpop.f32.mrb[11].mxu0  ;;  %v986_v16 = vpop.f32.mrb[11].mxu1 }
 0x25c   :  { %v1000_v13 = vrot.slane %v992_v60, %v4153_v59  ;;  %v1007_v17 = vrot.slane %v993_v62, %v4153_v59  ;;  %v3156_v50 = vpop.eup %3155 }
 0x25e   :  { %v1008_v57 = vcombine.low %v1000_v13, %v1007_v17 }
 0x260   :  { %v1010_v0 = vadd.f32 %v2846_v51, %v1008_v57 }
 0x262   :  { %v2847_v15 = vmul.f32 -1.442695, %v1010_v0  ;;  %v1018_v61 = vrot.slane %v1010_v0, 2  ;;  %v1029_v55 = vrot.slane %v1010_v0, 6  ;;  %v1026_v63 = vrot.slane %v1010_v0, 4 }
 0x264   :  { %v3158_v52 = vpop.eup %3157  ;;  %3159 = vpow2.f32 %v2847_v15  ;;  %v2848_v14 = vmul.f32 -1.442695, %v1018_v61  ;;  %v2849_v60 = vmul.f32 -1.442695, %v1029_v55 }
 0x265   :  { %v4285_v48 = vmul.f32 %v3158_v52, %v3156_v50 }
 0x266   :  { %3161 = vpow2.f32 %v2848_v14 }
 0x267   :  { %v1043_v56 = vpack.c.bf16 %v4285_v48, %v4285_v48  ;;  %3163 = vpow2.f32 %v2849_v60  ;;  %v4296_v60 = vld [vmem:[%s5651_s1] ss:$16 sps:$4 sm:$0xff]  }
 0x269   :  { %1076 = vmatprep.mubr.bf16.mxu0 %v1043_v56  ;;  %1117 = vmatprep.mubr.bf16.mxu1 %v1043_v56 }
 0x26e   :  { %v3160_v62 = vpop.eup %3159 }
 0x26f   :  { %v1014_v13 = vadd.f32 1.0, %v3160_v62  ;;  %v4308_v62 = vld [vmem:[%s5651_s1 + $0x24] ss:$16 sps:$4 sm:$0xff]  }
 0x270   :  { %v3162_v49 = vpop.eup %3161 }
 0x271   :  { %3165 = vrcp.f32 %v1014_v13  ;;  %v1023_v1 = vadd.f32 1.0, %v3162_v49  ;;  %v3164_v16 = vpop.eup %3163  ;;  %v4322_v13 = vld [vmem:[%s5651_s1 + $0x20] ss:$16 sps:$4 sm:$0xff]   ;;  %v4328_v49 = vld [vmem:[%s5651_s1 + $0x28] ss:$16 sps:$4 sm:$0xff]  }
 0x272   :  { %3167 = vtanh.f32 %v1026_v63  ;;  %v1034_v57 = vadd.f32 1.0, %v3164_v16  ;;  %v4314_v63 = vld [vmem:[%s5651_s1 + $0x2c] ss:$16 sps:$4 sm:$0xff]  }
 0x273   :  { %3169 = vrcp.f32 %v1023_v1  ;;  %v4334_v1 = vld [vmem:[%s5651_s1 + $0x44] ss:$16 sps:$4 sm:$0xff]   ;;  %v4340_v16 = vld [vmem:[%s5651_s1 + $0x4c] ss:$16 sps:$4 sm:$0xff]  }
 0x274   :  { %3171 = vrcp.f32 %v1034_v57  ;;  %v4364_v57 = vld [vmem:[%s5651_s1 + $0x6c] ss:$16 sps:$4 sm:$0xff]  }
 0x27b   :  { %v3166_v52 = vpop.eup %3165 }
 0x27c   :  { %v3168_v17 = vpop.eup %3167 }
 0x27d   :  { %v3170_v51 = vpop.eup %3169  ;;  %v1038_v61 = vmul.f32 %v3168_v17, %v3166_v52  ;;  %v4346_v52 = vld [vmem:[%s5651_s1 + $0x40] ss:$16 sps:$4 sm:$0xff]   ;;  %v4352_v17 = vld [vmem:[%s5651_s1 + $0x48] ss:$16 sps:$4 sm:$0xff]  }
 0x27e   :  { %v1037_v15 = vmul.f32 %v3170_v51, %v4160_v58  ;;  %v3172_v0 = vpop.eup %3171  ;;  %v4302_v58 = vld [vmem:[%s5651_s1 + $0x8] ss:$16 sps:$4 sm:$0xff]   ;;  %v4358_v51 = vld [vmem:[%s5651_s1 + $0x64] ss:$16 sps:$4 sm:$0xff]  }
 0x280   :  { %v4290_v50 = vadd.f32 %v1038_v61, %v1037_v15  ;;  %v4370_v15 = vld [vmem:[%s5651_s1 + $0x60] ss:$16 sps:$4 sm:$0xff]   ;;  %v4376_v61 = vld [vmem:[%s5651_s1 + $0x68] ss:$16 sps:$4 sm:$0xff]  }
 0x282   :  { %3173 = vtanh.f32 %v4290_v50 }
 0x28c   :  { %v3174_v14 = vpop.eup %3173 }
 0x28d   :  { %v1041_v56 = vmul.f32 %v3174_v14, %v3172_v0  ;;  %v4382_v0 = vld [vmem:[%s5651_s1 + $0x84] ss:$16 sps:$4 sm:$0xff]   ;;  %v4473_v14 = vld [vmem:[%s5651_s1 + $0xc] ss:$16 sps:$4 sm:$0xff]  }
 0x28e   :  { %6088 = vst [vmem:[#allocation18_spill] sm:$0xff] %v4473_v14 }
 0x28f   :  { %v1042_v55 = vpack.c.bf16 %v1041_v56, %v1041_v56 }
 0x291   :  { %1077 = vmatmul.mubr.bf16.vlgmr.msra.gmra.mrb[12].mxu0 %v1042_v55  ;;  %1118 = vmatmul.mubr.bf16.vlgmr.msra.gmra.mrb[12].mxu1 %v1042_v55 }
 0x292   :  { %1154 = vmatpush1.bf16.msra.mxu0 %v4296_v60  ;;  %1195 = vmatpush1.bf16.msra.mxu1 %v4302_v58 }
 0x293   :  { %1155 = vmatprep.subr.bf16.mxu0 %v4308_v62  ;;  %1196 = vmatprep.subr.bf16.mxu1 %v4314_v63 }
 0x294   :  { %1185 = vmatprep.mubr.bf16.mxu0 %v5992_v54  ;;  %1226 = vmatprep.mubr.bf16.mxu1 %v5992_v54 }
 0x296   :  { %1156 = vmatpush1.bf16.msra.mxu0 %v4322_v13  ;;  %1197 = vmatpush1.bf16.msra.mxu1 %v4328_v49 }
 0x297   :  { %1157 = vmatprep.subr.bf16.mxu0 %v4334_v1  ;;  %1198 = vmatprep.subr.bf16.mxu1 %v4340_v16 }
 0x29a   :  { %1158 = vmatpush1.bf16.msra.mxu0 %v4346_v52  ;;  %1199 = vmatpush1.bf16.msra.mxu1 %v4352_v17 }
 0x29b   :  { %1159 = vmatprep.subr.bf16.mxu0 %v4358_v51  ;;  %1200 = vmatprep.subr.bf16.mxu1 %v4364_v57 }
 0x29e   :  { %1160 = vmatpush1.bf16.msra.mxu0 %v4370_v15  ;;  %1201 = vmatpush1.bf16.msra.mxu1 %v4376_v61 }
 0x29f   :  { %1161 = vmatprep.subr.bf16.mxu0 %v4382_v0  ;;  %1202 = vmatprep.subr.bf16.mxu1 %v3862_v18  ;;  %v6048_v18 = vld [vmem:[#allocation24_spill] sm:$0xff] }
 0x2a2   :  { %1162 = vmatpush1.bf16.msra.mxu0 %v3867_v19  ;;  %1203 = vmatpush1.bf16.msra.mxu1 %v3872_v20  ;;  %v6049_v19 = vld [vmem:[#allocation25_spill] sm:$0xff]  ;;  %v6050_v20 = vld [vmem:[#allocation26_spill] sm:$0xff] }
 0x2a3   :  { %1163 = vmatprep.subr.bf16.mxu0 %v3879_v21  ;;  %1204 = vmatprep.subr.bf16.mxu1 %v3886_v22  ;;  %v6051_v21 = vld [vmem:[#allocation27_spill] sm:$0xff]  ;;  %v6052_v22 = vld [vmem:[#allocation28_spill] sm:$0xff] }
 0x2a6   :  { %1164 = vmatpush1.bf16.msra.mxu0 %v3891_v23  ;;  %1205 = vmatpush1.bf16.msra.mxu1 %v3898_v24  ;;  %v6053_v23 = vld [vmem:[#allocation29_spill] sm:$0xff]  ;;  %v6054_v24 = vld [vmem:[#allocation30_spill] sm:$0xff] }
 0x2a7   :  { %1165 = vmatprep.subr.bf16.mxu0 %v3903_v25  ;;  %1206 = vmatprep.subr.bf16.mxu1 %v3910_v26  ;;  %v6055_v25 = vld [vmem:[#allocation31_spill] sm:$0xff]  ;;  %v6056_v26 = vld [vmem:[#allocation32_spill] sm:$0xff] }
 0x2aa   :  { %1166 = vmatpush1.bf16.msra.mxu0 %v3915_v27  ;;  %1207 = vmatpush1.bf16.msra.mxu1 %v3920_v28  ;;  %v6057_v27 = vld [vmem:[#allocation33_spill] sm:$0xff]  ;;  %v6058_v28 = vld [vmem:[#allocation34_spill] sm:$0xff] }
 0x2ab   :  { %1167 = vmatprep.subr.bf16.mxu0 %v3927_v29  ;;  %1208 = vmatprep.subr.bf16.mxu1 %v3934_v30  ;;  %v6059_v29 = vld [vmem:[#allocation35_spill] sm:$0xff]  ;;  %v6060_v30 = vld [vmem:[#allocation36_spill] sm:$0xff] }
 0x2ae   :  { %1168 = vmatpush1.bf16.msra.mxu0 %v3939_v31  ;;  %1209 = vmatpush1.bf16.msra.mxu1 %v3944_v32  ;;  %v6061_v31 = vld [vmem:[#allocation37_spill] sm:$0xff]  ;;  %v6062_v32 = vld [vmem:[#allocation38_spill] sm:$0xff] }
 0x2af   :  { %1291 = vmatprep.subr.bf16.mxu0 %v3946_v33  ;;  %1332 = vmatprep.subr.bf16.mxu1 %v3948_v34  ;;  %v6063_v33 = vld [vmem:[#allocation39_spill] sm:$0xff]  ;;  %v6064_v34 = vld [vmem:[#allocation40_spill] sm:$0xff] }
 0x2b1   :  { %1186 = vmatmul.mubr.bf16.vlgmr.msra.gmra.mrb[16].mxu0 %v1042_v55  ;;  %1227 = vmatmul.mubr.bf16.vlgmr.msra.gmra.mrb[16].mxu1 %v1042_v55 }
 0x2b2   :  { %1292 = vmatpush1.bf16.msra.mxu0 %v3954_v35  ;;  %1333 = vmatpush1.bf16.msra.mxu1 %v3956_v36  ;;  %v6065_v35 = vld [vmem:[#allocation41_spill] sm:$0xff]  ;;  %v6066_v36 = vld [vmem:[#allocation42_spill] sm:$0xff] }
 0x2b3   :  { %1293 = vmatprep.subr.bf16.mxu0 %v3958_v37  ;;  %1334 = vmatprep.subr.bf16.mxu1 %v3960_v38  ;;  %v6067_v37 = vld [vmem:[#allocation43_spill] sm:$0xff]  ;;  %v6068_v38 = vld [vmem:[#allocation44_spill] sm:$0xff] }
 0x2b6   :  { %1294 = vmatpush1.bf16.msra.mxu0 %v3966_v39  ;;  %1335 = vmatpush1.bf16.msra.mxu1 %v3968_v40  ;;  %v6069_v39 = vld [vmem:[#allocation45_spill] sm:$0xff]  ;;  %v6070_v40 = vld [vmem:[#allocation46_spill] sm:$0xff] }
 0x2b7   :  { %1295 = vmatprep.subr.bf16.mxu0 %v3980_v41  ;;  %1336 = vmatprep.subr.bf16.mxu1 %v3982_v42  ;;  %v6071_v41 = vld [vmem:[#allocation47_spill] sm:$0xff]  ;;  %v6072_v42 = vld [vmem:[#allocation48_spill] sm:$0xff] }
 0x2ba   :  { %1296 = vmatpush1.bf16.msra.mxu0 %v3986_v43  ;;  %1337 = vmatpush1.bf16.msra.mxu1 %v3988_v44  ;;  %v6073_v43 = vld [vmem:[#allocation49_spill] sm:$0xff]  ;;  %v6074_v44 = vld [vmem:[#allocation50_spill] sm:$0xff] }
 0x2bb   :  { %1297 = vmatprep.subr.bf16.mxu0 %v3992_v45  ;;  %1338 = vmatprep.subr.bf16.mxu1 %v3994_v46  ;;  %v6075_v45 = vld [vmem:[#allocation51_spill] sm:$0xff]  ;;  %v6076_v46 = vld [vmem:[#allocation52_spill] sm:$0xff] }
 0x2be   :  { %1298 = vmatpush1.bf16.msra.mxu0 %v3996_v47  ;;  %1339 = vmatpush1.bf16.msra.mxu1 %v5993_v3  ;;  %v6077_v47 = vld [vmem:[#allocation53_spill] sm:$0xff]  ;;  %v6078_v3 = vld [vmem:[#allocation54_spill] sm:$0xff] }
 0x2bf   :  { %1299 = vmatprep.subr.bf16.mxu0 %v5994_v4  ;;  %1340 = vmatprep.subr.bf16.mxu1 %v5995_v5  ;;  %v6079_v4 = vld [vmem:[#allocation55_spill] sm:$0xff]  ;;  %v6080_v5 = vld [vmem:[#allocation56_spill] sm:$0xff] }
 0x2c2   :  { %1300 = vmatpush1.bf16.msra.mxu0 %v5996_v6  ;;  %1341 = vmatpush1.bf16.msra.mxu1 %v5997_v7  ;;  %v6081_v6 = vld [vmem:[#allocation57_spill] sm:$0xff]  ;;  %v6082_v7 = vld [vmem:[#allocation58_spill] sm:$0xff] }
 0x2c3   :  { %1301 = vmatprep.subr.bf16.mxu0 %v5998_v8  ;;  %1342 = vmatprep.subr.bf16.mxu1 %v5999_v9  ;;  %v6083_v8 = vld [vmem:[#allocation59_spill] sm:$0xff]  ;;  %v6084_v9 = vld [vmem:[#allocation60_spill] sm:$0xff] }
 0x2c6   :  { %1302 = vmatpush1.bf16.msra.mxu0 %v6000_v10  ;;  %1343 = vmatpush1.bf16.msra.mxu1 %v6001_v11  ;;  %v6085_v10 = vld [vmem:[#allocation61_spill] sm:$0xff]  ;;  %v6086_v11 = vld [vmem:[#allocation62_spill] sm:$0xff] }
 0x2c7   :  { %1303 = vmatprep.subr.bf16.mxu0 %v6002_v12  ;;  %1344 = vmatprep.subr.bf16.mxu1 %v6048_v18  ;;  %v4467_v12 = vld [vmem:[%s5651_s1 + $0x4] ss:$16 sps:$4 sm:$0xff]   ;;  %v6089_v18 = vld [vmem:[#allocation14_spill] sm:$0xff] }
 0x2c8   :  { %6087 = vst [vmem:[#allocation17_spill] sm:$0xff] %v4467_v12 }
 0x2ca   :  { %1304 = vmatpush1.bf16.msra.mxu0 %v6049_v19  ;;  %1345 = vmatpush1.bf16.msra.mxu1 %v6050_v20 }
 0x2cb   :  { %1305 = vmatprep.subr.bf16.mxu0 %v6051_v21  ;;  %1346 = vmatprep.subr.bf16.mxu1 %v6052_v22 }
 0x2ce   :  { %1306 = vmatpush1.bf16.msra.mxu0 %v6053_v23  ;;  %1347 = vmatpush1.bf16.msra.mxu1 %v6054_v24 }
 0x2cf   :  { %1307 = vmatprep.subr.bf16.mxu0 %v6055_v25  ;;  %1348 = vmatprep.subr.bf16.mxu1 %v6056_v26 }
 0x2d2   :  { %1308 = vmatpush1.bf16.msra.mxu0 %v6057_v27  ;;  %1349 = vmatpush1.bf16.msra.mxu1 %v6058_v28 }
 0x2d3   :  { %1309 = vmatprep.subr.bf16.mxu0 %v6059_v29  ;;  %1350 = vmatprep.subr.bf16.mxu1 %v6060_v30 }
 0x2d6   :  { %1310 = vmatpush1.bf16.msra.mxu0 %v6061_v31  ;;  %1351 = vmatpush1.bf16.msra.mxu1 %v6062_v32  ;;  %v6090_v31 = vld [vmem:[#allocation15_spill] sm:$0xff] }
 0x2d7   :  { %1311 = vmatprep.subr.bf16.mxu0 %v6063_v33  ;;  %1352 = vmatprep.subr.bf16.mxu1 %v6064_v34 }
 0x2da   :  { %1312 = vmatpush1.bf16.msra.mxu0 %v6065_v35  ;;  %1353 = vmatpush1.bf16.msra.mxu1 %v6066_v36 }
 0x2db   :  { %1313 = vmatprep.subr.bf16.mxu0 %v6067_v37  ;;  %1354 = vmatprep.subr.bf16.mxu1 %v6068_v38 }
 0x2de   :  { %1314 = vmatpush1.bf16.msra.mxu0 %v6069_v39  ;;  %1355 = vmatpush1.bf16.msra.mxu1 %v6070_v40 }
 0x2df   :  { %1315 = vmatprep.subr.bf16.mxu0 %v6071_v41  ;;  %1356 = vmatprep.subr.bf16.mxu1 %v6072_v42 }
 0x2e2   :  { %1316 = vmatpush1.bf16.msra.mxu0 %v6073_v43  ;;  %1357 = vmatpush1.bf16.msra.mxu1 %v6074_v44  ;;  %v6091_v43 = vld [vmem:[#allocation16_spill] sm:$0xff] }
 0x2e3   :  { %1317 = vmatprep.subr.bf16.mxu0 %v6075_v45  ;;  %1358 = vmatprep.subr.bf16.mxu1 %v6076_v46 }
 0x2e6   :  { %1318 = vmatpush1.bf16.msra.mxu0 %v6077_v47  ;;  %1359 = vmatpush1.bf16.msra.mxu1 %v6078_v3 }
 0x2e7   :  { %1319 = vmatprep.subr.bf16.mxu0 %v6079_v4  ;;  %1360 = vmatprep.subr.bf16.mxu1 %v6080_v5 }
 0x2ea   :  { %1320 = vmatpush1.bf16.msra.mxu0 %v6081_v6  ;;  %1361 = vmatpush1.bf16.msra.mxu1 %v6082_v7 }
 0x2eb   :  { %1321 = vmatprep.subr.bf16.mxu0 %v6083_v8  ;;  %1362 = vmatprep.subr.bf16.mxu1 %v6084_v9 }
 0x2ee   :  { %1322 = vmatpush1.bf16.msra.mxu0 %v6085_v10  ;;  %1363 = vmatpush1.bf16.msra.mxu1 %v6086_v11 }
 0x2ef   :  { %1400 = vmatprep.subr.bf16.mxu0 %v4467_v12  ;;  %1441 = vmatprep.subr.bf16.mxu1 %v4473_v14 }
 0x364   :  { %v1078_v56 = vpop.f32.mrb[12].mxu0  ;;  %v1119_v55 = vpop.f32.mrb[12].mxu1 }
 0x365   :  { %v1079_v19 = vadd.f32 %v1078_v56, %v6089_v18  ;;  %v1080_v20 = vpop.f32.mrb[13].mxu0  ;;  %v1121_v21 = vpop.f32.mrb[13].mxu1  ;;  %v1120_v32 = vadd.f32 %v1119_v55, %v6090_v31  ;;  %v2853_v55 = vld [vmem:[%s5650_s0 + $0x10] sm:$0xff] }
 0x366   :  { %v1081_v22 = vadd.f32 %v1080_v20, %v4265_v2  ;;  %v1082_v23 = vpop.f32.mrb[14].mxu0  ;;  %v1123_v24 = vpop.f32.mrb[14].mxu1  ;;  %v1122_v29 = vadd.f32 %v1121_v21, %v4270_v53 }
 0x367   :  { %v2850_v25 = vmul.f32 -1.442695, %v1079_v19  ;;  %v1083_v26 = vpop.f32.mrb[15].mxu0  ;;  %v1124_v27 = vpop.f32.mrb[15].mxu1 }
 0x368   :  { %v2851_v28 = vmul.f32 -1.442695, %v1081_v22  ;;  %v2852_v30 = vmul.f32 -1.442695, %v1122_v29 }
 0x369   :  { %3175 = vpow2.f32 %v2850_v25 }
 0x36a   :  { %3177 = vpow2.f32 %v2851_v28 }
 0x36b   :  { %3179 = vpow2.f32 %v2852_v30 }
 0x36c   :  { %3181 = vtanh.f32 %v1120_v32 }
 0x373   :  { %v3176_v33 = vpop.eup %3175 }
 0x374   :  { %v3178_v34 = vpop.eup %3177  ;;  %v1129_v35 = vadd.f32 1.0, %v3176_v33 }
 0x375   :  { %v1135_v36 = vadd.f32 1.0, %v3178_v34  ;;  %v3180_v37 = vpop.eup %3179 }
 0x376   :  { %3183 = vrcp.f32 %v1129_v35  ;;  %v3182_v38 = vpop.eup %3181  ;;  %v1142_v42 = vadd.f32 1.0, %v3180_v37 }
 0x377   :  { %3185 = vrcp.f32 %v1135_v36 }
 0x378   :  { %3187 = vrcp.f32 %v1142_v42 }
 0x380   :  { %v3184_v39 = vpop.eup %3183 }
 0x381   :  { %v3186_v40 = vpop.eup %3185  ;;  %v1146_v41 = vmul.f32 %v3184_v39, %v3182_v38 }
 0x382   :  { %v1145_v44 = vmul.f32 %v3186_v40, %v6091_v43  ;;  %v3188_v23 = vpop.eup %3187 }
 0x384   :  { %v4481_v45 = vadd.f32 %v1146_v41, %v1145_v44  ;;  %v1187_v46 = vpop.f32.mrb[16].mxu0  ;;  %v1228_v47 = vpop.f32.mrb[16].mxu1 }
 0x385   :  { %v1189_v3 = vpop.f32.mrb[17].mxu0  ;;  %v1230_v4 = vpop.f32.mrb[17].mxu1 }
 0x386   :  { %v1239_v5 = vcombine.low %v1187_v46, %v1189_v3  ;;  %v1240_v6 = vcombine.low %v1228_v47, %v1230_v4  ;;  %v1191_v7 = vpop.f32.mrb[18].mxu0  ;;  %v1232_v8 = vpop.f32.mrb[18].mxu1  ;;  %3189 = vtanh.f32 %v4481_v45  ;;  %v4523_v4 = vld [vmem:[%s5651_s1 + $0x80] ss:$16 sps:$4 sm:$0xff]  }
 0x387   :  { %v1192_v9 = vpop.f32.mrb[19].mxu0  ;;  %v1233_v10 = vpop.f32.mrb[19].mxu1  ;;  %v4541_v7 = vld [vmem:[%s5651_s1 + $0xac] ss:$16 sps:$4 sm:$0xff]   ;;  %v4547_v8 = vld [vmem:[%s5651_s1 + $0xa0] ss:$16 sps:$4 sm:$0xff]  }
 0x388   :  { %v1247_v11 = vrot.slane %v1239_v5, %v4153_v59  ;;  %v1254_v56 = vrot.slane %v1240_v6, %v4153_v59  ;;  %v4529_v5 = vld [vmem:[%s5651_s1 + $0x88] ss:$16 sps:$4 sm:$0xff]   ;;  %v4535_v6 = vld [vmem:[%s5651_s1 + $0xa4] ss:$16 sps:$4 sm:$0xff]  }
 0x389   :  { %v4553_v9 = vld [vmem:[%s5651_s1 + $0xa8] ss:$16 sps:$4 sm:$0xff]   ;;  %v4559_v10 = vld [vmem:[%s5651_s1 + $0xc4] ss:$16 sps:$4 sm:$0xff]  }
 0x38a   :  { %v1255_v19 = vcombine.low %v1247_v11, %v1254_v56  ;;  %v4565_v11 = vld [vmem:[%s5651_s1 + $0xcc] ss:$16 sps:$4 sm:$0xff]   ;;  %v4571_v56 = vld [vmem:[%s5651_s1 + $0xc0] ss:$16 sps:$4 sm:$0xff]  }
 0x38c   :  { %v1257_v20 = vadd.f32 %v2853_v55, %v1255_v19  ;;  %v4577_v55 = vld [vmem:[%s5651_s1 + $0xc8] ss:$16 sps:$4 sm:$0xff]   ;;  %v4583_v19 = vld [vmem:[%s5651_s1 + $0xe4] ss:$16 sps:$4 sm:$0xff]  }
 0x38e   :  { %v2854_v21 = vmul.f32 -1.442695, %v1257_v20  ;;  %v1265_v22 = vrot.slane %v1257_v20, 2  ;;  %v1276_v28 = vrot.slane %v1257_v20, 6  ;;  %v1273_v32 = vrot.slane %v1257_v20, 4 }
 0x38f   :  { %v4589_v20 = vld [vmem:[%s5651_s1 + $0xec] ss:$16 sps:$4 sm:$0xff]  }
 0x390   :  { %v3190_v24 = vpop.eup %3189  ;;  %3191 = vpow2.f32 %v2854_v21  ;;  %v2855_v25 = vmul.f32 -1.442695, %v1265_v22  ;;  %v2856_v29 = vmul.f32 -1.442695, %v1276_v28  ;;  %v4595_v21 = vld [vmem:[%s5651_s1 + $0xe0] ss:$16 sps:$4 sm:$0xff]  }
 0x391   :  { %v4489_v26 = vmul.f32 %v3190_v24, %v3188_v23  ;;  %v4601_v22 = vld [vmem:[%s5651_s1 + $0xe8] ss:$16 sps:$4 sm:$0xff]   ;;  %v4604_v23 = vld [vmem:[#allocation2 + $0x4] ss:$16 sps:$4 sm:$0xff]   ;;  %v4607_v24 = vld [vmem:[#allocation2 + $0xc] ss:$16 sps:$4 sm:$0xff]  }
 0x392   :  { %3193 = vpow2.f32 %v2855_v25  ;;  %v4610_v25 = vld [vmem:[#allocation2] ss:$16 sps:$4 sm:$0xff]   ;;  %v4616_v28 = vld [vmem:[#allocation2 + $0x24] ss:$16 sps:$4 sm:$0xff]  }
 0x393   :  { %v1290_v27 = vpack.c.bf16 %v4489_v26, %v4489_v26  ;;  %3195 = vpow2.f32 %v2856_v29  ;;  %v4619_v29 = vld [vmem:[#allocation2 + $0x2c] ss:$16 sps:$4 sm:$0xff]  }
 0x395   :  { %1323 = vmatprep.mubr.bf16.mxu0 %v1290_v27  ;;  %1364 = vmatprep.mubr.bf16.mxu1 %v1290_v27  ;;  %v4613_v27 = vld [vmem:[#allocation2 + $0x8] ss:$16 sps:$4 sm:$0xff]  }
 0x39a   :  { %v3192_v30 = vpop.eup %3191 }
 0x39b   :  { %v1261_v33 = vadd.f32 1.0, %v3192_v30  ;;  %v4622_v30 = vld [vmem:[#allocation2 + $0x20] ss:$16 sps:$4 sm:$0xff]  }
 0x39c   :  { %v3194_v34 = vpop.eup %3193 }
 0x39d   :  { %3197 = vrcp.f32 %v1261_v33  ;;  %v1270_v35 = vadd.f32 1.0, %v3194_v34  ;;  %v3196_v36 = vpop.eup %3195  ;;  %v4628_v33 = vld [vmem:[#allocation2 + $0x44] ss:$16 sps:$4 sm:$0xff]   ;;  %v4631_v34 = vld [vmem:[#allocation2 + $0x4c] ss:$16 sps:$4 sm:$0xff]  }
 0x39e   :  { %3199 = vtanh.f32 %v1273_v32  ;;  %v1281_v40 = vadd.f32 1.0, %v3196_v36  ;;  %v4625_v32 = vld [vmem:[#allocation2 + $0x28] ss:$16 sps:$4 sm:$0xff]   ;;  %6093 = vst [vmem:[#allocation20_spill] sm:$0xff] %v4628_v33  ;;  %6094 = vst [vmem:[#allocation21_spill] sm:$0xff] %v4631_v34 }
 0x39f   :  { %3201 = vrcp.f32 %v1270_v35  ;;  %6092 = vst [vmem:[#allocation19_spill] sm:$0xff] %v4625_v32  ;;  %v4634_v35 = vld [vmem:[#allocation2 + $0x40] ss:$16 sps:$4 sm:$0xff]   ;;  %v4637_v36 = vld [vmem:[#allocation2 + $0x48] ss:$16 sps:$4 sm:$0xff]  }
 0x3a0   :  { %3203 = vrcp.f32 %v1281_v40  ;;  %6095 = vst [vmem:[#allocation22_spill] sm:$0xff] %v4634_v35  ;;  %6096 = vst [vmem:[#allocation23_spill] sm:$0xff] %v4637_v36  ;;  %v4649_v40 = vld [vmem:[#allocation2 + $0x68] ss:$16 sps:$4 sm:$0xff]  }
 0x3a1   :  { %6100 = vst [vmem:[#allocation24_spill] sm:$0xff] %v4649_v40 }
 0x3a7   :  { %v3198_v37 = vpop.eup %3197 }
 0x3a8   :  { %v3200_v38 = vpop.eup %3199 }
 0x3a9   :  { %v3202_v39 = vpop.eup %3201  ;;  %v1285_v42 = vmul.f32 %v3200_v38, %v3198_v37  ;;  %v4640_v37 = vld [vmem:[#allocation2 + $0x64] ss:$16 sps:$4 sm:$0xff]   ;;  %v4643_v38 = vld [vmem:[#allocation2 + $0x6c] ss:$16 sps:$4 sm:$0xff]  }
 0x3aa   :  { %v1284_v41 = vmul.f32 %v3202_v39, %v4290_v50  ;;  %v3204_v44 = vpop.eup %3203  ;;  %v4517_v50 = vld [vmem:[%s5651_s1 + $0x8c] ss:$16 sps:$4 sm:$0xff]   ;;  %6097 = vst [vmem:[#allocation12_spill] sm:$0xff] %v4640_v37  ;;  %6098 = vst [vmem:[#allocation13_spill] sm:$0xff] %v4643_v38  ;;  %v4646_v39 = vld [vmem:[#allocation2 + $0x60] ss:$16 sps:$4 sm:$0xff]  }
 0x3ab   :  { %6099 = vst [vmem:[#allocation63_spill] sm:$0xff] %v4646_v39 }
 0x3ac   :  { %v4494_v43 = vadd.f32 %v1285_v42, %v1284_v41  ;;  %v4652_v41 = vld [vmem:[#allocation2 + $0x84] ss:$16 sps:$4 sm:$0xff]   ;;  %v4655_v42 = vld [vmem:[#allocation2 + $0x8c] ss:$16 sps:$4 sm:$0xff]  }
 0x3ad   :  { %6101 = vst [vmem:[#allocation25_spill] sm:$0xff] %v4652_v41  ;;  %6102 = vst [vmem:[#allocation26_spill] sm:$0xff] %v4655_v42 }
 0x3ae   :  { %3205 = vtanh.f32 %v4494_v43 }
 0x3b8   :  { %v3206_v46 = vpop.eup %3205 }
 0x3b9   :  { %v1288_v47 = vmul.f32 %v3206_v46, %v3204_v44  ;;  %v4658_v44 = vld [vmem:[#allocation2 + $0x80] ss:$16 sps:$4 sm:$0xff]   ;;  %v4661_v46 = vld [vmem:[#allocation2 + $0x88] ss:$16 sps:$4 sm:$0xff]  }
 0x3ba   :  { %6103 = vst [vmem:[#allocation27_spill] sm:$0xff] %v4658_v44  ;;  %6104 = vst [vmem:[#allocation28_spill] sm:$0xff] %v4661_v46 }
 0x3bb   :  { %v1289_v3 = vpack.c.bf16 %v1288_v47, %v1288_v47  ;;  %v4664_v47 = vld [vmem:[#allocation2 + $0xa4] ss:$16 sps:$4 sm:$0xff]  }
 0x3bc   :  { %6105 = vst [vmem:[#allocation29_spill] sm:$0xff] %v4664_v47 }
 0x3bd   :  { %1324 = vmatmul.mubr.bf16.vlgmr.msra.gmra.mrb[20].mxu0 %v1289_v3  ;;  %1365 = vmatmul.mubr.bf16.vlgmr.msra.gmra.mrb[20].mxu1 %v1289_v3 }
 0x3be   :  { %1401 = vmatpush1.bf16.msra.mxu0 %v4296_v60  ;;  %1442 = vmatpush1.bf16.msra.mxu1 %v4302_v58 }
 0x3bf   :  { %1402 = vmatprep.subr.bf16.mxu0 %v4308_v62  ;;  %1443 = vmatprep.subr.bf16.mxu1 %v4314_v63 }
 0x3c0   :  { %1432 = vmatprep.mubr.bf16.mxu0 %v5992_v54  ;;  %1473 = vmatprep.mubr.bf16.mxu1 %v5992_v54 }
 0x3c2   :  { %1403 = vmatpush1.bf16.msra.mxu0 %v4322_v13  ;;  %1444 = vmatpush1.bf16.msra.mxu1 %v4328_v49 }
 0x3c3   :  { %1404 = vmatprep.subr.bf16.mxu0 %v4334_v1  ;;  %1445 = vmatprep.subr.bf16.mxu1 %v4340_v16 }
 0x3c6   :  { %1405 = vmatpush1.bf16.msra.mxu0 %v4346_v52  ;;  %1446 = vmatpush1.bf16.msra.mxu1 %v4352_v17 }
 0x3c7   :  { %1406 = vmatprep.subr.bf16.mxu0 %v4358_v51  ;;  %1447 = vmatprep.subr.bf16.mxu1 %v4364_v57 }
 0x3ca   :  { %1407 = vmatpush1.bf16.msra.mxu0 %v4370_v15  ;;  %1448 = vmatpush1.bf16.msra.mxu1 %v4376_v61 }
 0x3cb   :  { %1408 = vmatprep.subr.bf16.mxu0 %v4382_v0  ;;  %1449 = vmatprep.subr.bf16.mxu1 %v4517_v50 }
 0x3ce   :  { %1409 = vmatpush1.bf16.msra.mxu0 %v4523_v4  ;;  %1450 = vmatpush1.bf16.msra.mxu1 %v4529_v5 }
 0x3cf   :  { %1410 = vmatprep.subr.bf16.mxu0 %v4535_v6  ;;  %1451 = vmatprep.subr.bf16.mxu1 %v4541_v7 }
 0x3d2   :  { %1411 = vmatpush1.bf16.msra.mxu0 %v4547_v8  ;;  %1452 = vmatpush1.bf16.msra.mxu1 %v4553_v9 }
 0x3d3   :  { %1412 = vmatprep.subr.bf16.mxu0 %v4559_v10  ;;  %1453 = vmatprep.subr.bf16.mxu1 %v4565_v11 }
 0x3d6   :  { %1413 = vmatpush1.bf16.msra.mxu0 %v4571_v56  ;;  %1454 = vmatpush1.bf16.msra.mxu1 %v4577_v55 }
 0x3d7   :  { %1414 = vmatprep.subr.bf16.mxu0 %v4583_v19  ;;  %1455 = vmatprep.subr.bf16.mxu1 %v4589_v20 }
 0x3da   :  { %1415 = vmatpush1.bf16.msra.mxu0 %v4595_v21  ;;  %1456 = vmatpush1.bf16.msra.mxu1 %v4601_v22 }
 0x3db   :  { %1538 = vmatprep.subr.bf16.mxu0 %v4604_v23  ;;  %1579 = vmatprep.subr.bf16.mxu1 %v4607_v24 }
 0x3dd   :  { %1433 = vmatmul.mubr.bf16.vlgmr.msra.gmra.mrb[24].mxu0 %v1289_v3  ;;  %1474 = vmatmul.mubr.bf16.vlgmr.msra.gmra.mrb[24].mxu1 %v1289_v3  ;;  %v4667_v3 = vld [vmem:[#allocation2 + $0xac] ss:$16 sps:$4 sm:$0xff]  }
 0x3de   :  { %1539 = vmatpush1.bf16.msra.mxu0 %v4610_v25  ;;  %1580 = vmatpush1.bf16.msra.mxu1 %v4613_v27  ;;  %6106 = vst [vmem:[#allocation30_spill] sm:$0xff] %v4667_v3 }
 0x3df   :  { %1540 = vmatprep.subr.bf16.mxu0 %v4616_v28  ;;  %1581 = vmatprep.subr.bf16.mxu1 %v4619_v29 }
 0x3e2   :  { %1541 = vmatpush1.bf16.msra.mxu0 %v4622_v30  ;;  %1582 = vmatpush1.bf16.msra.mxu1 %v4625_v32 }
 0x3e3   :  { %1542 = vmatprep.subr.bf16.mxu0 %v4628_v33  ;;  %1583 = vmatprep.subr.bf16.mxu1 %v4631_v34 }
 0x3e6   :  { %1543 = vmatpush1.bf16.msra.mxu0 %v4634_v35  ;;  %1584 = vmatpush1.bf16.msra.mxu1 %v4637_v36 }
 0x3e7   :  { %1544 = vmatprep.subr.bf16.mxu0 %v4640_v37  ;;  %1585 = vmatprep.subr.bf16.mxu1 %v4643_v38 }
 0x3ea   :  { %1545 = vmatpush1.bf16.msra.mxu0 %v4646_v39  ;;  %1586 = vmatpush1.bf16.msra.mxu1 %v4649_v40 }
 0x3eb   :  { %1546 = vmatprep.subr.bf16.mxu0 %v4652_v41  ;;  %1587 = vmatprep.subr.bf16.mxu1 %v4655_v42  ;;  %v4670_v41 = vld [vmem:[#allocation2 + $0xa0] ss:$16 sps:$4 sm:$0xff]   ;;  %v4673_v42 = vld [vmem:[#allocation2 + $0xa8] ss:$16 sps:$4 sm:$0xff]  }
 0x3ec   :  { %6107 = vst [vmem:[#allocation31_spill] sm:$0xff] %v4670_v41  ;;  %6108 = vst [vmem:[#allocation32_spill] sm:$0xff] %v4673_v42 }
 0x3ee   :  { %1547 = vmatpush1.bf16.msra.mxu0 %v4658_v44  ;;  %1588 = vmatpush1.bf16.msra.mxu1 %v4661_v46  ;;  %v4676_v44 = vld [vmem:[#allocation2 + $0xc4] ss:$16 sps:$4 sm:$0xff]   ;;  %v4679_v46 = vld [vmem:[#allocation2 + $0xcc] ss:$16 sps:$4 sm:$0xff]  }
 0x3ef   :  { %1548 = vmatprep.subr.bf16.mxu0 %v4664_v47  ;;  %1589 = vmatprep.subr.bf16.mxu1 %v4667_v3  ;;  %6109 = vst [vmem:[#allocation33_spill] sm:$0xff] %v4676_v44  ;;  %6110 = vst [vmem:[#allocation34_spill] sm:$0xff] %v4679_v46  ;;  %v4682_v47 = vld [vmem:[#allocation2 + $0xc0] ss:$16 sps:$4 sm:$0xff]   ;;  %v4685_v3 = vld [vmem:[#allocation2 + $0xc8] ss:$16 sps:$4 sm:$0xff]  }
 0x3f0   :  { %6111 = vst [vmem:[#allocation35_spill] sm:$0xff] %v4682_v47  ;;  %6112 = vst [vmem:[#allocation36_spill] sm:$0xff] %v4685_v3 }
 0x3f2   :  { %1549 = vmatpush1.bf16.msra.mxu0 %v4670_v41  ;;  %1590 = vmatpush1.bf16.msra.mxu1 %v4673_v42  ;;  %v4688_v41 = vld [vmem:[#allocation2 + $0xe4] ss:$16 sps:$4 sm:$0xff]   ;;  %v4691_v42 = vld [vmem:[#allocation2 + $0xec] ss:$16 sps:$4 sm:$0xff]  }
 0x3f3   :  { %1550 = vmatprep.subr.bf16.mxu0 %v4676_v44  ;;  %1591 = vmatprep.subr.bf16.mxu1 %v4679_v46  ;;  %6113 = vst [vmem:[#allocation37_spill] sm:$0xff] %v4688_v41  ;;  %6114 = vst [vmem:[#allocation38_spill] sm:$0xff] %v4691_v42  ;;  %v4694_v44 = vld [vmem:[#allocation2 + $0xe0] ss:$16 sps:$4 sm:$0xff]   ;;  %v4697_v46 = vld [vmem:[#allocation2 + $0xe8] ss:$16 sps:$4 sm:$0xff]  }
 0x3f4   :  { %6115 = vst [vmem:[#allocation39_spill] sm:$0xff] %v4694_v44  ;;  %6116 = vst [vmem:[#allocation40_spill] sm:$0xff] %v4697_v46 }
 0x3f6   :  { %1551 = vmatpush1.bf16.msra.mxu0 %v4682_v47  ;;  %1592 = vmatpush1.bf16.msra.mxu1 %v4685_v3  ;;  %v4700_v47 = vld [vmem:[#allocation2 + $0x104] ss:$16 sps:$4 sm:$0xff]   ;;  %v4703_v3 = vld [vmem:[#allocation2 + $0x10c] ss:$16 sps:$4 sm:$0xff]  }
 0x3f7   :  { %1552 = vmatprep.subr.bf16.mxu0 %v4688_v41  ;;  %1593 = vmatprep.subr.bf16.mxu1 %v4691_v42  ;;  %6117 = vst [vmem:[#allocation41_spill] sm:$0xff] %v4700_v47  ;;  %6118 = vst [vmem:[#allocation42_spill] sm:$0xff] %v4703_v3  ;;  %v4706_v41 = vld [vmem:[#allocation2 + $0x100] ss:$16 sps:$4 sm:$0xff]   ;;  %v4709_v42 = vld [vmem:[#allocation2 + $0x108] ss:$16 sps:$4 sm:$0xff]  }
 0x3f8   :  { %6119 = vst [vmem:[#allocation43_spill] sm:$0xff] %v4706_v41  ;;  %6120 = vst [vmem:[#allocation44_spill] sm:$0xff] %v4709_v42 }
 0x3fa   :  { %1553 = vmatpush1.bf16.msra.mxu0 %v4694_v44  ;;  %1594 = vmatpush1.bf16.msra.mxu1 %v4697_v46  ;;  %v4712_v44 = vld [vmem:[#allocation2 + $0x124] ss:$16 sps:$4 sm:$0xff]   ;;  %v4715_v46 = vld [vmem:[#allocation2 + $0x12c] ss:$16 sps:$4 sm:$0xff]  }
 0x3fb   :  { %1554 = vmatprep.subr.bf16.mxu0 %v4700_v47  ;;  %1595 = vmatprep.subr.bf16.mxu1 %v4703_v3  ;;  %6121 = vst [vmem:[#allocation45_spill] sm:$0xff] %v4712_v44  ;;  %6122 = vst [vmem:[#allocation46_spill] sm:$0xff] %v4715_v46  ;;  %v4718_v47 = vld [vmem:[#allocation2 + $0x120] ss:$16 sps:$4 sm:$0xff]   ;;  %v4721_v3 = vld [vmem:[#allocation2 + $0x128] ss:$16 sps:$4 sm:$0xff]  }
 0x3fc   :  { %6123 = vst [vmem:[#allocation47_spill] sm:$0xff] %v4718_v47  ;;  %6124 = vst [vmem:[#allocation48_spill] sm:$0xff] %v4721_v3 }
 0x3fe   :  { %1555 = vmatpush1.bf16.msra.mxu0 %v4706_v41  ;;  %1596 = vmatpush1.bf16.msra.mxu1 %v4709_v42  ;;  %v4724_v41 = vld [vmem:[#allocation2 + $0x144] ss:$16 sps:$4 sm:$0xff]   ;;  %v4727_v42 = vld [vmem:[#allocation2 + $0x14c] ss:$16 sps:$4 sm:$0xff]  }
 0x3ff   :  { %1556 = vmatprep.subr.bf16.mxu0 %v4712_v44  ;;  %1597 = vmatprep.subr.bf16.mxu1 %v4715_v46  ;;  %6125 = vst [vmem:[#allocation49_spill] sm:$0xff] %v4724_v41  ;;  %6126 = vst [vmem:[#allocation50_spill] sm:$0xff] %v4727_v42  ;;  %v4730_v44 = vld [vmem:[#allocation2 + $0x140] ss:$16 sps:$4 sm:$0xff]   ;;  %v4733_v46 = vld [vmem:[#allocation2 + $0x148] ss:$16 sps:$4 sm:$0xff]  }
 0x400   :  { %6127 = vst [vmem:[#allocation51_spill] sm:$0xff] %v4730_v44  ;;  %6128 = vst [vmem:[#allocation52_spill] sm:$0xff] %v4733_v46 }
 0x402   :  { %1557 = vmatpush1.bf16.msra.mxu0 %v4718_v47  ;;  %1598 = vmatpush1.bf16.msra.mxu1 %v4721_v3  ;;  %v4736_v47 = vld [vmem:[#allocation2 + $0x164] ss:$16 sps:$4 sm:$0xff]   ;;  %v4739_v3 = vld [vmem:[#allocation2 + $0x16c] ss:$16 sps:$4 sm:$0xff]  }
 0x403   :  { %1558 = vmatprep.subr.bf16.mxu0 %v4724_v41  ;;  %1599 = vmatprep.subr.bf16.mxu1 %v4727_v42  ;;  %6129 = vst [vmem:[#allocation53_spill] sm:$0xff] %v4736_v47  ;;  %6130 = vst [vmem:[#allocation54_spill] sm:$0xff] %v4739_v3  ;;  %v4742_v41 = vld [vmem:[#allocation2 + $0x160] ss:$16 sps:$4 sm:$0xff]   ;;  %v4745_v42 = vld [vmem:[#allocation2 + $0x168] ss:$16 sps:$4 sm:$0xff]  }
 0x404   :  { %6131 = vst [vmem:[#allocation55_spill] sm:$0xff] %v4742_v41  ;;  %6132 = vst [vmem:[#allocation56_spill] sm:$0xff] %v4745_v42 }
 0x406   :  { %1559 = vmatpush1.bf16.msra.mxu0 %v4730_v44  ;;  %1600 = vmatpush1.bf16.msra.mxu1 %v4733_v46  ;;  %v4748_v44 = vld [vmem:[#allocation2 + $0x184] ss:$16 sps:$4 sm:$0xff]   ;;  %v4751_v46 = vld [vmem:[#allocation2 + $0x18c] ss:$16 sps:$4 sm:$0xff]  }
 0x407   :  { %1560 = vmatprep.subr.bf16.mxu0 %v4736_v47  ;;  %1601 = vmatprep.subr.bf16.mxu1 %v4739_v3  ;;  %6133 = vst [vmem:[#allocation57_spill] sm:$0xff] %v4748_v44  ;;  %6134 = vst [vmem:[#allocation58_spill] sm:$0xff] %v4751_v46  ;;  %v4754_v47 = vld [vmem:[#allocation2 + $0x180] ss:$16 sps:$4 sm:$0xff]   ;;  %v4757_v3 = vld [vmem:[#allocation2 + $0x188] ss:$16 sps:$4 sm:$0xff]  }
 0x408   :  { %6135 = vst [vmem:[#allocation59_spill] sm:$0xff] %v4754_v47  ;;  %6136 = vst [vmem:[#allocation60_spill] sm:$0xff] %v4757_v3 }
 0x40a   :  { %1561 = vmatpush1.bf16.msra.mxu0 %v4742_v41  ;;  %1602 = vmatpush1.bf16.msra.mxu1 %v4745_v42  ;;  %v4760_v41 = vld [vmem:[#allocation2 + $0x1a4] ss:$16 sps:$4 sm:$0xff]   ;;  %v4763_v42 = vld [vmem:[#allocation2 + $0x1ac] ss:$16 sps:$4 sm:$0xff]  }
 0x40b   :  { %1562 = vmatprep.subr.bf16.mxu0 %v4748_v44  ;;  %1603 = vmatprep.subr.bf16.mxu1 %v4751_v46  ;;  %6137 = vst [vmem:[#allocation61_spill] sm:$0xff] %v4760_v41  ;;  %6138 = vst [vmem:[#allocation62_spill] sm:$0xff] %v4763_v42  ;;  %v4766_v44 = vld [vmem:[#allocation2 + $0x1a0] ss:$16 sps:$4 sm:$0xff]   ;;  %v4769_v46 = vld [vmem:[#allocation2 + $0x1a8] ss:$16 sps:$4 sm:$0xff]  }
 0x40c   :  { %6139 = vst [vmem:[#allocation15_spill] sm:$0xff] %v4766_v44  ;;  %6140 = vst [vmem:[#allocation16_spill] sm:$0xff] %v4769_v46 }
 0x40e   :  { %1563 = vmatpush1.bf16.msra.mxu0 %v4754_v47  ;;  %1604 = vmatpush1.bf16.msra.mxu1 %v4757_v3  ;;  %v4772_v47 = vld [vmem:[#allocation2 + $0x1c4] ss:$16 sps:$4 sm:$0xff]   ;;  %v4775_v3 = vld [vmem:[#allocation2 + $0x1cc] ss:$16 sps:$4 sm:$0xff]  }
 0x40f   :  { %1564 = vmatprep.subr.bf16.mxu0 %v4760_v41  ;;  %1605 = vmatprep.subr.bf16.mxu1 %v4763_v42  ;;  %6141 = vst [vmem:[#allocation64_spill] sm:$0xff] %v4772_v47  ;;  %6142 = vst [vmem:[#allocation65_spill] sm:$0xff] %v4775_v3  ;;  %v4778_v41 = vld [vmem:[#allocation2 + $0x1c0] ss:$16 sps:$4 sm:$0xff]   ;;  %v4781_v42 = vld [vmem:[#allocation2 + $0x1c8] ss:$16 sps:$4 sm:$0xff]  }
 0x410   :  { %6143 = vst [vmem:[#allocation66_spill] sm:$0xff] %v4778_v41  ;;  %6144 = vst [vmem:[#allocation67_spill] sm:$0xff] %v4781_v42 }
 0x412   :  { %1565 = vmatpush1.bf16.msra.mxu0 %v4766_v44  ;;  %1606 = vmatpush1.bf16.msra.mxu1 %v4769_v46  ;;  %v4784_v44 = vld [vmem:[#allocation2 + $0x1e4] ss:$16 sps:$4 sm:$0xff]   ;;  %v4787_v46 = vld [vmem:[#allocation2 + $0x1ec] ss:$16 sps:$4 sm:$0xff]  }
 0x413   :  { %1566 = vmatprep.subr.bf16.mxu0 %v4772_v47  ;;  %1607 = vmatprep.subr.bf16.mxu1 %v4775_v3  ;;  %6145 = vst [vmem:[#allocation68_spill] sm:$0xff] %v4784_v44  ;;  %6146 = vst [vmem:[#allocation69_spill] sm:$0xff] %v4787_v46  ;;  %v4790_v47 = vld [vmem:[#allocation2 + $0x1e0] ss:$16 sps:$4 sm:$0xff]   ;;  %v4793_v3 = vld [vmem:[#allocation2 + $0x1e8] ss:$16 sps:$4 sm:$0xff]  }
 0x414   :  { %6147 = vst [vmem:[#allocation70_spill] sm:$0xff] %v4790_v47  ;;  %6148 = vst [vmem:[#allocation71_spill] sm:$0xff] %v4793_v3 }
 0x416   :  { %1567 = vmatpush1.bf16.msra.mxu0 %v4778_v41  ;;  %1608 = vmatpush1.bf16.msra.mxu1 %v4781_v42 }
 0x417   :  { %1568 = vmatprep.subr.bf16.mxu0 %v4784_v44  ;;  %1609 = vmatprep.subr.bf16.mxu1 %v4787_v46 }
 0x41a   :  { %1569 = vmatpush1.bf16.msra.mxu0 %v4790_v47  ;;  %1610 = vmatpush1.bf16.msra.mxu1 %v4793_v3 }
 0x41b   :  { %1647 = vmatprep.subr.bf16.mxu0 %v4467_v12  ;;  %1688 = vmatprep.subr.bf16.mxu1 %v4473_v14 }
 0x490   :  { %v1325_v42 = vpop.f32.mrb[20].mxu0  ;;  %v1366_v41 = vpop.f32.mrb[20].mxu1 }
 0x491   :  { %v1326_v44 = vadd.f32 %v1325_v42, %v6089_v18  ;;  %v1327_v40 = vpop.f32.mrb[21].mxu0  ;;  %v1368_v39 = vpop.f32.mrb[21].mxu1  ;;  %v1367_v14 = vadd.f32 %v1366_v41, %v6090_v31 }
 0x492   :  { %v1328_v46 = vadd.f32 %v1327_v40, %v4265_v2  ;;  %v1329_v38 = vpop.f32.mrb[22].mxu0  ;;  %v1370_v37 = vpop.f32.mrb[22].mxu1  ;;  %v1369_v12 = vadd.f32 %v1368_v39, %v4270_v53 }
 0x493   :  { %v2857_v36 = vmul.f32 -1.442695, %v1326_v44  ;;  %v1330_v47 = vpop.f32.mrb[23].mxu0  ;;  %v1371_v35 = vpop.f32.mrb[23].mxu1 }
 0x494   :  { %v2858_v34 = vmul.f32 -1.442695, %v1328_v46  ;;  %v2859_v3 = vmul.f32 -1.442695, %v1369_v12 }
 0x495   :  { %3207 = vpow2.f32 %v2857_v36 }
 0x496   :  { %3209 = vpow2.f32 %v2858_v34 }
 0x497   :  { %3211 = vpow2.f32 %v2859_v3 }
 0x498   :  { %3213 = vtanh.f32 %v1367_v14 }
 0x49f   :  { %v3208_v33 = vpop.eup %3207 }
 0x4a0   :  { %v3210_v32 = vpop.eup %3209  ;;  %v1376_v42 = vadd.f32 1.0, %v3208_v33 }
 0x4a1   :  { %v1382_v18 = vadd.f32 1.0, %v3210_v32  ;;  %v3212_v37 = vpop.eup %3211 }
 0x4a2   :  { %3215 = vrcp.f32 %v1376_v42  ;;  %v3214_v38 = vpop.eup %3213  ;;  %v1389_v36 = vadd.f32 1.0, %v3212_v37 }
 0x4a3   :  { %3217 = vrcp.f32 %v1382_v18 }
 0x4a4   :  { %3219 = vrcp.f32 %v1389_v36 }
 0x4ac   :  { %v3216_v40 = vpop.eup %3215 }
 0x4ad   :  { %v3218_v35 = vpop.eup %3217  ;;  %v1393_v44 = vmul.f32 %v3216_v40, %v3214_v38 }
 0x4ae   :  { %v1392_v34 = vmul.f32 %v3218_v35, %v4481_v45  ;;  %v2860_v45 = vld [vmem:[%s5650_s0 + $0x18] sm:$0xff] }
 0x4b0   :  { %v4803_v39 = vadd.f32 %v1393_v44, %v1392_v34  ;;  %v1434_v12 = vpop.f32.mrb[24].mxu0  ;;  %v1475_v41 = vpop.f32.mrb[24].mxu1 }
 0x4b1   :  { %v1436_v46 = vpop.f32.mrb[25].mxu0  ;;  %v1477_v33 = vpop.f32.mrb[25].mxu1 }
 0x4b2   :  { %v1486_v47 = vcombine.low %v1434_v12, %v1436_v46  ;;  %v1487_v14 = vcombine.low %v1475_v41, %v1477_v33  ;;  %v1438_v32 = vpop.f32.mrb[26].mxu0  ;;  %v1479_v3 = vpop.f32.mrb[26].mxu1  ;;  %3221 = vtanh.f32 %v4803_v39  ;;  %v1150_v46 = vmax.f32 %v4285_v48, %v4489_v26 }
 0x4b3   :  { %v1439_v18 = vpop.f32.mrb[27].mxu0  ;;  %v1480_v42 = vpop.f32.mrb[27].mxu1 }
 0x4b4   :  { %v1494_v38 = vrot.slane %v1486_v47, %v4153_v59  ;;  %v1501_v37 = vrot.slane %v1487_v14, %v4153_v59  ;;  %v3220_v34 = vpop.eup %3219 }
 0x4b6   :  { %v1502_v40 = vcombine.low %v1494_v38, %v1501_v37 }
 0x4b8   :  { %v1504_v35 = vadd.f32 %v2860_v45, %v1502_v40 }
 0x4ba   :  { %v2861_v44 = vmul.f32 -1.442695, %v1504_v35  ;;  %v1512_v36 = vrot.slane %v1504_v35, 2  ;;  %v1523_v32 = vrot.slane %v1504_v35, 6  ;;  %v1520_v42 = vrot.slane %v1504_v35, 4 }
 0x4bc   :  { %v3222_v12 = vpop.eup %3221  ;;  %3223 = vpow2.f32 %v2861_v44  ;;  %v2862_v41 = vmul.f32 -1.442695, %v1512_v36  ;;  %v2863_v3 = vmul.f32 -1.442695, %v1523_v32  ;;  %v6165_v32 = vld [vmem:[#allocation32_spill] sm:$0xff] }
 0x4bd   :  { %v1396_v33 = vmul.f32 %v3222_v12, %v3220_v34 }
 0x4be   :  { %3225 = vpow2.f32 %v2862_v41 }
 0x4bf   :  { %v4813_v47 = vmax.f32 %v1150_v46, %v1396_v33  ;;  %v1537_v14 = vpack.c.bf16 %v1396_v33, %v1396_v33  ;;  %3227 = vpow2.f32 %v2863_v3  ;;  %v6166_v3 = vld [vmem:[#allocation33_spill] sm:$0xff] }
 0x4c1   :  { %1570 = vmatprep.mubr.bf16.mxu0 %v1537_v14  ;;  %1611 = vmatprep.mubr.bf16.mxu1 %v1537_v14 }
 0x4c6   :  { %v3224_v18 = vpop.eup %3223 }
 0x4c7   :  { %v1508_v38 = vadd.f32 1.0, %v3224_v18  ;;  %v6167_v18 = vld [vmem:[#allocation34_spill] sm:$0xff] }
 0x4c8   :  { %v3226_v37 = vpop.eup %3225 }
 0x4c9   :  { %3229 = vrcp.f32 %v1508_v38  ;;  %v1517_v45 = vadd.f32 1.0, %v3226_v37  ;;  %v3228_v40 = vpop.eup %3227  ;;  %v6169_v38 = vld [vmem:[#allocation36_spill] sm:$0xff]  ;;  %v6170_v37 = vld [vmem:[#allocation37_spill] sm:$0xff] }
 0x4ca   :  { %3231 = vtanh.f32 %v1520_v42  ;;  %v1528_v36 = vadd.f32 1.0, %v3228_v40  ;;  %v6168_v42 = vld [vmem:[#allocation35_spill] sm:$0xff] }
 0x4cb   :  { %3233 = vrcp.f32 %v1517_v45  ;;  %v6171_v45 = vld [vmem:[#allocation38_spill] sm:$0xff]  ;;  %v6172_v40 = vld [vmem:[#allocation39_spill] sm:$0xff] }
 0x4cc   :  { %3235 = vrcp.f32 %v1528_v36  ;;  %v6176_v36 = vld [vmem:[#allocation43_spill] sm:$0xff] }
 0x4d3   :  { %v3230_v48 = vpop.eup %3229 }
 0x4d4   :  { %v3232_v26 = vpop.eup %3231 }
 0x4d5   :  { %v3234_v44 = vpop.eup %3233  ;;  %v1532_v12 = vmul.f32 %v3232_v26, %v3230_v48  ;;  %v6173_v48 = vld [vmem:[#allocation40_spill] sm:$0xff]  ;;  %v6174_v26 = vld [vmem:[#allocation41_spill] sm:$0xff] }
 0x4d6   :  { %v1531_v34 = vmul.f32 %v3234_v44, %v4494_v43  ;;  %v3236_v35 = vpop.eup %3235  ;;  %v6164_v43 = vld [vmem:[#allocation31_spill] sm:$0xff]  ;;  %v6175_v44 = vld [vmem:[#allocation42_spill] sm:$0xff] }
 0x4d8   :  { %v4816_v41 = vadd.f32 %v1532_v12, %v1531_v34  ;;  %v6177_v34 = vld [vmem:[#allocation44_spill] sm:$0xff]  ;;  %v6178_v12 = vld [vmem:[#allocation45_spill] sm:$0xff] }
 0x4da   :  { %3237 = vtanh.f32 %v4816_v41 }
 0x4e4   :  { %v3238_v46 = vpop.eup %3237 }
 0x4e5   :  { %v1535_v33 = vmul.f32 %v3238_v46, %v3236_v35  ;;  %v6179_v35 = vld [vmem:[#allocation46_spill] sm:$0xff]  ;;  %v6180_v46 = vld [vmem:[#allocation47_spill] sm:$0xff] }
 0x4e7   :  { %v1536_v14 = vpack.c.bf16 %v1535_v33, %v1535_v33  ;;  %v6181_v33 = vld [vmem:[#allocation48_spill] sm:$0xff] }
 0x4e9   :  { %1571 = vmatmul.mubr.bf16.vlgmr.msra.gmra.mrb[28].mxu0 %v1536_v14  ;;  %1612 = vmatmul.mubr.bf16.vlgmr.msra.gmra.mrb[28].mxu1 %v1536_v14 }
 0x4ea   :  { %1648 = vmatpush1.bf16.msra.mxu0 %v4296_v60  ;;  %1689 = vmatpush1.bf16.msra.mxu1 %v4302_v58  ;;  %v6149_v60 = vld [vmem:[#allocation19_spill] sm:$0xff]  ;;  %v6150_v58 = vld [vmem:[#allocation20_spill] sm:$0xff] }
 0x4eb   :  { %1649 = vmatprep.subr.bf16.mxu0 %v4308_v62  ;;  %1690 = vmatprep.subr.bf16.mxu1 %v4314_v63  ;;  %v6151_v62 = vld [vmem:[#allocation21_spill] sm:$0xff]  ;;  %v6152_v63 = vld [vmem:[#allocation22_spill] sm:$0xff] }
 0x4ec   :  { %1679 = vmatprep.mubr.bf16.mxu0 %v5992_v54  ;;  %1720 = vmatprep.mubr.bf16.mxu1 %v5992_v54 }
 0x4ee   :  { %1650 = vmatpush1.bf16.msra.mxu0 %v4322_v13  ;;  %1691 = vmatpush1.bf16.msra.mxu1 %v4328_v49  ;;  %v6153_v13 = vld [vmem:[#allocation23_spill] sm:$0xff]  ;;  %v6154_v49 = vld [vmem:[#allocation12_spill] sm:$0xff] }
 0x4ef   :  { %1651 = vmatprep.subr.bf16.mxu0 %v4334_v1  ;;  %1692 = vmatprep.subr.bf16.mxu1 %v4340_v16  ;;  %v6155_v1 = vld [vmem:[#allocation13_spill] sm:$0xff]  ;;  %v6156_v16 = vld [vmem:[#allocation63_spill] sm:$0xff] }
 0x4f2   :  { %1652 = vmatpush1.bf16.msra.mxu0 %v4346_v52  ;;  %1693 = vmatpush1.bf16.msra.mxu1 %v4352_v17  ;;  %v6157_v52 = vld [vmem:[#allocation24_spill] sm:$0xff]  ;;  %v6158_v17 = vld [vmem:[#allocation25_spill] sm:$0xff] }
 0x4f3   :  { %1653 = vmatprep.subr.bf16.mxu0 %v4358_v51  ;;  %1694 = vmatprep.subr.bf16.mxu1 %v4364_v57  ;;  %v6159_v51 = vld [vmem:[#allocation26_spill] sm:$0xff]  ;;  %v6160_v57 = vld [vmem:[#allocation27_spill] sm:$0xff] }
 0x4f6   :  { %1654 = vmatpush1.bf16.msra.mxu0 %v4370_v15  ;;  %1695 = vmatpush1.bf16.msra.mxu1 %v4376_v61  ;;  %v6161_v15 = vld [vmem:[#allocation28_spill] sm:$0xff]  ;;  %v6162_v61 = vld [vmem:[#allocation29_spill] sm:$0xff] }
 0x4f7   :  { %1655 = vmatprep.subr.bf16.mxu0 %v4382_v0  ;;  %1696 = vmatprep.subr.bf16.mxu1 %v4517_v50  ;;  %v6163_v0 = vld [vmem:[#allocation30_spill] sm:$0xff] }
 0x4fa   :  { %1656 = vmatpush1.bf16.msra.mxu0 %v4523_v4  ;;  %1697 = vmatpush1.bf16.msra.mxu1 %v4529_v5 }
 0x4fb   :  { %1657 = vmatprep.subr.bf16.mxu0 %v4535_v6  ;;  %1698 = vmatprep.subr.bf16.mxu1 %v4541_v7 }
 0x4fe   :  { %1658 = vmatpush1.bf16.msra.mxu0 %v4547_v8  ;;  %1699 = vmatpush1.bf16.msra.mxu1 %v4553_v9 }
 0x4ff   :  { %1659 = vmatprep.subr.bf16.mxu0 %v4559_v10  ;;  %1700 = vmatprep.subr.bf16.mxu1 %v4565_v11 }
 0x502   :  { %1660 = vmatpush1.bf16.msra.mxu0 %v4571_v56  ;;  %1701 = vmatpush1.bf16.msra.mxu1 %v4577_v55 }
 0x503   :  { %1661 = vmatprep.subr.bf16.mxu0 %v4583_v19  ;;  %1702 = vmatprep.subr.bf16.mxu1 %v4589_v20 }
 0x506   :  { %1662 = vmatpush1.bf16.msra.mxu0 %v4595_v21  ;;  %1703 = vmatpush1.bf16.msra.mxu1 %v4601_v22 }
 0x507   :  { %1785 = vmatprep.subr.bf16.mxu0 %v4604_v23  ;;  %1826 = vmatprep.subr.bf16.mxu1 %v4607_v24 }
 0x509   :  { %1680 = vmatmul.mubr.bf16.vlgmr.msra.gmra.mrb[32].mxu0 %v1536_v14  ;;  %1721 = vmatmul.mubr.bf16.vlgmr.msra.gmra.mrb[32].mxu1 %v1536_v14  ;;  %v6182_v14 = vld [vmem:[#allocation49_spill] sm:$0xff] }
 0x50a   :  { %1786 = vmatpush1.bf16.msra.mxu0 %v4610_v25  ;;  %1827 = vmatpush1.bf16.msra.mxu1 %v4613_v27 }
 0x50b   :  { %1787 = vmatprep.subr.bf16.mxu0 %v4616_v28  ;;  %1828 = vmatprep.subr.bf16.mxu1 %v4619_v29 }
 0x50e   :  { %1788 = vmatpush1.bf16.msra.mxu0 %v4622_v30  ;;  %1829 = vmatpush1.bf16.msra.mxu1 %v6149_v60 }
 0x50f   :  { %1789 = vmatprep.subr.bf16.mxu0 %v6150_v58  ;;  %1830 = vmatprep.subr.bf16.mxu1 %v6151_v62 }
 0x512   :  { %1790 = vmatpush1.bf16.msra.mxu0 %v6152_v63  ;;  %1831 = vmatpush1.bf16.msra.mxu1 %v6153_v13 }
 0x513   :  { %1791 = vmatprep.subr.bf16.mxu0 %v6154_v49  ;;  %1832 = vmatprep.subr.bf16.mxu1 %v6155_v1 }
 0x516   :  { %1792 = vmatpush1.bf16.msra.mxu0 %v6156_v16  ;;  %1833 = vmatpush1.bf16.msra.mxu1 %v6157_v52 }
 0x517   :  { %1793 = vmatprep.subr.bf16.mxu0 %v6158_v17  ;;  %1834 = vmatprep.subr.bf16.mxu1 %v6159_v51 }
 0x51a   :  { %1794 = vmatpush1.bf16.msra.mxu0 %v6160_v57  ;;  %1835 = vmatpush1.bf16.msra.mxu1 %v6161_v15 }
 0x51b   :  { %1795 = vmatprep.subr.bf16.mxu0 %v6162_v61  ;;  %1836 = vmatprep.subr.bf16.mxu1 %v6163_v0 }
 0x51e   :  { %1796 = vmatpush1.bf16.msra.mxu0 %v6164_v43  ;;  %1837 = vmatpush1.bf16.msra.mxu1 %v6165_v32 }
 0x51f   :  { %1797 = vmatprep.subr.bf16.mxu0 %v6166_v3  ;;  %1838 = vmatprep.subr.bf16.mxu1 %v6167_v18 }
 0x522   :  { %1798 = vmatpush1.bf16.msra.mxu0 %v6168_v42  ;;  %1839 = vmatpush1.bf16.msra.mxu1 %v6169_v38 }
 0x523   :  { %1799 = vmatprep.subr.bf16.mxu0 %v6170_v37  ;;  %1840 = vmatprep.subr.bf16.mxu1 %v6171_v45  ;;  %v6208_v45 = vld [vmem:[#allocation14_spill] sm:$0xff] }
 0x526   :  { %1800 = vmatpush1.bf16.msra.mxu0 %v6172_v40  ;;  %1841 = vmatpush1.bf16.msra.mxu1 %v6173_v48  ;;  %v6183_v40 = vld [vmem:[#allocation50_spill] sm:$0xff]  ;;  %v6184_v48 = vld [vmem:[#allocation51_spill] sm:$0xff] }
 0x527   :  { %1801 = vmatprep.subr.bf16.mxu0 %v6174_v26  ;;  %1842 = vmatprep.subr.bf16.mxu1 %v6175_v44  ;;  %v6185_v26 = vld [vmem:[#allocation52_spill] sm:$0xff]  ;;  %v6186_v44 = vld [vmem:[#allocation53_spill] sm:$0xff] }
 0x52a   :  { %1802 = vmatpush1.bf16.msra.mxu0 %v6176_v36  ;;  %1843 = vmatpush1.bf16.msra.mxu1 %v6177_v34  ;;  %v6187_v36 = vld [vmem:[#allocation54_spill] sm:$0xff]  ;;  %v6188_v34 = vld [vmem:[#allocation55_spill] sm:$0xff] }
 0x52b   :  { %1803 = vmatprep.subr.bf16.mxu0 %v6178_v12  ;;  %1844 = vmatprep.subr.bf16.mxu1 %v6179_v35  ;;  %v6189_v12 = vld [vmem:[#allocation56_spill] sm:$0xff]  ;;  %v6190_v35 = vld [vmem:[#allocation57_spill] sm:$0xff] }
 0x52e   :  { %1804 = vmatpush1.bf16.msra.mxu0 %v6180_v46  ;;  %1845 = vmatpush1.bf16.msra.mxu1 %v6181_v33  ;;  %v6191_v46 = vld [vmem:[#allocation58_spill] sm:$0xff]  ;;  %v6192_v33 = vld [vmem:[#allocation59_spill] sm:$0xff] }
 0x52f   :  { %1805 = vmatprep.subr.bf16.mxu0 %v6182_v14  ;;  %1846 = vmatprep.subr.bf16.mxu1 %v6183_v40  ;;  %v6193_v14 = vld [vmem:[#allocation60_spill] sm:$0xff]  ;;  %v6194_v40 = vld [vmem:[#allocation61_spill] sm:$0xff] }
 0x532   :  { %1806 = vmatpush1.bf16.msra.mxu0 %v6184_v48  ;;  %1847 = vmatpush1.bf16.msra.mxu1 %v6185_v26  ;;  %v6195_v48 = vld [vmem:[#allocation62_spill] sm:$0xff]  ;;  %v6196_v26 = vld [vmem:[#allocation15_spill] sm:$0xff] }
 0x533   :  { %1807 = vmatprep.subr.bf16.mxu0 %v6186_v44  ;;  %1848 = vmatprep.subr.bf16.mxu1 %v6187_v36  ;;  %v6197_v44 = vld [vmem:[#allocation16_spill] sm:$0xff] }
 0x534   :  { %v6198_v36 = vld [vmem:[#allocation64_spill] sm:$0xff] }
 0x536   :  { %1808 = vmatpush1.bf16.msra.mxu0 %v6188_v34  ;;  %1849 = vmatpush1.bf16.msra.mxu1 %v6189_v12  ;;  %v6199_v34 = vld [vmem:[#allocation65_spill] sm:$0xff]  ;;  %v6200_v12 = vld [vmem:[#allocation66_spill] sm:$0xff] }
 0x537   :  { %1809 = vmatprep.subr.bf16.mxu0 %v6190_v35  ;;  %1850 = vmatprep.subr.bf16.mxu1 %v6191_v46  ;;  %v6201_v35 = vld [vmem:[#allocation67_spill] sm:$0xff]  ;;  %v6202_v46 = vld [vmem:[#allocation68_spill] sm:$0xff] }
 0x53a   :  { %1810 = vmatpush1.bf16.msra.mxu0 %v6192_v33  ;;  %1851 = vmatpush1.bf16.msra.mxu1 %v6193_v14  ;;  %v6203_v33 = vld [vmem:[#allocation69_spill] sm:$0xff]  ;;  %v6204_v14 = vld [vmem:[#allocation70_spill] sm:$0xff] }
 0x53b   :  { %1811 = vmatprep.subr.bf16.mxu0 %v6194_v40  ;;  %1852 = vmatprep.subr.bf16.mxu1 %v6195_v48  ;;  %v6205_v40 = vld [vmem:[#allocation71_spill] sm:$0xff]  ;;  %v6206_v48 = vld [vmem:[#allocation17_spill] sm:$0xff] }
 0x53e   :  { %1812 = vmatpush1.bf16.msra.mxu0 %v6196_v26  ;;  %1853 = vmatpush1.bf16.msra.mxu1 %v6197_v44  ;;  %v6207_v26 = vld [vmem:[#allocation18_spill] sm:$0xff] }
 0x53f   :  { %1813 = vmatprep.subr.bf16.mxu0 %v6198_v36  ;;  %1854 = vmatprep.subr.bf16.mxu1 %v6199_v34 }
 0x542   :  { %1814 = vmatpush1.bf16.msra.mxu0 %v6200_v12  ;;  %1855 = vmatpush1.bf16.msra.mxu1 %v6201_v35 }
 0x543   :  { %1815 = vmatprep.subr.bf16.mxu0 %v6202_v46  ;;  %1856 = vmatprep.subr.bf16.mxu1 %v6203_v33 }
 0x546   :  { %1816 = vmatpush1.bf16.msra.mxu0 %v6204_v14  ;;  %1857 = vmatpush1.bf16.msra.mxu1 %v6205_v40 }
 0x547   :  { %1894 = vmatprep.subr.bf16.mxu0 %v6206_v48  ;;  %1935 = vmatprep.subr.bf16.mxu1 %v6207_v26 }
 0x5bc   :  { %v1572_v44 = vpop.f32.mrb[28].mxu0  ;;  %v1613_v36 = vpop.f32.mrb[28].mxu1 }
 0x5bd   :  { %v1573_v34 = vadd.f32 %v1572_v44, %v6208_v45  ;;  %v1574_v37 = vpop.f32.mrb[29].mxu0  ;;  %v1615_v12 = vpop.f32.mrb[29].mxu1  ;;  %v1614_v26 = vadd.f32 %v1613_v36, %v6090_v31 }
 0x5be   :  { %v1575_v35 = vadd.f32 %v1574_v37, %v4265_v2  ;;  %v1576_v38 = vpop.f32.mrb[30].mxu0  ;;  %v1617_v46 = vpop.f32.mrb[30].mxu1  ;;  %v1616_v48 = vadd.f32 %v1615_v12, %v4270_v53 }
 0x5bf   :  { %v2864_v42 = vmul.f32 -1.442695, %v1573_v34  ;;  %v1577_v33 = vpop.f32.mrb[31].mxu0  ;;  %v1618_v18 = vpop.f32.mrb[31].mxu1 }
 0x5c0   :  { %v2865_v14 = vmul.f32 -1.442695, %v1575_v35  ;;  %v2866_v40 = vmul.f32 -1.442695, %v1616_v48 }
 0x5c1   :  { %3239 = vpow2.f32 %v2864_v42 }
 0x5c2   :  { %3241 = vpow2.f32 %v2865_v14 }
 0x5c3   :  { %3243 = vpow2.f32 %v2866_v40 }
 0x5c4   :  { %3245 = vtanh.f32 %v1614_v26 }
 0x5cb   :  { %v3240_v3 = vpop.eup %3239 }
 0x5cc   :  { %v3242_v32 = vpop.eup %3241  ;;  %v1623_v44 = vadd.f32 1.0, %v3240_v3 }
 0x5cd   :  { %v1629_v45 = vadd.f32 1.0, %v3242_v32  ;;  %v3244_v38 = vpop.eup %3243 }
 0x5ce   :  { %3247 = vrcp.f32 %v1623_v44  ;;  %v3246_v37 = vpop.eup %3245  ;;  %v1636_v42 = vadd.f32 1.0, %v3244_v38 }
 0x5cf   :  { %3249 = vrcp.f32 %v1629_v45 }
 0x5d0   :  { %3251 = vrcp.f32 %v1636_v42 }
 0x5d8   :  { %v3248_v34 = vpop.eup %3247 }
 0x5d9   :  { %v3250_v18 = vpop.eup %3249  ;;  %v1640_v35 = vmul.f32 %v3248_v34, %v3246_v37 }
 0x5da   :  { %v1639_v46 = vmul.f32 %v3250_v18, %v4803_v39  ;;  %v2867_v39 = vld [vmem:[%s5650_s0 + $0x20] sm:$0xff] }
 0x5dc   :  { %v4922_v12 = vadd.f32 %v1640_v35, %v1639_v46  ;;  %v1681_v33 = vpop.f32.mrb[32].mxu0  ;;  %v1722_v36 = vpop.f32.mrb[32].mxu1 }
 0x5dd   :  { %v1683_v14 = vpop.f32.mrb[33].mxu0  ;;  %v1724_v3 = vpop.f32.mrb[33].mxu1 }
 0x5de   :  { %v1733_v40 = vcombine.low %v1681_v33, %v1683_v14  ;;  %v1734_v48 = vcombine.low %v1722_v36, %v1724_v3  ;;  %v1685_v32 = vpop.f32.mrb[34].mxu0  ;;  %v1726_v26 = vpop.f32.mrb[34].mxu1  ;;  %3253 = vtanh.f32 %v4922_v12 }
 0x5df   :  { %v1686_v45 = vpop.f32.mrb[35].mxu0  ;;  %v1727_v44 = vpop.f32.mrb[35].mxu1 }
 0x5e0   :  { %v1741_v37 = vrot.slane %v1733_v40, %v4153_v59  ;;  %v1748_v38 = vrot.slane %v1734_v48, %v4153_v59  ;;  %v3252_v46 = vpop.eup %3251 }
 0x5e2   :  { %v1749_v34 = vcombine.low %v1741_v37, %v1748_v38 }
 0x5e4   :  { %v1751_v18 = vadd.f32 %v2867_v39, %v1749_v34 }
 0x5e6   :  { %v2868_v35 = vmul.f32 -1.442695, %v1751_v18  ;;  %v1759_v42 = vrot.slane %v1751_v18, 2  ;;  %v1770_v48 = vrot.slane %v1751_v18, 6  ;;  %v1767_v45 = vrot.slane %v1751_v18, 4 }
 0x5e8   :  { %v3254_v33 = vpop.eup %3253  ;;  %3255 = vpow2.f32 %v2868_v35  ;;  %v2869_v36 = vmul.f32 -1.442695, %v1759_v42  ;;  %v2870_v32 = vmul.f32 -1.442695, %v1770_v48 }
 0x5e9   :  { %v4930_v14 = vmul.f32 %v3254_v33, %v3252_v46 }
 0x5ea   :  { %3257 = vpow2.f32 %v2869_v36 }
 0x5eb   :  { %v1784_v40 = vpack.c.bf16 %v4930_v14, %v4930_v14  ;;  %3259 = vpow2.f32 %v2870_v32 }
 0x5ed   :  { %1817 = vmatprep.mubr.bf16.mxu0 %v1784_v40  ;;  %1858 = vmatprep.mubr.bf16.mxu1 %v1784_v40 }
 0x5f2   :  { %v3256_v26 = vpop.eup %3255 }
 0x5f3   :  { %v1755_v44 = vadd.f32 1.0, %v3256_v26  ;;  %v4943_v26 = vld [vmem:[%s5651_s1] ss:$16 sps:$4 sm:$0xff]  }
 0x5f4   :  { %v3258_v37 = vpop.eup %3257 }
 0x5f5   :  { %3261 = vrcp.f32 %v1755_v44  ;;  %v1764_v38 = vadd.f32 1.0, %v3258_v37  ;;  %v3260_v39 = vpop.eup %3259  ;;  %v4961_v44 = vld [vmem:[%s5651_s1 + $0x2c] ss:$16 sps:$4 sm:$0xff]   ;;  %v4969_v37 = vld [vmem:[%s5651_s1 + $0x20] ss:$16 sps:$4 sm:$0xff]  }
 0x5f6   :  { %3263 = vtanh.f32 %v1767_v45  ;;  %v1775_v46 = vadd.f32 1.0, %v3260_v39  ;;  %v4955_v45 = vld [vmem:[%s5651_s1 + $0x24] ss:$16 sps:$4 sm:$0xff]  }
 0x5f7   :  { %3265 = vrcp.f32 %v1764_v38  ;;  %v4975_v38 = vld [vmem:[%s5651_s1 + $0x28] ss:$16 sps:$4 sm:$0xff]   ;;  %v4981_v39 = vld [vmem:[%s5651_s1 + $0x44] ss:$16 sps:$4 sm:$0xff]  }
 0x5f8   :  { %3267 = vrcp.f32 %v1775_v46  ;;  %v5005_v46 = vld [vmem:[%s5651_s1 + $0x64] ss:$16 sps:$4 sm:$0xff]  }
 0x5ff   :  { %v3262_v34 = vpop.eup %3261 }
 0x600   :  { %v3264_v35 = vpop.eup %3263 }
 0x601   :  { %v3266_v42 = vpop.eup %3265  ;;  %v1779_v36 = vmul.f32 %v3264_v35, %v3262_v34  ;;  %v4987_v34 = vld [vmem:[%s5651_s1 + $0x4c] ss:$16 sps:$4 sm:$0xff]   ;;  %v4993_v35 = vld [vmem:[%s5651_s1 + $0x40] ss:$16 sps:$4 sm:$0xff]  }
 0x602   :  { %v1778_v33 = vmul.f32 %v3266_v42, %v4816_v41  ;;  %v3268_v18 = vpop.eup %3267  ;;  %v4949_v41 = vld [vmem:[%s5651_s1 + $0x8] ss:$16 sps:$4 sm:$0xff]  }
 0x603   :  { %v4999_v42 = vld [vmem:[%s5651_s1 + $0x48] ss:$16 sps:$4 sm:$0xff]  }
 0x604   :  { %v4937_v3 = vadd.f32 %v1779_v36, %v1778_v33  ;;  %v5011_v33 = vld [vmem:[%s5651_s1 + $0x6c] ss:$16 sps:$4 sm:$0xff]   ;;  %v5017_v36 = vld [vmem:[%s5651_s1 + $0x60] ss:$16 sps:$4 sm:$0xff]  }
 0x606   :  { %3269 = vtanh.f32 %v4937_v3 }
 0x610   :  { %v3270_v40 = vpop.eup %3269 }
 0x611   :  { %v1782_v48 = vmul.f32 %v3270_v40, %v3268_v18  ;;  %v5023_v18 = vld [vmem:[%s5651_s1 + $0x68] ss:$16 sps:$4 sm:$0xff]   ;;  %v5029_v40 = vld [vmem:[%s5651_s1 + $0x84] ss:$16 sps:$4 sm:$0xff]  }
 0x613   :  { %v1783_v32 = vpack.c.bf16 %v1782_v48, %v1782_v48  ;;  %v6247_v48 = vld [vmem:[#allocation69_spill] sm:$0xff] }
 0x615   :  { %1818 = vmatmul.mubr.bf16.vlgmr.msra.gmra.mrb[36].mxu0 %v1783_v32  ;;  %1859 = vmatmul.mubr.bf16.vlgmr.msra.gmra.mrb[36].mxu1 %v1783_v32 }
 0x616   :  { %1895 = vmatpush1.bf16.msra.mxu0 %v4943_v26  ;;  %1936 = vmatpush1.bf16.msra.mxu1 %v4949_v41 }
 0x617   :  { %1896 = vmatprep.subr.bf16.mxu0 %v4955_v45  ;;  %1937 = vmatprep.subr.bf16.mxu1 %v4961_v44 }
 0x618   :  { %1926 = vmatprep.mubr.bf16.mxu0 %v5992_v54  ;;  %1967 = vmatprep.mubr.bf16.mxu1 %v5992_v54 }
 0x61a   :  { %1897 = vmatpush1.bf16.msra.mxu0 %v4969_v37  ;;  %1938 = vmatpush1.bf16.msra.mxu1 %v4975_v38 }
 0x61b   :  { %1898 = vmatprep.subr.bf16.mxu0 %v4981_v39  ;;  %1939 = vmatprep.subr.bf16.mxu1 %v4987_v34 }
 0x61e   :  { %1899 = vmatpush1.bf16.msra.mxu0 %v4993_v35  ;;  %1940 = vmatpush1.bf16.msra.mxu1 %v4999_v42 }
 0x61f   :  { %1900 = vmatprep.subr.bf16.mxu0 %v5005_v46  ;;  %1941 = vmatprep.subr.bf16.mxu1 %v5011_v33 }
 0x622   :  { %1901 = vmatpush1.bf16.msra.mxu0 %v5017_v36  ;;  %1942 = vmatpush1.bf16.msra.mxu1 %v5023_v18 }
 0x623   :  { %1902 = vmatprep.subr.bf16.mxu0 %v5029_v40  ;;  %1943 = vmatprep.subr.bf16.mxu1 %v4517_v50  ;;  %v6209_v50 = vld [vmem:[#allocation32_spill] sm:$0xff] }
 0x626   :  { %1903 = vmatpush1.bf16.msra.mxu0 %v4523_v4  ;;  %1944 = vmatpush1.bf16.msra.mxu1 %v4529_v5  ;;  %v6210_v4 = vld [vmem:[#allocation33_spill] sm:$0xff]  ;;  %v6211_v5 = vld [vmem:[#allocation34_spill] sm:$0xff] }
 0x627   :  { %1904 = vmatprep.subr.bf16.mxu0 %v4535_v6  ;;  %1945 = vmatprep.subr.bf16.mxu1 %v4541_v7  ;;  %v6212_v6 = vld [vmem:[#allocation35_spill] sm:$0xff]  ;;  %v6213_v7 = vld [vmem:[#allocation36_spill] sm:$0xff] }
 0x62a   :  { %1905 = vmatpush1.bf16.msra.mxu0 %v4547_v8  ;;  %1946 = vmatpush1.bf16.msra.mxu1 %v4553_v9  ;;  %v6214_v8 = vld [vmem:[#allocation37_spill] sm:$0xff]  ;;  %v6215_v9 = vld [vmem:[#allocation38_spill] sm:$0xff] }
 0x62b   :  { %1906 = vmatprep.subr.bf16.mxu0 %v4559_v10  ;;  %1947 = vmatprep.subr.bf16.mxu1 %v4565_v11  ;;  %v6216_v10 = vld [vmem:[#allocation39_spill] sm:$0xff]  ;;  %v6217_v11 = vld [vmem:[#allocation40_spill] sm:$0xff] }
 0x62e   :  { %1907 = vmatpush1.bf16.msra.mxu0 %v4571_v56  ;;  %1948 = vmatpush1.bf16.msra.mxu1 %v4577_v55  ;;  %v6218_v56 = vld [vmem:[#allocation41_spill] sm:$0xff]  ;;  %v6219_v55 = vld [vmem:[#allocation42_spill] sm:$0xff] }
 0x62f   :  { %1908 = vmatprep.subr.bf16.mxu0 %v4583_v19  ;;  %1949 = vmatprep.subr.bf16.mxu1 %v4589_v20  ;;  %v6220_v19 = vld [vmem:[#allocation43_spill] sm:$0xff]  ;;  %v6221_v20 = vld [vmem:[#allocation44_spill] sm:$0xff] }
 0x632   :  { %1909 = vmatpush1.bf16.msra.mxu0 %v4595_v21  ;;  %1950 = vmatpush1.bf16.msra.mxu1 %v4601_v22  ;;  %v6222_v21 = vld [vmem:[#allocation45_spill] sm:$0xff]  ;;  %v6223_v22 = vld [vmem:[#allocation46_spill] sm:$0xff] }
 0x633   :  { %2032 = vmatprep.subr.bf16.mxu0 %v4604_v23  ;;  %2073 = vmatprep.subr.bf16.mxu1 %v4607_v24  ;;  %v6224_v23 = vld [vmem:[#allocation47_spill] sm:$0xff]  ;;  %v6225_v24 = vld [vmem:[#allocation48_spill] sm:$0xff] }
 0x635   :  { %1927 = vmatmul.mubr.bf16.vlgmr.msra.gmra.mrb[40].mxu0 %v1783_v32  ;;  %1968 = vmatmul.mubr.bf16.vlgmr.msra.gmra.mrb[40].mxu1 %v1783_v32  ;;  %v6248_v32 = vld [vmem:[#allocation70_spill] sm:$0xff] }
 0x636   :  { %2033 = vmatpush1.bf16.msra.mxu0 %v4610_v25  ;;  %2074 = vmatpush1.bf16.msra.mxu1 %v4613_v27  ;;  %v6226_v25 = vld [vmem:[#allocation49_spill] sm:$0xff]  ;;  %v6227_v27 = vld [vmem:[#allocation50_spill] sm:$0xff] }
 0x637   :  { %2034 = vmatprep.subr.bf16.mxu0 %v4616_v28  ;;  %2075 = vmatprep.subr.bf16.mxu1 %v4619_v29  ;;  %v6228_v28 = vld [vmem:[#allocation51_spill] sm:$0xff]  ;;  %v6229_v29 = vld [vmem:[#allocation52_spill] sm:$0xff] }
 0x63a   :  { %2035 = vmatpush1.bf16.msra.mxu0 %v4622_v30  ;;  %2076 = vmatpush1.bf16.msra.mxu1 %v6149_v60  ;;  %v6230_v30 = vld [vmem:[#allocation53_spill] sm:$0xff]  ;;  %v6231_v60 = vld [vmem:[#allocation54_spill] sm:$0xff] }
 0x63b   :  { %2036 = vmatprep.subr.bf16.mxu0 %v6150_v58  ;;  %2077 = vmatprep.subr.bf16.mxu1 %v6151_v62  ;;  %v6232_v58 = vld [vmem:[#allocation55_spill] sm:$0xff]  ;;  %v6233_v62 = vld [vmem:[#allocation56_spill] sm:$0xff] }
 0x63e   :  { %2037 = vmatpush1.bf16.msra.mxu0 %v6152_v63  ;;  %2078 = vmatpush1.bf16.msra.mxu1 %v6153_v13  ;;  %v6234_v63 = vld [vmem:[#allocation57_spill] sm:$0xff]  ;;  %v6235_v13 = vld [vmem:[#allocation58_spill] sm:$0xff] }
 0x63f   :  { %2038 = vmatprep.subr.bf16.mxu0 %v6154_v49  ;;  %2079 = vmatprep.subr.bf16.mxu1 %v6155_v1  ;;  %v6236_v49 = vld [vmem:[#allocation59_spill] sm:$0xff]  ;;  %v6237_v1 = vld [vmem:[#allocation60_spill] sm:$0xff] }
 0x642   :  { %2039 = vmatpush1.bf16.msra.mxu0 %v6156_v16  ;;  %2080 = vmatpush1.bf16.msra.mxu1 %v6157_v52  ;;  %v6238_v16 = vld [vmem:[#allocation61_spill] sm:$0xff]  ;;  %v6239_v52 = vld [vmem:[#allocation62_spill] sm:$0xff] }
 0x643   :  { %2040 = vmatprep.subr.bf16.mxu0 %v6158_v17  ;;  %2081 = vmatprep.subr.bf16.mxu1 %v6159_v51  ;;  %v6240_v17 = vld [vmem:[#allocation15_spill] sm:$0xff]  ;;  %v6241_v51 = vld [vmem:[#allocation16_spill] sm:$0xff] }
 0x646   :  { %2041 = vmatpush1.bf16.msra.mxu0 %v6160_v57  ;;  %2082 = vmatpush1.bf16.msra.mxu1 %v6161_v15  ;;  %v6242_v57 = vld [vmem:[#allocation64_spill] sm:$0xff]  ;;  %v6243_v15 = vld [vmem:[#allocation65_spill] sm:$0xff] }
 0x647   :  { %2042 = vmatprep.subr.bf16.mxu0 %v6162_v61  ;;  %2083 = vmatprep.subr.bf16.mxu1 %v6163_v0  ;;  %v6244_v61 = vld [vmem:[#allocation66_spill] sm:$0xff]  ;;  %v6245_v0 = vld [vmem:[#allocation67_spill] sm:$0xff] }
 0x64a   :  { %2043 = vmatpush1.bf16.msra.mxu0 %v6164_v43  ;;  %2084 = vmatpush1.bf16.msra.mxu1 %v6209_v50  ;;  %v6246_v43 = vld [vmem:[#allocation68_spill] sm:$0xff]  ;;  %v6249_v50 = vld [vmem:[#allocation71_spill] sm:$0xff] }
 0x64b   :  { %2044 = vmatprep.subr.bf16.mxu0 %v6210_v4  ;;  %2085 = vmatprep.subr.bf16.mxu1 %v6211_v5  ;;  %v5114_v4 = vld [vmem:[%s5651_s1 + $0x4] ss:$16 sps:$4 sm:$0xff]   ;;  %v5120_v5 = vld [vmem:[%s5651_s1 + $0xc] ss:$16 sps:$4 sm:$0xff]  }
 0x64e   :  { %2045 = vmatpush1.bf16.msra.mxu0 %v6212_v6  ;;  %2086 = vmatpush1.bf16.msra.mxu1 %v6213_v7 }
 0x64f   :  { %2046 = vmatprep.subr.bf16.mxu0 %v6214_v8  ;;  %2087 = vmatprep.subr.bf16.mxu1 %v6215_v9  ;;  %v6250_v8 = vld [vmem:[#allocation14_spill] sm:$0xff] }
 0x652   :  { %2047 = vmatpush1.bf16.msra.mxu0 %v6216_v10  ;;  %2088 = vmatpush1.bf16.msra.mxu1 %v6217_v11 }
 0x653   :  { %2048 = vmatprep.subr.bf16.mxu0 %v6218_v56  ;;  %2089 = vmatprep.subr.bf16.mxu1 %v6219_v55 }
 0x656   :  { %2049 = vmatpush1.bf16.msra.mxu0 %v6220_v19  ;;  %2090 = vmatpush1.bf16.msra.mxu1 %v6221_v20 }
 0x657   :  { %2050 = vmatprep.subr.bf16.mxu0 %v6222_v21  ;;  %2091 = vmatprep.subr.bf16.mxu1 %v6223_v22 }
 0x65a   :  { %2051 = vmatpush1.bf16.msra.mxu0 %v6224_v23  ;;  %2092 = vmatpush1.bf16.msra.mxu1 %v6225_v24 }
 0x65b   :  { %2052 = vmatprep.subr.bf16.mxu0 %v6226_v25  ;;  %2093 = vmatprep.subr.bf16.mxu1 %v6227_v27 }
 0x65e   :  { %2053 = vmatpush1.bf16.msra.mxu0 %v6228_v28  ;;  %2094 = vmatpush1.bf16.msra.mxu1 %v6229_v29 }
 0x65f   :  { %2054 = vmatprep.subr.bf16.mxu0 %v6230_v30  ;;  %2095 = vmatprep.subr.bf16.mxu1 %v6231_v60 }
 0x662   :  { %2055 = vmatpush1.bf16.msra.mxu0 %v6232_v58  ;;  %2096 = vmatpush1.bf16.msra.mxu1 %v6233_v62 }
 0x663   :  { %2056 = vmatprep.subr.bf16.mxu0 %v6234_v63  ;;  %2097 = vmatprep.subr.bf16.mxu1 %v6235_v13 }
 0x666   :  { %2057 = vmatpush1.bf16.msra.mxu0 %v6236_v49  ;;  %2098 = vmatpush1.bf16.msra.mxu1 %v6237_v1 }
 0x667   :  { %2058 = vmatprep.subr.bf16.mxu0 %v6238_v16  ;;  %2099 = vmatprep.subr.bf16.mxu1 %v6239_v52 }
 0x66a   :  { %2059 = vmatpush1.bf16.msra.mxu0 %v6240_v17  ;;  %2100 = vmatpush1.bf16.msra.mxu1 %v6241_v51 }
 0x66b   :  { %2060 = vmatprep.subr.bf16.mxu0 %v6242_v57  ;;  %2101 = vmatprep.subr.bf16.mxu1 %v6243_v15 }
 0x66e   :  { %2061 = vmatpush1.bf16.msra.mxu0 %v6244_v61  ;;  %2102 = vmatpush1.bf16.msra.mxu1 %v6245_v0 }
 0x66f   :  { %2062 = vmatprep.subr.bf16.mxu0 %v6246_v43  ;;  %2103 = vmatprep.subr.bf16.mxu1 %v6247_v48 }
 0x672   :  { %2063 = vmatpush1.bf16.msra.mxu0 %v6248_v32  ;;  %2104 = vmatpush1.bf16.msra.mxu1 %v6249_v50 }
 0x673   :  { %2141 = vmatprep.subr.bf16.mxu0 %v5114_v4  ;;  %2182 = vmatprep.subr.bf16.mxu1 %v5120_v5 }
 0x6e8   :  { %v1819_v6 = vpop.f32.mrb[36].mxu0  ;;  %v1860_v7 = vpop.f32.mrb[36].mxu1 }
 0x6e9   :  { %v1820_v9 = vadd.f32 %v1819_v6, %v6250_v8  ;;  %v1821_v10 = vpop.f32.mrb[37].mxu0  ;;  %v1862_v11 = vpop.f32.mrb[37].mxu1  ;;  %v1861_v27 = vadd.f32 %v1860_v7, %v6090_v31 }
 0x6ea   :  { %v1822_v56 = vadd.f32 %v1821_v10, %v4265_v2  ;;  %v1823_v55 = vpop.f32.mrb[38].mxu0  ;;  %v1864_v19 = vpop.f32.mrb[38].mxu1  ;;  %v1863_v24 = vadd.f32 %v1862_v11, %v4270_v53 }
 0x6eb   :  { %v2871_v20 = vmul.f32 -1.442695, %v1820_v9  ;;  %v1824_v21 = vpop.f32.mrb[39].mxu0  ;;  %v1865_v22 = vpop.f32.mrb[39].mxu1 }
 0x6ec   :  { %v2872_v23 = vmul.f32 -1.442695, %v1822_v56  ;;  %v2873_v25 = vmul.f32 -1.442695, %v1863_v24  ;;  %v6251_v22 = vmax.f32 %v4813_v47, %v4930_v14 }
 0x6ed   :  { %3271 = vpow2.f32 %v2871_v20 }
 0x6ee   :  { %3273 = vpow2.f32 %v2872_v23 }
 0x6ef   :  { %3275 = vpow2.f32 %v2873_v25 }
 0x6f0   :  { %3277 = vtanh.f32 %v1861_v27 }
 0x6f7   :  { %v3272_v28 = vpop.eup %3271 }
 0x6f8   :  { %v3274_v29 = vpop.eup %3273  ;;  %v1870_v30 = vadd.f32 1.0, %v3272_v28 }
 0x6f9   :  { %v1876_v60 = vadd.f32 1.0, %v3274_v29  ;;  %v3276_v58 = vpop.eup %3275 }
 0x6fa   :  { %3279 = vrcp.f32 %v1870_v30  ;;  %v3278_v62 = vpop.eup %3277  ;;  %v1883_v1 = vadd.f32 1.0, %v3276_v58 }
 0x6fb   :  { %3281 = vrcp.f32 %v1876_v60 }
 0x6fc   :  { %3283 = vrcp.f32 %v1883_v1 }
 0x704   :  { %v3280_v63 = vpop.eup %3279 }
 0x705   :  { %v3282_v13 = vpop.eup %3281  ;;  %v1887_v49 = vmul.f32 %v3280_v63, %v3278_v62 }
 0x706   :  { %v1886_v16 = vmul.f32 %v3282_v13, %v4922_v12  ;;  %v2874_v12 = vld [vmem:[%s5650_s0 + $0x28] sm:$0xff]  ;;  %v3284_v55 = vpop.eup %3283 }
 0x708   :  { %v5128_v52 = vadd.f32 %v1887_v49, %v1886_v16  ;;  %v1928_v17 = vpop.f32.mrb[40].mxu0  ;;  %v1969_v51 = vpop.f32.mrb[40].mxu1 }
 0x709   :  { %v1930_v57 = vpop.f32.mrb[41].mxu0  ;;  %v1971_v15 = vpop.f32.mrb[41].mxu1 }
 0x70a   :  { %v1980_v61 = vcombine.low %v1928_v17, %v1930_v57  ;;  %v1981_v0 = vcombine.low %v1969_v51, %v1971_v15  ;;  %v1932_v43 = vpop.f32.mrb[42].mxu0  ;;  %v1973_v48 = vpop.f32.mrb[42].mxu1  ;;  %3285 = vtanh.f32 %v5128_v52 }
 0x70b   :  { %v1933_v32 = vpop.f32.mrb[43].mxu0  ;;  %v1974_v50 = vpop.f32.mrb[43].mxu1  ;;  %v5183_v43 = vld [vmem:[%s5651_s1 + $0xa4] ss:$16 sps:$4 sm:$0xff]   ;;  %v5189_v48 = vld [vmem:[%s5651_s1 + $0xac] ss:$16 sps:$4 sm:$0xff]  }
 0x70c   :  { %v1988_v6 = vrot.slane %v1980_v61, %v4153_v59  ;;  %v1995_v7 = vrot.slane %v1981_v0, %v4153_v59  ;;  %v5171_v61 = vld [vmem:[%s5651_s1 + $0x80] ss:$16 sps:$4 sm:$0xff]   ;;  %v5177_v0 = vld [vmem:[%s5651_s1 + $0x88] ss:$16 sps:$4 sm:$0xff]  }
 0x70d   :  { %v5195_v32 = vld [vmem:[%s5651_s1 + $0xa0] ss:$16 sps:$4 sm:$0xff]   ;;  %v5201_v50 = vld [vmem:[%s5651_s1 + $0xa8] ss:$16 sps:$4 sm:$0xff]  }
 0x70e   :  { %v1996_v9 = vcombine.low %v1988_v6, %v1995_v7  ;;  %v5207_v6 = vld [vmem:[%s5651_s1 + $0xc4] ss:$16 sps:$4 sm:$0xff]   ;;  %v5213_v7 = vld [vmem:[%s5651_s1 + $0xcc] ss:$16 sps:$4 sm:$0xff]  }
 0x710   :  { %v1998_v10 = vadd.f32 %v2874_v12, %v1996_v9  ;;  %v5219_v12 = vld [vmem:[%s5651_s1 + $0xc0] ss:$16 sps:$4 sm:$0xff]   ;;  %v5225_v9 = vld [vmem:[%s5651_s1 + $0xc8] ss:$16 sps:$4 sm:$0xff]  }
 0x712   :  { %v2875_v11 = vmul.f32 -1.442695, %v1998_v10  ;;  %v2006_v56 = vrot.slane %v1998_v10, 2  ;;  %v2017_v25 = vrot.slane %v1998_v10, 6  ;;  %v2014_v29 = vrot.slane %v1998_v10, 4 }
 0x713   :  { %v5231_v10 = vld [vmem:[%s5651_s1 + $0xe4] ss:$16 sps:$4 sm:$0xff]  }
 0x714   :  { %v3286_v19 = vpop.eup %3285  ;;  %3287 = vpow2.f32 %v2875_v11  ;;  %v2876_v20 = vmul.f32 -1.442695, %v2006_v56  ;;  %v2877_v27 = vmul.f32 -1.442695, %v2017_v25  ;;  %v5237_v11 = vld [vmem:[%s5651_s1 + $0xec] ss:$16 sps:$4 sm:$0xff]  }
 0x715   :  { %v1890_v21 = vmul.f32 %v3286_v19, %v3284_v55  ;;  %v5243_v56 = vld [vmem:[%s5651_s1 + $0xe0] ss:$16 sps:$4 sm:$0xff]   ;;  %v5249_v55 = vld [vmem:[%s5651_s1 + $0xe8] ss:$16 sps:$4 sm:$0xff]   ;;  %v5252_v19 = vld [vmem:[#allocation2 + $0x4] ss:$16 sps:$4 sm:$0xff]  }
 0x716   :  { %3289 = vpow2.f32 %v2876_v20  ;;  %v5255_v20 = vld [vmem:[#allocation2 + $0xc] ss:$16 sps:$4 sm:$0xff]  }
 0x717   :  { %v5139_v23 = vmax.f32 %v6251_v22, %v1890_v21  ;;  %v2031_v24 = vpack.c.bf16 %v1890_v21, %v1890_v21  ;;  %3291 = vpow2.f32 %v2877_v27  ;;  %v5258_v21 = vld [vmem:[#allocation2] ss:$16 sps:$4 sm:$0xff]   ;;  %v5261_v22 = vld [vmem:[#allocation2 + $0x8] ss:$16 sps:$4 sm:$0xff]   ;;  %v5267_v25 = vld [vmem:[#allocation2 + $0x2c] ss:$16 sps:$4 sm:$0xff]  }
 0x718   :  { %v5270_v27 = vld [vmem:[#allocation2 + $0x20] ss:$16 sps:$4 sm:$0xff]  }
 0x719   :  { %2064 = vmatprep.mubr.bf16.mxu0 %v2031_v24  ;;  %2105 = vmatprep.mubr.bf16.mxu1 %v2031_v24  ;;  %v5264_v24 = vld [vmem:[#allocation2 + $0x24] ss:$16 sps:$4 sm:$0xff]  }
 0x71e   :  { %v3288_v28 = vpop.eup %3287 }
 0x71f   :  { %v2002_v30 = vadd.f32 1.0, %v3288_v28  ;;  %v5273_v28 = vld [vmem:[#allocation2 + $0x28] ss:$16 sps:$4 sm:$0xff]  }
 0x720   :  { %v3290_v60 = vpop.eup %3289 }
 0x721   :  { %3293 = vrcp.f32 %v2002_v30  ;;  %v2011_v58 = vadd.f32 1.0, %v3290_v60  ;;  %v3292_v62 = vpop.eup %3291  ;;  %v5279_v30 = vld [vmem:[#allocation2 + $0x4c] ss:$16 sps:$4 sm:$0xff]   ;;  %v5282_v60 = vld [vmem:[#allocation2 + $0x40] ss:$16 sps:$4 sm:$0xff]  }
 0x722   :  { %3295 = vtanh.f32 %v2014_v29  ;;  %v2022_v14 = vadd.f32 1.0, %v3292_v62  ;;  %v5276_v29 = vld [vmem:[#allocation2 + $0x44] ss:$16 sps:$4 sm:$0xff]   ;;  %6253 = vst [vmem:[#allocation20_spill] sm:$0xff] %v5279_v30  ;;  %6254 = vst [vmem:[#allocation21_spill] sm:$0xff] %v5282_v60 }
 0x723   :  { %3297 = vrcp.f32 %v2011_v58  ;;  %6252 = vst [vmem:[#allocation19_spill] sm:$0xff] %v5276_v29  ;;  %v5285_v58 = vld [vmem:[#allocation2 + $0x48] ss:$16 sps:$4 sm:$0xff]   ;;  %v5288_v62 = vld [vmem:[#allocation2 + $0x64] ss:$16 sps:$4 sm:$0xff]  }
 0x724   :  { %3299 = vrcp.f32 %v2022_v14  ;;  %6255 = vst [vmem:[#allocation22_spill] sm:$0xff] %v5285_v58  ;;  %6256 = vst [vmem:[#allocation23_spill] sm:$0xff] %v5288_v62  ;;  %v5300_v14 = vld [vmem:[#allocation2 + $0x84] ss:$16 sps:$4 sm:$0xff]  }
 0x725   :  { %6260 = vst [vmem:[#allocation24_spill] sm:$0xff] %v5300_v14 }
 0x72b   :  { %v3294_v63 = vpop.eup %3293 }
 0x72c   :  { %v3296_v13 = vpop.eup %3295 }
 0x72d   :  { %v3298_v47 = vpop.eup %3297  ;;  %v2026_v1 = vmul.f32 %v3296_v13, %v3294_v63  ;;  %v5291_v63 = vld [vmem:[#allocation2 + $0x6c] ss:$16 sps:$4 sm:$0xff]   ;;  %v5294_v13 = vld [vmem:[#allocation2 + $0x60] ss:$16 sps:$4 sm:$0xff]  }
 0x72e   :  { %v2025_v49 = vmul.f32 %v3298_v47, %v4937_v3  ;;  %v3300_v17 = vpop.eup %3299  ;;  %v5165_v3 = vld [vmem:[%s5651_s1 + $0x8c] ss:$16 sps:$4 sm:$0xff]   ;;  %6257 = vst [vmem:[#allocation12_spill] sm:$0xff] %v5291_v63  ;;  %6258 = vst [vmem:[#allocation13_spill] sm:$0xff] %v5294_v13  ;;  %v5297_v47 = vld [vmem:[#allocation2 + $0x68] ss:$16 sps:$4 sm:$0xff]  }
 0x72f   :  { %6259 = vst [vmem:[#allocation63_spill] sm:$0xff] %v5297_v47 }
 0x730   :  { %v5142_v16 = vadd.f32 %v2026_v1, %v2025_v49  ;;  %v5303_v49 = vld [vmem:[#allocation2 + $0x8c] ss:$16 sps:$4 sm:$0xff]   ;;  %v5306_v1 = vld [vmem:[#allocation2 + $0x80] ss:$16 sps:$4 sm:$0xff]  }
 0x731   :  { %6261 = vst [vmem:[#allocation25_spill] sm:$0xff] %v5303_v49  ;;  %6262 = vst [vmem:[#allocation26_spill] sm:$0xff] %v5306_v1 }
 0x732   :  { %3301 = vtanh.f32 %v5142_v16 }
 0x73c   :  { %v3302_v51 = vpop.eup %3301 }
 0x73d   :  { %v2029_v57 = vmul.f32 %v3302_v51, %v3300_v17  ;;  %v5309_v17 = vld [vmem:[#allocation2 + $0x88] ss:$16 sps:$4 sm:$0xff]   ;;  %v5312_v51 = vld [vmem:[#allocation2 + $0xa4] ss:$16 sps:$4 sm:$0xff]  }
 0x73e   :  { %6263 = vst [vmem:[#allocation27_spill] sm:$0xff] %v5309_v17  ;;  %6264 = vst [vmem:[#allocation28_spill] sm:$0xff] %v5312_v51 }
 0x73f   :  { %v2030_v15 = vpack.c.bf16 %v2029_v57, %v2029_v57  ;;  %v5315_v57 = vld [vmem:[#allocation2 + $0xac] ss:$16 sps:$4 sm:$0xff]  }
 0x740   :  { %6265 = vst [vmem:[#allocation29_spill] sm:$0xff] %v5315_v57 }
 0x741   :  { %2065 = vmatmul.mubr.bf16.vlgmr.msra.gmra.mrb[44].mxu0 %v2030_v15  ;;  %2106 = vmatmul.mubr.bf16.vlgmr.msra.gmra.mrb[44].mxu1 %v2030_v15 }
 0x742   :  { %2142 = vmatpush1.bf16.msra.mxu0 %v4943_v26  ;;  %2183 = vmatpush1.bf16.msra.mxu1 %v4949_v41 }
 0x743   :  { %2143 = vmatprep.subr.bf16.mxu0 %v4955_v45  ;;  %2184 = vmatprep.subr.bf16.mxu1 %v4961_v44 }
 0x744   :  { %2173 = vmatprep.mubr.bf16.mxu0 %v5992_v54  ;;  %2214 = vmatprep.mubr.bf16.mxu1 %v5992_v54 }
 0x746   :  { %2144 = vmatpush1.bf16.msra.mxu0 %v4969_v37  ;;  %2185 = vmatpush1.bf16.msra.mxu1 %v4975_v38 }
 0x747   :  { %2145 = vmatprep.subr.bf16.mxu0 %v4981_v39  ;;  %2186 = vmatprep.subr.bf16.mxu1 %v4987_v34 }
 0x74a   :  { %2146 = vmatpush1.bf16.msra.mxu0 %v4993_v35  ;;  %2187 = vmatpush1.bf16.msra.mxu1 %v4999_v42 }
 0x74b   :  { %2147 = vmatprep.subr.bf16.mxu0 %v5005_v46  ;;  %2188 = vmatprep.subr.bf16.mxu1 %v5011_v33 }
 0x74e   :  { %2148 = vmatpush1.bf16.msra.mxu0 %v5017_v36  ;;  %2189 = vmatpush1.bf16.msra.mxu1 %v5023_v18 }
 0x74f   :  { %2149 = vmatprep.subr.bf16.mxu0 %v5029_v40  ;;  %2190 = vmatprep.subr.bf16.mxu1 %v5165_v3 }
 0x752   :  { %2150 = vmatpush1.bf16.msra.mxu0 %v5171_v61  ;;  %2191 = vmatpush1.bf16.msra.mxu1 %v5177_v0 }
 0x753   :  { %2151 = vmatprep.subr.bf16.mxu0 %v5183_v43  ;;  %2192 = vmatprep.subr.bf16.mxu1 %v5189_v48 }
 0x756   :  { %2152 = vmatpush1.bf16.msra.mxu0 %v5195_v32  ;;  %2193 = vmatpush1.bf16.msra.mxu1 %v5201_v50 }
 0x757   :  { %2153 = vmatprep.subr.bf16.mxu0 %v5207_v6  ;;  %2194 = vmatprep.subr.bf16.mxu1 %v5213_v7 }
 0x75a   :  { %2154 = vmatpush1.bf16.msra.mxu0 %v5219_v12  ;;  %2195 = vmatpush1.bf16.msra.mxu1 %v5225_v9 }
 0x75b   :  { %2155 = vmatprep.subr.bf16.mxu0 %v5231_v10  ;;  %2196 = vmatprep.subr.bf16.mxu1 %v5237_v11 }
 0x75e   :  { %2156 = vmatpush1.bf16.msra.mxu0 %v5243_v56  ;;  %2197 = vmatpush1.bf16.msra.mxu1 %v5249_v55 }
 0x75f   :  { %2279 = vmatprep.subr.bf16.mxu0 %v5252_v19  ;;  %2320 = vmatprep.subr.bf16.mxu1 %v5255_v20 }
 0x761   :  { %2174 = vmatmul.mubr.bf16.vlgmr.msra.gmra.mrb[48].mxu0 %v2030_v15  ;;  %2215 = vmatmul.mubr.bf16.vlgmr.msra.gmra.mrb[48].mxu1 %v2030_v15  ;;  %v5318_v15 = vld [vmem:[#allocation2 + $0xa0] ss:$16 sps:$4 sm:$0xff]  }
 0x762   :  { %2280 = vmatpush1.bf16.msra.mxu0 %v5258_v21  ;;  %2321 = vmatpush1.bf16.msra.mxu1 %v5261_v22  ;;  %6266 = vst [vmem:[#allocation30_spill] sm:$0xff] %v5318_v15 }
 0x763   :  { %2281 = vmatprep.subr.bf16.mxu0 %v5264_v24  ;;  %2322 = vmatprep.subr.bf16.mxu1 %v5267_v25 }
 0x766   :  { %2282 = vmatpush1.bf16.msra.mxu0 %v5270_v27  ;;  %2323 = vmatpush1.bf16.msra.mxu1 %v5273_v28 }
 0x767   :  { %2283 = vmatprep.subr.bf16.mxu0 %v5276_v29  ;;  %2324 = vmatprep.subr.bf16.mxu1 %v5279_v30 }
 0x76a   :  { %2284 = vmatpush1.bf16.msra.mxu0 %v5282_v60  ;;  %2325 = vmatpush1.bf16.msra.mxu1 %v5285_v58 }
 0x76b   :  { %2285 = vmatprep.subr.bf16.mxu0 %v5288_v62  ;;  %2326 = vmatprep.subr.bf16.mxu1 %v5291_v63 }
 0x76e   :  { %2286 = vmatpush1.bf16.msra.mxu0 %v5294_v13  ;;  %2327 = vmatpush1.bf16.msra.mxu1 %v5297_v47 }
 0x76f   :  { %2287 = vmatprep.subr.bf16.mxu0 %v5300_v14  ;;  %2328 = vmatprep.subr.bf16.mxu1 %v5303_v49  ;;  %v5321_v49 = vld [vmem:[#allocation2 + $0xa8] ss:$16 sps:$4 sm:$0xff]  }
 0x770   :  { %6267 = vst [vmem:[#allocation31_spill] sm:$0xff] %v5321_v49 }
 0x772   :  { %2288 = vmatpush1.bf16.msra.mxu0 %v5306_v1  ;;  %2329 = vmatpush1.bf16.msra.mxu1 %v5309_v17  ;;  %v5324_v1 = vld [vmem:[#allocation2 + $0xc4] ss:$16 sps:$4 sm:$0xff]   ;;  %v5327_v17 = vld [vmem:[#allocation2 + $0xcc] ss:$16 sps:$4 sm:$0xff]  }
 0x773   :  { %2289 = vmatprep.subr.bf16.mxu0 %v5312_v51  ;;  %2330 = vmatprep.subr.bf16.mxu1 %v5315_v57  ;;  %6268 = vst [vmem:[#allocation17_spill] sm:$0xff] %v5324_v1  ;;  %6269 = vst [vmem:[#allocation18_spill] sm:$0xff] %v5327_v17  ;;  %v5330_v51 = vld [vmem:[#allocation2 + $0xc0] ss:$16 sps:$4 sm:$0xff]   ;;  %v5333_v57 = vld [vmem:[#allocation2 + $0xc8] ss:$16 sps:$4 sm:$0xff]  }
 0x774   :  { %6270 = vst [vmem:[#allocation32_spill] sm:$0xff] %v5330_v51  ;;  %6271 = vst [vmem:[#allocation33_spill] sm:$0xff] %v5333_v57 }
 0x776   :  { %2290 = vmatpush1.bf16.msra.mxu0 %v5318_v15  ;;  %2331 = vmatpush1.bf16.msra.mxu1 %v5321_v49  ;;  %v5336_v15 = vld [vmem:[#allocation2 + $0xe4] ss:$16 sps:$4 sm:$0xff]   ;;  %v5339_v49 = vld [vmem:[#allocation2 + $0xec] ss:$16 sps:$4 sm:$0xff]  }
 0x777   :  { %2291 = vmatprep.subr.bf16.mxu0 %v5324_v1  ;;  %2332 = vmatprep.subr.bf16.mxu1 %v5327_v17  ;;  %6272 = vst [vmem:[#allocation34_spill] sm:$0xff] %v5336_v15  ;;  %6273 = vst [vmem:[#allocation35_spill] sm:$0xff] %v5339_v49  ;;  %v5342_v1 = vld [vmem:[#allocation2 + $0xe0] ss:$16 sps:$4 sm:$0xff]   ;;  %v5345_v17 = vld [vmem:[#allocation2 + $0xe8] ss:$16 sps:$4 sm:$0xff]  }
 0x778   :  { %6274 = vst [vmem:[#allocation36_spill] sm:$0xff] %v5342_v1  ;;  %6275 = vst [vmem:[#allocation37_spill] sm:$0xff] %v5345_v17 }
 0x77a   :  { %2292 = vmatpush1.bf16.msra.mxu0 %v5330_v51  ;;  %2333 = vmatpush1.bf16.msra.mxu1 %v5333_v57  ;;  %v5348_v51 = vld [vmem:[#allocation2 + $0x104] ss:$16 sps:$4 sm:$0xff]   ;;  %v5351_v57 = vld [vmem:[#allocation2 + $0x10c] ss:$16 sps:$4 sm:$0xff]  }
 0x77b   :  { %2293 = vmatprep.subr.bf16.mxu0 %v5336_v15  ;;  %2334 = vmatprep.subr.bf16.mxu1 %v5339_v49  ;;  %6276 = vst [vmem:[#allocation38_spill] sm:$0xff] %v5348_v51  ;;  %6277 = vst [vmem:[#allocation39_spill] sm:$0xff] %v5351_v57  ;;  %v5354_v15 = vld [vmem:[#allocation2 + $0x100] ss:$16 sps:$4 sm:$0xff]   ;;  %v5357_v49 = vld [vmem:[#allocation2 + $0x108] ss:$16 sps:$4 sm:$0xff]  }
 0x77c   :  { %6278 = vst [vmem:[#allocation40_spill] sm:$0xff] %v5354_v15  ;;  %6279 = vst [vmem:[#allocation41_spill] sm:$0xff] %v5357_v49 }
 0x77e   :  { %2294 = vmatpush1.bf16.msra.mxu0 %v5342_v1  ;;  %2335 = vmatpush1.bf16.msra.mxu1 %v5345_v17  ;;  %v5360_v1 = vld [vmem:[#allocation2 + $0x124] ss:$16 sps:$4 sm:$0xff]   ;;  %v5363_v17 = vld [vmem:[#allocation2 + $0x12c] ss:$16 sps:$4 sm:$0xff]  }
 0x77f   :  { %2295 = vmatprep.subr.bf16.mxu0 %v5348_v51  ;;  %2336 = vmatprep.subr.bf16.mxu1 %v5351_v57  ;;  %6280 = vst [vmem:[#allocation42_spill] sm:$0xff] %v5360_v1  ;;  %6281 = vst [vmem:[#allocation43_spill] sm:$0xff] %v5363_v17  ;;  %v5366_v51 = vld [vmem:[#allocation2 + $0x120] ss:$16 sps:$4 sm:$0xff]   ;;  %v5369_v57 = vld [vmem:[#allocation2 + $0x128] ss:$16 sps:$4 sm:$0xff]  }
 0x780   :  { %6282 = vst [vmem:[#allocation44_spill] sm:$0xff] %v5366_v51  ;;  %6283 = vst [vmem:[#allocation45_spill] sm:$0xff] %v5369_v57 }
 0x782   :  { %2296 = vmatpush1.bf16.msra.mxu0 %v5354_v15  ;;  %2337 = vmatpush1.bf16.msra.mxu1 %v5357_v49  ;;  %v5372_v15 = vld [vmem:[#allocation2 + $0x144] ss:$16 sps:$4 sm:$0xff]   ;;  %v5375_v49 = vld [vmem:[#allocation2 + $0x14c] ss:$16 sps:$4 sm:$0xff]  }
 0x783   :  { %2297 = vmatprep.subr.bf16.mxu0 %v5360_v1  ;;  %2338 = vmatprep.subr.bf16.mxu1 %v5363_v17  ;;  %6284 = vst [vmem:[#allocation46_spill] sm:$0xff] %v5372_v15  ;;  %6285 = vst [vmem:[#allocation47_spill] sm:$0xff] %v5375_v49  ;;  %v5378_v1 = vld [vmem:[#allocation2 + $0x140] ss:$16 sps:$4 sm:$0xff]   ;;  %v5381_v17 = vld [vmem:[#allocation2 + $0x148] ss:$16 sps:$4 sm:$0xff]  }
 0x784   :  { %6286 = vst [vmem:[#allocation48_spill] sm:$0xff] %v5378_v1  ;;  %6287 = vst [vmem:[#allocation49_spill] sm:$0xff] %v5381_v17 }
 0x786   :  { %2298 = vmatpush1.bf16.msra.mxu0 %v5366_v51  ;;  %2339 = vmatpush1.bf16.msra.mxu1 %v5369_v57  ;;  %v5384_v51 = vld [vmem:[#allocation2 + $0x164] ss:$16 sps:$4 sm:$0xff]   ;;  %v5387_v57 = vld [vmem:[#allocation2 + $0x16c] ss:$16 sps:$4 sm:$0xff]  }
 0x787   :  { %2299 = vmatprep.subr.bf16.mxu0 %v5372_v15  ;;  %2340 = vmatprep.subr.bf16.mxu1 %v5375_v49  ;;  %6288 = vst [vmem:[#allocation50_spill] sm:$0xff] %v5384_v51  ;;  %6289 = vst [vmem:[#allocation51_spill] sm:$0xff] %v5387_v57  ;;  %v5390_v15 = vld [vmem:[#allocation2 + $0x160] ss:$16 sps:$4 sm:$0xff]   ;;  %v5393_v49 = vld [vmem:[#allocation2 + $0x168] ss:$16 sps:$4 sm:$0xff]  }
 0x788   :  { %6290 = vst [vmem:[#allocation52_spill] sm:$0xff] %v5390_v15  ;;  %6291 = vst [vmem:[#allocation53_spill] sm:$0xff] %v5393_v49 }
 0x78a   :  { %2300 = vmatpush1.bf16.msra.mxu0 %v5378_v1  ;;  %2341 = vmatpush1.bf16.msra.mxu1 %v5381_v17  ;;  %v5396_v1 = vld [vmem:[#allocation2 + $0x184] ss:$16 sps:$4 sm:$0xff]   ;;  %v5399_v17 = vld [vmem:[#allocation2 + $0x18c] ss:$16 sps:$4 sm:$0xff]  }
 0x78b   :  { %2301 = vmatprep.subr.bf16.mxu0 %v5384_v51  ;;  %2342 = vmatprep.subr.bf16.mxu1 %v5387_v57  ;;  %6292 = vst [vmem:[#allocation54_spill] sm:$0xff] %v5396_v1  ;;  %6293 = vst [vmem:[#allocation55_spill] sm:$0xff] %v5399_v17  ;;  %v5402_v51 = vld [vmem:[#allocation2 + $0x180] ss:$16 sps:$4 sm:$0xff]   ;;  %v5405_v57 = vld [vmem:[#allocation2 + $0x188] ss:$16 sps:$4 sm:$0xff]  }
 0x78c   :  { %6294 = vst [vmem:[#allocation56_spill] sm:$0xff] %v5402_v51  ;;  %6295 = vst [vmem:[#allocation57_spill] sm:$0xff] %v5405_v57 }
 0x78e   :  { %2302 = vmatpush1.bf16.msra.mxu0 %v5390_v15  ;;  %2343 = vmatpush1.bf16.msra.mxu1 %v5393_v49  ;;  %v5408_v15 = vld [vmem:[#allocation2 + $0x1a4] ss:$16 sps:$4 sm:$0xff]   ;;  %v5411_v49 = vld [vmem:[#allocation2 + $0x1ac] ss:$16 sps:$4 sm:$0xff]  }
 0x78f   :  { %2303 = vmatprep.subr.bf16.mxu0 %v5396_v1  ;;  %2344 = vmatprep.subr.bf16.mxu1 %v5399_v17  ;;  %6296 = vst [vmem:[#allocation58_spill] sm:$0xff] %v5408_v15  ;;  %6297 = vst [vmem:[#allocation59_spill] sm:$0xff] %v5411_v49  ;;  %v5414_v1 = vld [vmem:[#allocation2 + $0x1a0] ss:$16 sps:$4 sm:$0xff]   ;;  %v5417_v17 = vld [vmem:[#allocation2 + $0x1a8] ss:$16 sps:$4 sm:$0xff]  }
 0x790   :  { %6298 = vst [vmem:[#allocation60_spill] sm:$0xff] %v5414_v1  ;;  %6299 = vst [vmem:[#allocation61_spill] sm:$0xff] %v5417_v17 }
 0x792   :  { %2304 = vmatpush1.bf16.msra.mxu0 %v5402_v51  ;;  %2345 = vmatpush1.bf16.msra.mxu1 %v5405_v57  ;;  %v5420_v51 = vld [vmem:[#allocation2 + $0x1c4] ss:$16 sps:$4 sm:$0xff]   ;;  %v5423_v57 = vld [vmem:[#allocation2 + $0x1cc] ss:$16 sps:$4 sm:$0xff]  }
 0x793   :  { %2305 = vmatprep.subr.bf16.mxu0 %v5408_v15  ;;  %2346 = vmatprep.subr.bf16.mxu1 %v5411_v49  ;;  %6300 = vst [vmem:[#allocation62_spill] sm:$0xff] %v5420_v51  ;;  %6301 = vst [vmem:[#allocation15_spill] sm:$0xff] %v5423_v57  ;;  %v5426_v15 = vld [vmem:[#allocation2 + $0x1c0] ss:$16 sps:$4 sm:$0xff]   ;;  %v5429_v49 = vld [vmem:[#allocation2 + $0x1c8] ss:$16 sps:$4 sm:$0xff]  }
 0x794   :  { %6302 = vst [vmem:[#allocation16_spill] sm:$0xff] %v5426_v15  ;;  %6303 = vst [vmem:[#allocation64_spill] sm:$0xff] %v5429_v49 }
 0x796   :  { %2306 = vmatpush1.bf16.msra.mxu0 %v5414_v1  ;;  %2347 = vmatpush1.bf16.msra.mxu1 %v5417_v17  ;;  %v5432_v1 = vld [vmem:[#allocation2 + $0x1e4] ss:$16 sps:$4 sm:$0xff]   ;;  %v5435_v17 = vld [vmem:[#allocation2 + $0x1ec] ss:$16 sps:$4 sm:$0xff]  }
 0x797   :  { %2307 = vmatprep.subr.bf16.mxu0 %v5420_v51  ;;  %2348 = vmatprep.subr.bf16.mxu1 %v5423_v57  ;;  %6304 = vst [vmem:[#allocation65_spill] sm:$0xff] %v5432_v1  ;;  %6305 = vst [vmem:[#allocation66_spill] sm:$0xff] %v5435_v17  ;;  %v5438_v51 = vld [vmem:[#allocation2 + $0x1e0] ss:$16 sps:$4 sm:$0xff]   ;;  %v5441_v57 = vld [vmem:[#allocation2 + $0x1e8] ss:$16 sps:$4 sm:$0xff]  }
 0x798   :  { %6306 = vst [vmem:[#allocation67_spill] sm:$0xff] %v5438_v51  ;;  %6307 = vst [vmem:[#allocation68_spill] sm:$0xff] %v5441_v57 }
 0x79a   :  { %2308 = vmatpush1.bf16.msra.mxu0 %v5426_v15  ;;  %2349 = vmatpush1.bf16.msra.mxu1 %v5429_v49 }
 0x79b   :  { %2309 = vmatprep.subr.bf16.mxu0 %v5432_v1  ;;  %2350 = vmatprep.subr.bf16.mxu1 %v5435_v17 }
 0x79e   :  { %2310 = vmatpush1.bf16.msra.mxu0 %v5438_v51  ;;  %2351 = vmatpush1.bf16.msra.mxu1 %v5441_v57 }
 0x79f   :  { %2388 = vmatprep.subr.bf16.mxu0 %v5114_v4  ;;  %2429 = vmatprep.subr.bf16.mxu1 %v5120_v5 }
 0x814   :  { %v2066_v49 = vpop.f32.mrb[44].mxu0  ;;  %v2107_v15 = vpop.f32.mrb[44].mxu1 }
 0x815   :  { %v2067_v1 = vadd.f32 %v2066_v49, %v6250_v8  ;;  %v2068_v14 = vpop.f32.mrb[45].mxu0  ;;  %v2109_v47 = vpop.f32.mrb[45].mxu1  ;;  %v2108_v5 = vadd.f32 %v2107_v15, %v6090_v31 }
 0x816   :  { %v2069_v17 = vadd.f32 %v2068_v14, %v4265_v2  ;;  %v2070_v13 = vpop.f32.mrb[46].mxu0  ;;  %v2111_v63 = vpop.f32.mrb[46].mxu1  ;;  %v2110_v4 = vadd.f32 %v2109_v47, %v4270_v53 }
 0x817   :  { %v2878_v62 = vmul.f32 -1.442695, %v2067_v1  ;;  %v2071_v51 = vpop.f32.mrb[47].mxu0  ;;  %v2112_v58 = vpop.f32.mrb[47].mxu1 }
 0x818   :  { %v2879_v60 = vmul.f32 -1.442695, %v2069_v17  ;;  %v2880_v57 = vmul.f32 -1.442695, %v2110_v4 }
 0x819   :  { %3303 = vpow2.f32 %v2878_v62 }
 0x81a   :  { %3305 = vpow2.f32 %v2879_v60 }
 0x81b   :  { %3307 = vpow2.f32 %v2880_v57 }
 0x81c   :  { %3309 = vtanh.f32 %v2108_v5 }
 0x823   :  { %v3304_v30 = vpop.eup %3303 }
 0x824   :  { %v3306_v29 = vpop.eup %3305  ;;  %v2117_v49 = vadd.f32 1.0, %v3304_v30 }
 0x825   :  { %v2123_v8 = vadd.f32 1.0, %v3306_v29  ;;  %v3308_v63 = vpop.eup %3307 }
 0x826   :  { %3311 = vrcp.f32 %v2117_v49  ;;  %v3310_v13 = vpop.eup %3309  ;;  %v2130_v62 = vadd.f32 1.0, %v3308_v63 }
 0x827   :  { %3313 = vrcp.f32 %v2123_v8 }
 0x828   :  { %3315 = vrcp.f32 %v2130_v62 }
 0x830   :  { %v3312_v14 = vpop.eup %3311 }
 0x831   :  { %v3314_v58 = vpop.eup %3313  ;;  %v2134_v1 = vmul.f32 %v3312_v14, %v3310_v13 }
 0x832   :  { %v2133_v60 = vmul.f32 %v3314_v58, %v5128_v52  ;;  %v2881_v52 = vld [vmem:[%s5650_s0 + $0x30] sm:$0xff] }
 0x834   :  { %v5451_v47 = vadd.f32 %v2134_v1, %v2133_v60  ;;  %v2175_v17 = vpop.f32.mrb[48].mxu0  ;;  %v2216_v51 = vpop.f32.mrb[48].mxu1 }
 0x835   :  { %v2177_v15 = vpop.f32.mrb[49].mxu0  ;;  %v2218_v30 = vpop.f32.mrb[49].mxu1 }
 0x836   :  { %v2227_v57 = vcombine.low %v2175_v17, %v2177_v15  ;;  %v2228_v4 = vcombine.low %v2216_v51, %v2218_v30  ;;  %v2179_v29 = vpop.f32.mrb[50].mxu0  ;;  %v2220_v5 = vpop.f32.mrb[50].mxu1  ;;  %3317 = vtanh.f32 %v5451_v47 }
 0x837   :  { %v2180_v8 = vpop.f32.mrb[51].mxu0  ;;  %v2221_v49 = vpop.f32.mrb[51].mxu1 }
 0x838   :  { %v2235_v13 = vrot.slane %v2227_v57, %v4153_v59  ;;  %v2242_v63 = vrot.slane %v2228_v4, %v4153_v59  ;;  %v3316_v60 = vpop.eup %3315 }
 0x83a   :  { %v2243_v14 = vcombine.low %v2235_v13, %v2242_v63 }
 0x83c   :  { %v2245_v58 = vadd.f32 %v2881_v52, %v2243_v14 }
 0x83e   :  { %v2882_v1 = vmul.f32 -1.442695, %v2245_v58  ;;  %v2253_v62 = vrot.slane %v2245_v58, 2  ;;  %v2264_v4 = vrot.slane %v2245_v58, 6  ;;  %v2261_v8 = vrot.slane %v2245_v58, 4 }
 0x840   :  { %v3318_v17 = vpop.eup %3317  ;;  %3319 = vpow2.f32 %v2882_v1  ;;  %v2883_v51 = vmul.f32 -1.442695, %v2253_v62  ;;  %v2884_v29 = vmul.f32 -1.442695, %v2264_v4 }
 0x841   :  { %v5459_v15 = vmul.f32 %v3318_v17, %v3316_v60 }
 0x842   :  { %3321 = vpow2.f32 %v2883_v51 }
 0x843   :  { %v2278_v57 = vpack.c.bf16 %v5459_v15, %v5459_v15  ;;  %3323 = vpow2.f32 %v2884_v29 }
 0x845   :  { %2311 = vmatprep.mubr.bf16.mxu0 %v2278_v57  ;;  %2352 = vmatprep.mubr.bf16.mxu1 %v2278_v57 }
 0x84a   :  { %v3320_v5 = vpop.eup %3319 }
 0x84b   :  { %v2249_v49 = vadd.f32 1.0, %v3320_v5  ;;  %v6348_v5 = vld [vmem:[#allocation54_spill] sm:$0xff] }
 0x84c   :  { %v3322_v13 = vpop.eup %3321 }
 0x84d   :  { %3325 = vrcp.f32 %v2249_v49  ;;  %v2258_v63 = vadd.f32 1.0, %v3322_v13  ;;  %v3324_v52 = vpop.eup %3323  ;;  %v6350_v49 = vld [vmem:[#allocation56_spill] sm:$0xff]  ;;  %v6351_v13 = vld [vmem:[#allocation57_spill] sm:$0xff] }
 0x84e   :  { %3327 = vtanh.f32 %v2261_v8  ;;  %v2269_v60 = vadd.f32 1.0, %v3324_v52  ;;  %v6349_v8 = vld [vmem:[#allocation55_spill] sm:$0xff] }
 0x84f   :  { %3329 = vrcp.f32 %v2258_v63  ;;  %v6352_v63 = vld [vmem:[#allocation58_spill] sm:$0xff]  ;;  %v6353_v52 = vld [vmem:[#allocation59_spill] sm:$0xff] }
 0x850   :  { %3331 = vrcp.f32 %v2269_v60  ;;  %v6357_v60 = vld [vmem:[#allocation15_spill] sm:$0xff] }
 0x857   :  { %v3326_v14 = vpop.eup %3325 }
 0x858   :  { %v3328_v1 = vpop.eup %3327 }
 0x859   :  { %v3330_v62 = vpop.eup %3329  ;;  %v2273_v51 = vmul.f32 %v3328_v1, %v3326_v14  ;;  %v6354_v14 = vld [vmem:[#allocation60_spill] sm:$0xff]  ;;  %v6355_v1 = vld [vmem:[#allocation61_spill] sm:$0xff] }
 0x85a   :  { %v2272_v17 = vmul.f32 %v3330_v62, %v5142_v16  ;;  %v3332_v58 = vpop.eup %3331  ;;  %v6324_v16 = vld [vmem:[#allocation17_spill] sm:$0xff]  ;;  %v6356_v62 = vld [vmem:[#allocation62_spill] sm:$0xff] }
 0x85c   :  { %v5466_v30 = vadd.f32 %v2273_v51, %v2272_v17  ;;  %v6358_v17 = vld [vmem:[#allocation16_spill] sm:$0xff] }
 0x85d   :  { %v6359_v51 = vld [vmem:[#allocation64_spill] sm:$0xff] }
 0x85e   :  { %3333 = vtanh.f32 %v5466_v30 }
 0x868   :  { %v3334_v57 = vpop.eup %3333 }
 0x869   :  { %v2276_v4 = vmul.f32 %v3334_v57, %v3332_v58  ;;  %v6360_v58 = vld [vmem:[#allocation65_spill] sm:$0xff]  ;;  %v6361_v57 = vld [vmem:[#allocation66_spill] sm:$0xff] }
 0x86b   :  { %v2277_v29 = vpack.c.bf16 %v2276_v4, %v2276_v4  ;;  %v6362_v4 = vld [vmem:[#allocation67_spill] sm:$0xff] }
 0x86d   :  { %2312 = vmatmul.mubr.bf16.vlgmr.msra.gmra.mrb[52].mxu0 %v2277_v29  ;;  %2353 = vmatmul.mubr.bf16.vlgmr.msra.gmra.mrb[52].mxu1 %v2277_v29 }
 0x86e   :  { %2389 = vmatpush1.bf16.msra.mxu0 %v4943_v26  ;;  %2430 = vmatpush1.bf16.msra.mxu1 %v4949_v41  ;;  %v6309_v26 = vld [vmem:[#allocation20_spill] sm:$0xff]  ;;  %v6310_v41 = vld [vmem:[#allocation21_spill] sm:$0xff] }
 0x86f   :  { %2390 = vmatprep.subr.bf16.mxu0 %v4955_v45  ;;  %2431 = vmatprep.subr.bf16.mxu1 %v4961_v44  ;;  %v6311_v45 = vld [vmem:[#allocation22_spill] sm:$0xff]  ;;  %v6312_v44 = vld [vmem:[#allocation23_spill] sm:$0xff] }
 0x870   :  { %2420 = vmatprep.mubr.bf16.mxu0 %v5992_v54  ;;  %2461 = vmatprep.mubr.bf16.mxu1 %v5992_v54  ;;  %v6308_v54 = vld [vmem:[#allocation19_spill] sm:$0xff] }
 0x872   :  { %2391 = vmatpush1.bf16.msra.mxu0 %v4969_v37  ;;  %2432 = vmatpush1.bf16.msra.mxu1 %v4975_v38  ;;  %v6313_v37 = vld [vmem:[#allocation12_spill] sm:$0xff]  ;;  %v6314_v38 = vld [vmem:[#allocation13_spill] sm:$0xff] }
 0x873   :  { %2392 = vmatprep.subr.bf16.mxu0 %v4981_v39  ;;  %2433 = vmatprep.subr.bf16.mxu1 %v4987_v34  ;;  %v6315_v39 = vld [vmem:[#allocation63_spill] sm:$0xff]  ;;  %v6316_v34 = vld [vmem:[#allocation24_spill] sm:$0xff] }
 0x876   :  { %2393 = vmatpush1.bf16.msra.mxu0 %v4993_v35  ;;  %2434 = vmatpush1.bf16.msra.mxu1 %v4999_v42  ;;  %v6317_v35 = vld [vmem:[#allocation25_spill] sm:$0xff]  ;;  %v6318_v42 = vld [vmem:[#allocation26_spill] sm:$0xff] }
 0x877   :  { %2394 = vmatprep.subr.bf16.mxu0 %v5005_v46  ;;  %2435 = vmatprep.subr.bf16.mxu1 %v5011_v33  ;;  %v6319_v46 = vld [vmem:[#allocation27_spill] sm:$0xff]  ;;  %v6320_v33 = vld [vmem:[#allocation28_spill] sm:$0xff] }
 0x87a   :  { %2395 = vmatpush1.bf16.msra.mxu0 %v5017_v36  ;;  %2436 = vmatpush1.bf16.msra.mxu1 %v5023_v18  ;;  %v6321_v36 = vld [vmem:[#allocation29_spill] sm:$0xff]  ;;  %v6322_v18 = vld [vmem:[#allocation30_spill] sm:$0xff] }
 0x87b   :  { %2396 = vmatprep.subr.bf16.mxu0 %v5029_v40  ;;  %2437 = vmatprep.subr.bf16.mxu1 %v5165_v3  ;;  %v6323_v40 = vld [vmem:[#allocation31_spill] sm:$0xff]  ;;  %v6325_v3 = vld [vmem:[#allocation18_spill] sm:$0xff] }
 0x87e   :  { %2397 = vmatpush1.bf16.msra.mxu0 %v5171_v61  ;;  %2438 = vmatpush1.bf16.msra.mxu1 %v5177_v0  ;;  %v6326_v61 = vld [vmem:[#allocation32_spill] sm:$0xff]  ;;  %v6327_v0 = vld [vmem:[#allocation33_spill] sm:$0xff] }
 0x87f   :  { %2398 = vmatprep.subr.bf16.mxu0 %v5183_v43  ;;  %2439 = vmatprep.subr.bf16.mxu1 %v5189_v48  ;;  %v6328_v43 = vld [vmem:[#allocation34_spill] sm:$0xff]  ;;  %v6329_v48 = vld [vmem:[#allocation35_spill] sm:$0xff] }
 0x882   :  { %2399 = vmatpush1.bf16.msra.mxu0 %v5195_v32  ;;  %2440 = vmatpush1.bf16.msra.mxu1 %v5201_v50  ;;  %v6330_v32 = vld [vmem:[#allocation36_spill] sm:$0xff]  ;;  %v6331_v50 = vld [vmem:[#allocation37_spill] sm:$0xff] }
 0x883   :  { %2400 = vmatprep.subr.bf16.mxu0 %v5207_v6  ;;  %2441 = vmatprep.subr.bf16.mxu1 %v5213_v7  ;;  %v6332_v6 = vld [vmem:[#allocation38_spill] sm:$0xff]  ;;  %v6333_v7 = vld [vmem:[#allocation39_spill] sm:$0xff] }
 0x886   :  { %2401 = vmatpush1.bf16.msra.mxu0 %v5219_v12  ;;  %2442 = vmatpush1.bf16.msra.mxu1 %v5225_v9  ;;  %v6334_v12 = vld [vmem:[#allocation40_spill] sm:$0xff]  ;;  %v6335_v9 = vld [vmem:[#allocation41_spill] sm:$0xff] }
 0x887   :  { %2402 = vmatprep.subr.bf16.mxu0 %v5231_v10  ;;  %2443 = vmatprep.subr.bf16.mxu1 %v5237_v11  ;;  %v6336_v10 = vld [vmem:[#allocation42_spill] sm:$0xff]  ;;  %v6337_v11 = vld [vmem:[#allocation43_spill] sm:$0xff] }
 0x88a   :  { %2403 = vmatpush1.bf16.msra.mxu0 %v5243_v56  ;;  %2444 = vmatpush1.bf16.msra.mxu1 %v5249_v55  ;;  %v6338_v56 = vld [vmem:[#allocation44_spill] sm:$0xff]  ;;  %v6339_v55 = vld [vmem:[#allocation45_spill] sm:$0xff] }
 0x88b   :  { %2526 = vmatprep.subr.bf16.mxu0 %v5252_v19  ;;  %2567 = vmatprep.subr.bf16.mxu1 %v5255_v20  ;;  %v6340_v19 = vld [vmem:[#allocation46_spill] sm:$0xff]  ;;  %v6341_v20 = vld [vmem:[#allocation47_spill] sm:$0xff] }
 0x88d   :  { %2421 = vmatmul.mubr.bf16.vlgmr.msra.gmra.mrb[56].mxu0 %v2277_v29  ;;  %2462 = vmatmul.mubr.bf16.vlgmr.msra.gmra.mrb[56].mxu1 %v2277_v29  ;;  %v6363_v29 = vld [vmem:[#allocation68_spill] sm:$0xff] }
 0x88e   :  { %2527 = vmatpush1.bf16.msra.mxu0 %v5258_v21  ;;  %2568 = vmatpush1.bf16.msra.mxu1 %v5261_v22  ;;  %v6342_v21 = vld [vmem:[#allocation48_spill] sm:$0xff]  ;;  %v6343_v22 = vld [vmem:[#allocation49_spill] sm:$0xff] }
 0x88f   :  { %2528 = vmatprep.subr.bf16.mxu0 %v5264_v24  ;;  %2569 = vmatprep.subr.bf16.mxu1 %v5267_v25  ;;  %v6344_v24 = vld [vmem:[#allocation50_spill] sm:$0xff]  ;;  %v6345_v25 = vld [vmem:[#allocation51_spill] sm:$0xff] }
 0x892   :  { %2529 = vmatpush1.bf16.msra.mxu0 %v5270_v27  ;;  %2570 = vmatpush1.bf16.msra.mxu1 %v5273_v28  ;;  %v6346_v27 = vld [vmem:[#allocation52_spill] sm:$0xff]  ;;  %v6347_v28 = vld [vmem:[#allocation53_spill] sm:$0xff] }
 0x893   :  { %2530 = vmatprep.subr.bf16.mxu0 %v6308_v54  ;;  %2571 = vmatprep.subr.bf16.mxu1 %v6309_v26 }
 0x896   :  { %2531 = vmatpush1.bf16.msra.mxu0 %v6310_v41  ;;  %2572 = vmatpush1.bf16.msra.mxu1 %v6311_v45  ;;  %v6364_v41 = vld [vmem:[#allocation14_spill] sm:$0xff] }
 0x897   :  { %2532 = vmatprep.subr.bf16.mxu0 %v6312_v44  ;;  %2573 = vmatprep.subr.bf16.mxu1 %v6313_v37 }
 0x89a   :  { %2533 = vmatpush1.bf16.msra.mxu0 %v6314_v38  ;;  %2574 = vmatpush1.bf16.msra.mxu1 %v6315_v39 }
 0x89b   :  { %2534 = vmatprep.subr.bf16.mxu0 %v6316_v34  ;;  %2575 = vmatprep.subr.bf16.mxu1 %v6317_v35 }
 0x89e   :  { %2535 = vmatpush1.bf16.msra.mxu0 %v6318_v42  ;;  %2576 = vmatpush1.bf16.msra.mxu1 %v6319_v46 }
 0x89f   :  { %2536 = vmatprep.subr.bf16.mxu0 %v6320_v33  ;;  %2577 = vmatprep.subr.bf16.mxu1 %v6321_v36 }
 0x8a2   :  { %2537 = vmatpush1.bf16.msra.mxu0 %v6322_v18  ;;  %2578 = vmatpush1.bf16.msra.mxu1 %v6323_v40 }
 0x8a3   :  { %2538 = vmatprep.subr.bf16.mxu0 %v6324_v16  ;;  %2579 = vmatprep.subr.bf16.mxu1 %v6325_v3 }
 0x8a6   :  { %2539 = vmatpush1.bf16.msra.mxu0 %v6326_v61  ;;  %2580 = vmatpush1.bf16.msra.mxu1 %v6327_v0 }
 0x8a7   :  { %2540 = vmatprep.subr.bf16.mxu0 %v6328_v43  ;;  %2581 = vmatprep.subr.bf16.mxu1 %v6329_v48 }
 0x8aa   :  { %2541 = vmatpush1.bf16.msra.mxu0 %v6330_v32  ;;  %2582 = vmatpush1.bf16.msra.mxu1 %v6331_v50 }
 0x8ab   :  { %2542 = vmatprep.subr.bf16.mxu0 %v6332_v6  ;;  %2583 = vmatprep.subr.bf16.mxu1 %v6333_v7 }
 0x8ae   :  { %2543 = vmatpush1.bf16.msra.mxu0 %v6334_v12  ;;  %2584 = vmatpush1.bf16.msra.mxu1 %v6335_v9 }
 0x8af   :  { %2544 = vmatprep.subr.bf16.mxu0 %v6336_v10  ;;  %2585 = vmatprep.subr.bf16.mxu1 %v6337_v11 }
 0x8b2   :  { %2545 = vmatpush1.bf16.msra.mxu0 %v6338_v56  ;;  %2586 = vmatpush1.bf16.msra.mxu1 %v6339_v55 }
 0x8b3   :  { %2546 = vmatprep.subr.bf16.mxu0 %v6340_v19  ;;  %2587 = vmatprep.subr.bf16.mxu1 %v6341_v20 }
 0x8b6   :  { %2547 = vmatpush1.bf16.msra.mxu0 %v6342_v21  ;;  %2588 = vmatpush1.bf16.msra.mxu1 %v6343_v22 }
 0x8b7   :  { %2548 = vmatprep.subr.bf16.mxu0 %v6344_v24  ;;  %2589 = vmatprep.subr.bf16.mxu1 %v6345_v25 }
 0x8ba   :  { %2549 = vmatpush1.bf16.msra.mxu0 %v6346_v27  ;;  %2590 = vmatpush1.bf16.msra.mxu1 %v6347_v28 }
 0x8bb   :  { %2550 = vmatprep.subr.bf16.mxu0 %v6348_v5  ;;  %2591 = vmatprep.subr.bf16.mxu1 %v6349_v8 }
 0x8be   :  { %2551 = vmatpush1.bf16.msra.mxu0 %v6350_v49  ;;  %2592 = vmatpush1.bf16.msra.mxu1 %v6351_v13 }
 0x8bf   :  { %2552 = vmatprep.subr.bf16.mxu0 %v6352_v63  ;;  %2593 = vmatprep.subr.bf16.mxu1 %v6353_v52 }
 0x8c2   :  { %2553 = vmatpush1.bf16.msra.mxu0 %v6354_v14  ;;  %2594 = vmatpush1.bf16.msra.mxu1 %v6355_v1 }
 0x8c3   :  { %2554 = vmatprep.subr.bf16.mxu0 %v6356_v62  ;;  %2595 = vmatprep.subr.bf16.mxu1 %v6357_v60  ;;  %v6365_v62 = vmax.f32 %v5139_v23, %v5459_v15 }
 0x8c6   :  { %2555 = vmatpush1.bf16.msra.mxu0 %v6358_v17  ;;  %2596 = vmatpush1.bf16.msra.mxu1 %v6359_v51 }
 0x8c7   :  { %2556 = vmatprep.subr.bf16.mxu0 %v6360_v58  ;;  %2597 = vmatprep.subr.bf16.mxu1 %v6361_v57 }
 0x8ca   :  { %2557 = vmatpush1.bf16.msra.mxu0 %v6362_v4  ;;  %2598 = vmatpush1.bf16.msra.mxu1 %v6363_v29 }
 0x940   :  { %v2313_v54 = vpop.f32.mrb[52].mxu0  ;;  %v2354_v26 = vpop.f32.mrb[52].mxu1 }
 0x941   :  { %v2314_v45 = vadd.f32 %v2313_v54, %v6364_v41  ;;  %v2315_v44 = vpop.f32.mrb[53].mxu0  ;;  %v2356_v37 = vpop.f32.mrb[53].mxu1  ;;  %v2355_v40 = vadd.f32 %v2354_v26, %v6090_v31 }
 0x942   :  { %v2316_v38 = vadd.f32 %v2315_v44, %v4265_v2  ;;  %v2317_v39 = vpop.f32.mrb[54].mxu0  ;;  %v2358_v34 = vpop.f32.mrb[54].mxu1  ;;  %v2357_v36 = vadd.f32 %v2356_v37, %v4270_v53 }
 0x943   :  { %v2885_v35 = vmul.f32 -1.442695, %v2314_v45  ;;  %v2318_v42 = vpop.f32.mrb[55].mxu0  ;;  %v2359_v46 = vpop.f32.mrb[55].mxu1 }
 0x944   :  { %v2886_v33 = vmul.f32 -1.442695, %v2316_v38  ;;  %v2887_v18 = vmul.f32 -1.442695, %v2357_v36  ;;  %v2634_v36 = vld [vmem:[%s5654_s4 + $0x8] sm:$0xff] }
 0x945   :  { %3335 = vpow2.f32 %v2885_v35 }
 0x946   :  { %3337 = vpow2.f32 %v2886_v33  ;;  %v2633_v33 = vld [vmem:[%s5654_s4] sm:$0xff] }
 0x947   :  { %3339 = vpow2.f32 %v2887_v18  ;;  %v2949_v18 = vpack.c.bf16 %v2634_v36, %v2633_v33 }
 0x948   :  { %3341 = vtanh.f32 %v2355_v40  ;;  %v2635_v40 = vld [vmem:[%s5654_s4 + $0x10] sm:$0xff] }
 0x94f   :  { %v3336_v16 = vpop.eup %3335 }
 0x950   :  { %v3338_v3 = vpop.eup %3337  ;;  %v2364_v61 = vadd.f32 1.0, %v3336_v16  ;;  %v2636_v16 = vld [vmem:[%s5654_s4 + $0x18] sm:$0xff] }
 0x951   :  { %v2370_v0 = vadd.f32 1.0, %v3338_v3  ;;  %v3340_v43 = vpop.eup %3339  ;;  %v2952_v3 = vpack.c.bf16 %v2636_v16, %v2635_v40 }
 0x952   :  { %3343 = vrcp.f32 %v2364_v61  ;;  %v3342_v48 = vpop.eup %3341  ;;  %v2377_v7 = vadd.f32 1.0, %v3340_v43  ;;  %v2637_v61 = vld [vmem:[%s5654_s4 + $0x20] sm:$0xff] }
 0x953   :  { %3345 = vrcp.f32 %v2370_v0  ;;  %v2638_v0 = vld [vmem:[%s5654_s4 + $0x28] sm:$0xff] }
 0x954   :  { %3347 = vrcp.f32 %v2377_v7  ;;  %v2955_v43 = vpack.c.bf16 %v2638_v0, %v2637_v61  ;;  %v2642_v7 = vld [vmem:[%s5654_s4 + $0x48] sm:$0xff] }
 0x95c   :  { %v3344_v32 = vpop.eup %3343 }
 0x95d   :  { %v3346_v50 = vpop.eup %3345  ;;  %v2381_v6 = vmul.f32 %v3344_v32, %v3342_v48  ;;  %v2639_v48 = vld [vmem:[%s5654_s4 + $0x30] sm:$0xff]  ;;  %v2640_v32 = vld [vmem:[%s5654_s4 + $0x38] sm:$0xff] }
 0x95e   :  { %v2380_v12 = vmul.f32 %v3346_v50, %v5451_v47  ;;  %v2888_v47 = vld [vmem:[%s5650_s0 + $0x38] sm:$0xff]  ;;  %v3348_v63 = vpop.eup %3347  ;;  %v2958_v50 = vpack.c.bf16 %v2640_v32, %v2639_v48 }
 0x960   :  { %v5570_v9 = vadd.f32 %v2381_v6, %v2380_v12  ;;  %v2422_v10 = vpop.f32.mrb[56].mxu0  ;;  %v2463_v11 = vpop.f32.mrb[56].mxu1  ;;  %v2641_v6 = vld [vmem:[%s5654_s4 + $0x40] sm:$0xff] }
 0x961   :  { %v2424_v56 = vpop.f32.mrb[57].mxu0  ;;  %v2465_v55 = vpop.f32.mrb[57].mxu1  ;;  %v2961_v12 = vpack.c.bf16 %v2642_v7, %v2641_v6 }
 0x962   :  { %v2474_v19 = vcombine.low %v2422_v10, %v2424_v56  ;;  %v2475_v20 = vcombine.low %v2463_v11, %v2465_v55  ;;  %v2426_v21 = vpop.f32.mrb[58].mxu0  ;;  %v2467_v22 = vpop.f32.mrb[58].mxu1  ;;  %3349 = vtanh.f32 %v5570_v9  ;;  %v2643_v10 = vld [vmem:[%s5654_s4 + $0x50] sm:$0xff]  ;;  %v2644_v11 = vld [vmem:[%s5654_s4 + $0x58] sm:$0xff]  ;;  %v3678_v55 = vmov 0.0  }
 0x963   :  { %v2427_v24 = vpop.f32.mrb[59].mxu0  ;;  %v2468_v25 = vpop.f32.mrb[59].mxu1  ;;  %v2964_v56 = vpack.c.bf16 %v2644_v11, %v2643_v10  ;;  %v2647_v22 = vld [vmem:[%s5654_s4 + $0x70] sm:$0xff] }
 0x964   :  { %v2482_v27 = vrot.slane %v2474_v19, %v4153_v59  ;;  %v2489_v28 = vrot.slane %v2475_v20, %v4153_v59  ;;  %v2645_v19 = vld [vmem:[%s5654_s4 + $0x60] sm:$0xff]  ;;  %v2646_v20 = vld [vmem:[%s5654_s4 + $0x68] sm:$0xff]  ;;  %v2648_v24 = vld [vmem:[%s5654_s4 + $0x78] sm:$0xff]  ;;  %s3679_s4 = smov [#allocation8]  }
 0x965   :  { %v2967_v21 = vpack.c.bf16 %v2646_v20, %v2645_v19  ;;  %v2970_v25 = vpack.c.bf16 %v2648_v24, %v2647_v22  ;;  %s2734_s29 = sshll.u32 %s3679_s4, 4  ;;  %s2735_s29 = int_to_ptr.vmem [resolvable:$true] %s2734_s29 }
 0x966   :  { %v2490_v5 = vcombine.low %v2482_v27, %v2489_v28  ;;  %s3641_s30 = scalar_lea.vmem %s2735_s29, 32  ;;  %p3646_p11 = scmp.lt.s32.totalorder %s2735_s29, %s2735_s29 }
 0x967   :  { %p3642_p10 = scmp.ne.s32.totalorder %s2735_s29, %s3641_s30  ;;  %p3647_p12 = scmp.lt.s32.totalorder %s3641_s30, %s3641_s30 }
 0x968   :  { %v2492_v8 = vadd.f32 %v2888_v47, %v2490_v5 }
 0x969   :  { %p3648_p13 = por %p3647_p12, %p3646_p11 }
 0x96a   :  { %v2889_v49 = vmul.f32 -1.442695, %v2492_v8  ;;  %v2500_v13 = vrot.slane %v2492_v8, 2  ;;  %v2511_v17 = vrot.slane %v2492_v8, 6  ;;  %v2508_v57 = vrot.slane %v2492_v8, 4 }
 0x96b   :  { %p3649_p0 = pnand %p3648_p13, %p3642_p10 }
 0x96c   :  { %v3350_v52 = vpop.eup %3349  ;;  %3351 = vpow2.f32 %v2889_v49  ;;  %v2890_v14 = vmul.f32 -1.442695, %v2500_v13  ;;  %v2891_v51 = vmul.f32 -1.442695, %v2511_v17 }
 0x96d   :  { %v2384_v1 = vmul.f32 %v3350_v52, %v3348_v63 }
 0x96e   :  { %3353 = vpow2.f32 %v2890_v14 }
 0x96f   :  { %v5581_v60 = vmax.f32 %v6365_v62, %v2384_v1  ;;  %v2525_v59 = vpack.c.bf16 %v2384_v1, %v2384_v1  ;;  %3355 = vpow2.f32 %v2891_v51 }
 0x971   :  { %2558 = vmatprep.mubr.bf16.mxu0 %v2525_v59  ;;  %2599 = vmatprep.mubr.bf16.mxu1 %v2525_v59 }
 0x976   :  { %v3352_v58 = vpop.eup %3351 }
 0x977   :  { %v2496_v4 = vadd.f32 1.0, %v3352_v58 }
 0x978   :  { %v3354_v29 = vpop.eup %3353 }
 0x979   :  { %3357 = vrcp.f32 %v2496_v4  ;;  %v2505_v54 = vadd.f32 1.0, %v3354_v29  ;;  %v3356_v26 = vpop.eup %3355 }
 0x97a   :  { %3359 = vtanh.f32 %v2508_v57  ;;  %v2516_v15 = vadd.f32 1.0, %v3356_v26 }
 0x97b   :  { %3361 = vrcp.f32 %v2505_v54 }
 0x97c   :  { %3363 = vrcp.f32 %v2516_v15 }
 0x983   :  { %v3358_v45 = vpop.eup %3357 }
 0x984   :  { %v3360_v44 = vpop.eup %3359 }
 0x985   :  { %v3362_v23 = vpop.eup %3361  ;;  %v2520_v38 = vmul.f32 %v3360_v44, %v3358_v45 }
 0x986   :  { %v2519_v37 = vmul.f32 %v3362_v23, %v5466_v30  ;;  %v3364_v34 = vpop.eup %3363  ;;  %v3676_v30 = vmov 0.0|0.0  }
 0x987   :  { %2948 = vmatprep.subr.bf16.mxu0 %v3676_v30 }
 0x988   :  { %v2521_v39 = vadd.f32 %v2520_v38, %v2519_v37 }
 0x98a   :  { %3365 = vtanh.f32 %v2521_v39  ;;  %v2895_v39 = vld [vmem:[#allocation7] ss:$0 sm:$0xff] }
 0x994   :  { %v3366_v35 = vpop.eup %3365 }
 0x995   :  { %v2523_v42 = vmul.f32 %v3366_v35, %v3364_v34 }
 0x997   :  { %v2524_v46 = vpack.c.bf16 %v2523_v42, %v2523_v42 }
 0x999   :  { %2559 = vmatmul.mubr.bf16.vlgmr.msra.gmra.mrb[60].mxu0 %v2524_v46  ;;  %2600 = vmatmul.mubr.bf16.vlgmr.msra.gmra.mrb[60].mxu1 %v2524_v46 }
 0x99a   :  { %2950 = vmatpush3.bf16.msra.mxu0 %v2949_v18  ;;  %2945 = vmatprep.mubr.msk.f32.mxu0 %vm3677_vm0, %v3678_v55 }
 0x99b   :  { %2951 = vmatprep.subr.bf16.mxu0 %v3676_v30 }
 0x99e   :  { %2953 = vmatpush3.bf16.msra.mxu0 %v2952_v3 }
 0x99f   :  { %2954 = vmatprep.subr.bf16.mxu0 %v3676_v30 }
 0x9a2   :  { %2956 = vmatpush3.bf16.msra.mxu0 %v2955_v43 }
 0x9a3   :  { %2957 = vmatprep.subr.bf16.mxu0 %v3676_v30 }
 0x9a6   :  { %2959 = vmatpush3.bf16.msra.mxu0 %v2958_v50 }
 0x9a7   :  { %2960 = vmatprep.subr.bf16.mxu0 %v3676_v30 }
 0x9aa   :  { %2962 = vmatpush3.bf16.msra.mxu0 %v2961_v12 }
 0x9ab   :  { %2963 = vmatprep.subr.bf16.mxu0 %v3676_v30 }
 0x9ae   :  { %2965 = vmatpush3.bf16.msra.mxu0 %v2964_v56 }
 0x9af   :  { %2966 = vmatprep.subr.bf16.mxu0 %v3676_v30 }
 0x9b2   :  { %2968 = vmatpush3.bf16.msra.mxu0 %v2967_v21 }
 0x9b3   :  { %2969 = vmatprep.subr.bf16.mxu0 %v3676_v30 }
 0x9b6   :  { %2971 = vmatpush3.bf16.msra.mxu0 %v2970_v25 }
 0xa6c   :  { %v2560_v27 = vpop.f32.mrb[60].mxu0  ;;  %v2601_v28 = vpop.f32.mrb[60].mxu1 }
 0xa6d   :  { %v2561_v47 = vadd.f32 %v2560_v27, %v6364_v41  ;;  %v2562_v5 = vpop.f32.mrb[61].mxu0  ;;  %v2603_v8 = vpop.f32.mrb[61].mxu1  ;;  %v2602_v51 = vadd.f32 %v2601_v28, %v6090_v31 }
 0xa6e   :  { %v2563_v49 = vadd.f32 %v2562_v5, %v4265_v2  ;;  %v2564_v13 = vpop.f32.mrb[62].mxu0  ;;  %v2605_v63 = vpop.f32.mrb[62].mxu1  ;;  %v2604_v59 = vadd.f32 %v2603_v8, %v4270_v53 }
 0xa6f   :  { %v2892_v52 = vmul.f32 -1.442695, %v2561_v47  ;;  %v2565_v14 = vpop.f32.mrb[63].mxu0  ;;  %v2606_v1 = vpop.f32.mrb[63].mxu1 }
 0xa70   :  { %v2893_v62 = vmul.f32 -1.442695, %v2563_v49  ;;  %v2894_v17 = vmul.f32 -1.442695, %v2604_v59 }
 0xa71   :  { %3367 = vpow2.f32 %v2892_v52 }
 0xa72   :  { %3369 = vpow2.f32 %v2893_v62 }
 0xa73   :  { %3371 = vpow2.f32 %v2894_v17 }
 0xa74   :  { %3373 = vtanh.f32 %v2602_v51 }
 0xa7b   :  { %v3368_v58 = vpop.eup %3367 }
 0xa7c   :  { %v3370_v57 = vpop.eup %3369  ;;  %v2611_v41 = vadd.f32 1.0, %v3368_v58 }
 0xa7d   :  { %v2617_v4 = vadd.f32 1.0, %v3370_v57  ;;  %v3372_v2 = vpop.eup %3371 }
 0xa7e   :  { %3375 = vrcp.f32 %v2611_v41  ;;  %v3374_v29 = vpop.eup %3373  ;;  %v2624_v44 = vadd.f32 1.0, %v3372_v2 }
 0xa7f   :  { %3377 = vrcp.f32 %v2617_v4 }
 0xa80   :  { %3379 = vrcp.f32 %v2624_v44 }
 0xa88   :  { %v3376_v54 = vpop.eup %3375 }
 0xa89   :  { %v3378_v26 = vpop.eup %3377  ;;  %v2628_v45 = vmul.f32 %v3376_v54, %v3374_v29 }
 0xa8a   :  { %v2627_v23 = vmul.f32 %v3378_v26, %v5570_v9  ;;  %v3380_v31 = vpop.eup %3379 }
 0xa8c   :  { %v2629_v53 = vadd.f32 %v2628_v45, %v2627_v23 }
 0xa8e   :  { %3381 = vtanh.f32 %v2629_v53 }
 0xa98   :  { %v3382_v15 = vpop.eup %3381 }
 0xa99   :  { %v2631_v37 = vmul.f32 %v3382_v15, %v3380_v31 }
 0xa9b   :  { %v2632_v38 = vmax.f32 %v5581_v60, %v2631_v37 }
 0xa9d   :  { %2946 = vmatmul.mubr.f32.vlgmr.msra.gmra.mrb[64].mxu0 %v2632_v38 }
 0xb70   :  { %v2722_v34 = vpop.f32.mrb[64].mxu0 }
 0xb71   :  { %v2723_v35 = vadd.f32 %v2895_v39, %v2722_v34  ;;  %v2947_v42 = vpop.f32.mrb[65].mxu0 }
 0xb73   :  { %2727 = vst.msk [vmem:[#allocation8] sm:$0x3] %vm2726_vm1, %v2723_v35 }
 0xb74   :  { %3652 = shalt.err (!%p3649_p0)
}
 0xb75   :  { %s3653_s2 = scalar_lea.hbm %s5656_s6, 32 }
 0xb76   :  { %p3654_p1 = scmp.ne.s32.totalorder %s5656_s6, %s3653_s2  ;;  %p3657_p2 = scmp.lt.u32.totalorder %s3653_s2, %s5656_s6 }
 0xb78   :  { %p3659_p3 = pnand %p3657_p2, %p3654_p1 }
 0xb7a   :  { %3662 = shalt.err (!%p3659_p3)
}
 0xb7b   :  { %2737 = dma.vmem_to_hbm [thread:$0]  %s2735_s29, 32, %s5656_s6, [#allocation4]  }
 0xb7c   :  { %3667 = dma.done.wait [#allocation4], 32  }
 0xb7d   :  { %3668 = vsyncadd [#allocation4], 4294967264 }
 0xb7e   :  { %2741 = vsyncpa [#allocation3], 1 }
 0xb7f   :  { %2742 = vsyncpa [#allocation6], 1 }
 0xb80   :  { %2743 = vsyncpa [#allocation4], 1 }

</bundles_post_ra>
